<compile_context>
chip_gen: v6e
topology: v6e:2x2x1
jax: 0.10.0
libtpu: 0.0.40
codegen_flags: <defaults>
</compile_context>

<pallas_src>
import functools

import jax
import jax.numpy as jnp
from jax.experimental import pallas as pl
from jax.experimental.pallas import tpu as pltpu


def _elementwise_dtype():
    """bf16 elementwise path on chips with bf16 VPU/EUP (v6e/v7x), else f32 (v5e)."""
    try:
        kind = jax.devices()[0].device_kind.lower()
    except Exception:
        return jnp.float32
    return jnp.bfloat16 if ("v6" in kind or "v7" in kind) else jnp.float32


def _vmem_limit_bytes():
    """Explicit scoped-VMEM budget (default scoped limits are too small at prod K)."""
    try:
        kind = jax.devices()[0].device_kind.lower()
    except Exception:
        kind = ""
    if "v7" in kind:
        return 48 << 20          # v7x: 64 MiB physical per TensorCore
    if any(v in kind for v in ("v4", "v5", "v6")):
        return 96 << 20          # 128 MiB physical
    return 32 << 20


def _round_up(x, m):
    return ((x + m - 1) // m) * m


def _pad2(x, rows, cols):
    return jnp.pad(x, ((0, rows - x.shape[0]), (0, cols - x.shape[1])))


# --------------------------------------------------------------------------- #
# Pallas kernel: the O(B*K*K) core.
#   pref_logit[b, j, k] = a1[b, k] + B1[j, k]
#   diff_logit[b, j, k] = a2[b, k] + B2[j, k]
#   o[b, j] = sigmoid( sum_k (sigmoid(pref) - sigmoid(diff)) * w3[k] + b3 )
# --------------------------------------------------------------------------- #
def kscd_core_kernel(a1_ref, a2_ref, b1_ref, b2_ref, w3_ref, b3_ref, o_ref,
                     *, kc, n_chunks, compute_dtype):
    f32 = jnp.float32
    cdt = compute_dtype
    tb, tj = o_ref.shape

    def contrib(c):
        # Static, lane-aligned (multiple-of-128) chunk slice: zero-cost ref view.
        sl = slice(c * kc, (c + 1) * kc)
        a1c = a1_ref[:, sl].astype(cdt)                              # (tb, kc)
        a2c = a2_ref[:, sl].astype(cdt)
        b1c = b1_ref[:, sl].astype(cdt)                              # (tj, kc)
        b2c = b2_ref[:, sl].astype(cdt)
        # Only one (tb, tj, kc) sigmoid intermediate live at a time.
        pref = jax.nn.sigmoid(a1c[:, None, :] + b1c[None, :, :])    # (tb, tj, kc)
        diff = jax.nn.sigmoid(a2c[:, None, :] + b2c[None, :, :])
        delta = (pref - diff).astype(jnp.bfloat16)                  # bf16 for MXU
        w3c = w3_ref[sl, :].astype(jnp.bfloat16)                    # (kc, 1)
        # Single fused N=1 MXU contraction per chunk (instead of two).
        return jnp.dot(delta.reshape(tb * tj, kc), w3c,
                       preferred_element_type=f32).reshape(tb, tj)

    acc = contrib(0)
    for c in range(1, n_chunks):
        acc = acc + contrib(c)

    o_ref[...] = jax.nn.sigmoid(acc + b3_ref[0]).astype(o_ref.dtype)


# --------------------------------------------------------------------------- #
# Wrapper: gathers + small j-invariant linear layers in plain JAX (hoisted out
# of the grid per perf review), then the Pallas core, then the kn average.
# --------------------------------------------------------------------------- #
def kscd_forward(stu_id, exer_id, kn_emb, params, *, tb=None, compute_dtype=None):
    f32 = jnp.float32
    if compute_dtype is None:
        compute_dtype = _elementwise_dtype()

    ke = jnp.asarray(params["knowledge_emb"], f32)                   # (K, D)
    K, D = ke.shape
    P = params["prompt_stu"].shape[1]
    n_ranges = len(params["student_emb"])

    # ---- embedding / index_select gathers (data-dependent; plain-JAX glue) -
    stu_cat = jnp.concatenate([jnp.asarray(x, f32) for x in params["student_emb"]], 0)
    prompt_rep = jnp.tile(jnp.asarray(params["prompt_stu"], f32), (n_ranges, 1))
    stu_b = stu_cat[stu_id]                                          # (B, D)
    prompt_stu_b = prompt_rep[stu_id]                                # (B, P)

    temp_vectors = jnp.concatenate(
        [jnp.tile(jnp.asarray(v, f32)[None, :], (r[1] - r[0] + 1, 1))
         for v, r in zip(params["s_exer_vectors"], params["s_ranges"])], 0)
    prompt_exer_b = temp_vectors[exer_id]                            # (B, P)
    exer_b = jnp.asarray(params["k_difficulty"], f32)[exer_id]       # (B, D)

    # ---- weights (split + transposed once) ----------------------------------
    w1 = jnp.asarray(params["W1"], f32)                              # (K, K+D)
    w2 = jnp.asarray(params["W2"], f32)
    w1s_t, w1k_t = w1[:, :K].T, w1[:, K:].T                          # (K,K), (D,K)
    w2s_t, w2k_t = w2[:, :K].T, w2[:, K:].T
    w3_t = jnp.asarray(params["W3"], f32).T                          # (K, 1)
    b3 = jnp.asarray(params["b3"], f32).reshape(1)                   # (1,) -> SMEM

    wfc1 = jnp.asarray(params["Wfc1"], f32)                          # (K, P+K)
    wfc2 = jnp.asarray(params["Wfc2"], f32)
    wfc1p_t, wfc1s_t = wfc1[:, :P].T, wfc1[:, P:].T                  # (P,K), (K,K)
    wfc2p_t, wfc2s_t = wfc2[:, :P].T, wfc2[:, P:].T
    bfc1 = jnp.asarray(params["bfc1"], f32).reshape(1, K)
    bfc2 = jnp.asarray(params["bfc2"], f32).reshape(1, K)
    ke_t = ke.T                                                      # (D, K)

    # ---- j-invariant per-batch work, hoisted out of the (i, j) grid ---------
    old_stu = jax.nn.sigmoid(stu_b @ ke_t)                           # (B, K)
    s = jax.nn.sigmoid(prompt_stu_b @ wfc1p_t + old_stu @ wfc1s_t + bfc1)
    prompt_exer = jax.nn.sigmoid(prompt_exer_b)
    old_exer = jax.nn.sigmoid(jax.nn.sigmoid(exer_b) @ ke_t)
    e = jax.nn.sigmoid(prompt_exer @ wfc2p_t + old_exer @ wfc2s_t + bfc2)
    a1 = s @ w1s_t                                                   # (B, K)
    a2 = e @ w2s_t                                                   # (B, K)

    # ---- j-only work, hoisted out of the grid --------------------------------
    b1 = ke @ w1k_t                                                  # (K, K)
    b2 = ke @ w2k_t                                                  # (K, K)

    # ---- padding: K -> multiple of 128 (lane-dense), batch -> multiple of tb -
    B = a1.shape[0]
    Kp = _round_up(K, 128)
    tj = 128
    kc = 128
    n_chunks = Kp // kc
    n_j = Kp // tj

    if tb is None:
        tb = min(128, _round_up(B, 8))
        if n_j == 1 and B > 8:
            # ensure >= 2 grid blocks on a parallel axis (v7x has 2 TensorCores)
            tb = min(tb, max(8, _round_up((B + 1) // 2, 8)))
    tb = max(8, _round_up(tb, 8))
    Bp = _round_up(B, tb)
    grid = (Bp // tb, n_j)

    # zero padding => padded concepts contribute sigmoid(0)-sigmoid(0) = 0,
    # and padded W3 rows are 0, so they add nothing to the logit.
    a1_p = _pad2(a1, Bp, Kp)
    a2_p = _pad2(a2, Bp, Kp)
    b1_p = _pad2(b1, Kp, Kp)
    b2_p = _pad2(b2, Kp, Kp)
    w3_p = _pad2(w3_t, Kp, 1)

    batch_spec = pl.BlockSpec((tb, Kp), lambda i, j: (i, 0))
    know_spec = pl.BlockSpec((tj, Kp), lambda i, j: (j, 0))
    w3_spec = pl.BlockSpec((Kp, 1), lambda i, j: (0, 0),
                           pipeline_mode=pl.Buffered(1))             # single-buffer
    b3_spec = pl.BlockSpec(memory_space=pltpu.MemorySpace.SMEM)
    out_spec = pl.BlockSpec((tb, tj), lambda i, j: (i, j))

    flops = int(5 * Bp * Kp * Kp)
    transcendentals = int(2 * Bp * Kp * Kp + Bp * Kp)
    bytes_accessed = int(4 * (2 * Bp * Kp * n_j + 2 * Kp * Kp * (Bp // tb)
                              + Kp + 1 + Bp * Kp))

    o = pl.pallas_call(
        functools.partial(kscd_core_kernel, kc=kc, n_chunks=n_chunks,
                          compute_dtype=compute_dtype),
        out_shape=jax.ShapeDtypeStruct((Bp, Kp), f32),
        grid=grid,
        in_specs=[batch_spec, batch_spec, know_spec, know_spec, w3_spec, b3_spec],
        out_specs=out_spec,
        compiler_params=pltpu.CompilerParams(
            dimension_semantics=("parallel", "parallel"),
            vmem_limit_bytes=_vmem_limit_bytes()),
        cost_estimate=pl.CostEstimate(flops=flops,
                                      transcendentals=transcendentals,
                                      bytes_accessed=bytes_accessed),
    )(a1_p, a2_p, b1_p, b2_p, w3_p, b3)

    o = o[:B, :K]                                                    # drop padding
    # kn-weighted average over concepts (tiny; outside the kernel so the kernel's
    # stores stay lane-dense).  Matches PyTorch semantics: divides by zero if a
    # row of kn_emb has no active concept.
    kn = jnp.asarray(kn_emb, f32)
    sum_out = jnp.sum(o * kn, axis=1, keepdims=True)
    count = jnp.sum(kn, axis=1, keepdims=True)
    return sum_out / count


def kscd_reference(stu_id, exer_id, kn_emb, params):
    """Pure-JAX mirror of the PyTorch Source_Net.forward (f32, for validation)."""
    f32 = jnp.float32
    ke = jnp.asarray(params["knowledge_emb"], f32)
    K, D = ke.shape
    n_ranges = len(params["student_emb"])
    stu_cat = jnp.concatenate([jnp.asarray(x, f32) for x in params["student_emb"]], 0)
    prompt_rep = jnp.tile(jnp.asarray(params["prompt_stu"], f32), (n_ranges, 1))

    prompt_stu = prompt_rep[stu_id]
    old_stu = jax.nn.sigmoid(stu_cat[stu_id] @ ke.T)
    new_stu = jnp.concatenate([prompt_stu, old_stu], axis=1)
    batch_stu_emb = jax.nn.sigmoid(new_stu @ params["Wfc1"].T + params["bfc1"])

    temp_vectors = jnp.concatenate(
        [jnp.tile(jnp.asarray(v, f32)[None, :], (r[1] - r[0] + 1, 1))
         for v, r in zip(params["s_exer_vectors"], params["s_ranges"])], 0)
    prompt_exer = jax.nn.sigmoid(temp_vectors[exer_id])
    old_exer = jax.nn.sigmoid(jnp.asarray(params["k_difficulty"], f32)[exer_id])
    old_exer = jax.nn.sigmoid(old_exer @ ke.T)
    new_exer = jnp.concatenate([prompt_exer, old_exer], axis=1)
    batch_exer_emb = jax.nn.sigmoid(new_exer @ params["Wfc2"].T + params["bfc2"])

    B = batch_stu_emb.shape[0]
    stu_vec = jnp.broadcast_to(batch_stu_emb[:, None, :], (B, K, K))
    exe_vec = jnp.broadcast_to(batch_exer_emb[:, None, :], (B, K, K))
    kn_vec = jnp.broadcast_to(ke[None, :, :], (B, K, D))
    pref = jax.nn.sigmoid(jnp.concatenate([stu_vec, kn_vec], -1) @ params["W1"].T)
    diff = jax.nn.sigmoid(jnp.concatenate([exe_vec, kn_vec], -1) @ params["W2"].T)
    o = jax.nn.sigmoid((pref - diff) @ params["W3"].T + params["b3"])     # (B, K, 1)
    sum_out = jnp.sum(o * kn_emb[..., None], axis=1)
    count = jnp.sum(kn_emb, axis=1, keepdims=True)
    return sum_out / count


if __name__ == "__main__":
    knowledge_n, exer_n, student_n, low_dim, pp_dim = 16, 32, 32, 8, 4
    s_ranges = [(0, 15), (16, 31)]        # two source ranges covering exercise ids
    B = 16

    key = jax.random.PRNGKey(0)
    ks = jax.random.split(key, 20)

    def xavier(k, shape):
        fan_out, fan_in = shape[0], shape[-1]
        std = (2.0 / (fan_in + fan_out)) ** 0.5
        return std * jax.random.normal(k, shape, dtype=jnp.float32)

    params = {
        "student_emb": [xavier(ks[0], (student_n, low_dim)),
                        xavier(ks[1], (student_n, low_dim))],
        "prompt_stu": xavier(ks[2], (student_n, pp_dim)),
        "knowledge_emb": xavier(ks[3], (knowledge_n, low_dim)),
        "k_difficulty": xavier(ks[4], (exer_n, low_dim)),
        "s_exer_vectors": [0.5 * jax.random.normal(ks[5], (pp_dim,), dtype=jnp.float32),
                           0.5 * jax.random.normal(ks[6], (pp_dim,), dtype=jnp.float32)],
        "s_ranges": s_ranges,
        "W1": xavier(ks[7], (knowledge_n, knowledge_n + low_dim)),
        "W2": xavier(ks[8], (knowledge_n, knowledge_n + low_dim)),
        "W3": xavier(ks[9], (1, knowledge_n)),
        "b3": 0.1 * jax.random.normal(ks[10], (1,), dtype=jnp.float32),
        "Wfc1": xavier(ks[11], (knowledge_n, pp_dim + knowledge_n)),
        "bfc1": 0.1 * jax.random.normal(ks[12], (knowledge_n,), dtype=jnp.float32),
        "Wfc2": xavier(ks[13], (knowledge_n, pp_dim + knowledge_n)),
        "bfc2": 0.1 * jax.random.normal(ks[14], (knowledge_n,), dtype=jnp.float32),
    }
    # NOTE: drop_1 / drop_2 / layer1 from __init__ are unused in forward() -> omitted.

    stu_id = jax.random.randint(ks[15], (B,), 0, len(s_ranges) * student_n)
    exer_id = jax.random.randint(ks[16], (B,), 0, exer_n)
    kn_emb = (jax.random.uniform(ks[17], (B, knowledge_n)) < 0.4).astype(jnp.float32)
    kn_emb = kn_emb.at[:, 0].set(1.0)     # ensure count_of_concept > 0

    cdt = _elementwise_dtype()
    out = kscd_forward(stu_id, exer_id, kn_emb, params, compute_dtype=cdt)
    jax.block_until_ready(out)

    ref = kscd_reference(stu_id, exer_id, kn_emb, params)
    # bf16 sigmoid path (v6e/v7x): 2e-2; f32 path (v5e): looser than pure-f32
    # because delta is cast to bf16 for the MXU contraction (per perf review).
    tol = 3e-3 if cdt == jnp.float32 else 2e-2
    assert out.shape == (B, 1)
    assert jnp.allclose(out, ref, atol=tol, rtol=tol), (out, ref)

    print("KERNEL_OK")
</pallas_src>

<mosaic_0001>
module attributes {stable_mosaic.version = 11 : i64} {
  func.func @kscd_core_kernel(%arg0: i32, %arg1: i32, %arg2: memref<8x128xf32, #tpu.memory_space<vmem>>, %arg3: memref<8x128xf32, #tpu.memory_space<vmem>>, %arg4: memref<128x128xf32, #tpu.memory_space<vmem>>, %arg5: memref<128x128xf32, #tpu.memory_space<vmem>>, %arg6: memref<128x1xf32, #tpu.memory_space<vmem>>, %arg7: memref<1xf32, #tpu.memory_space<smem>>, %arg8: memref<8x128xf32, #tpu.memory_space<vmem>>) attributes {dimension_semantics = [#tpu.dimension_semantics<parallel>, #tpu.dimension_semantics<parallel>], iteration_bounds = array<i64: 2, 1>, scalar_prefetch = 0 : i64, scratch_operands = 0 : i64, tpu.core_type = #tpu.core_type<tc>, window_params = [{transform_indices = @transform_0, window_bounds = array<i64: 8, 128>}, {transform_indices = @transform_1, window_bounds = array<i64: 8, 128>}, {transform_indices = @transform_2, window_bounds = array<i64: 128, 128>}, {transform_indices = @transform_3, window_bounds = array<i64: 128, 128>}, {pipeline_mode = #tpu.pipeline_mode<synchronous>, transform_indices = @transform_4, window_bounds = array<i64: 128, 1>}, {transform_indices = @transform_5, window_bounds = array<i64: 1>}, {transform_indices = @transform_6, window_bounds = array<i64: 8, 128>}]} {
    %c0 = arith.constant 0 : index
    %c0_0 = arith.constant 0 : index
    %0 = vector.load %arg2[%c0, %c0_0] : memref<8x128xf32, #tpu.memory_space<vmem>>, vector<8x128xf32>
    %c0_1 = arith.constant 0 : index
    %c0_2 = arith.constant 0 : index
    %1 = vector.load %arg3[%c0_1, %c0_2] : memref<8x128xf32, #tpu.memory_space<vmem>>, vector<8x128xf32>
    %c0_3 = arith.constant 0 : index
    %c0_4 = arith.constant 0 : index
    %2 = vector.load %arg4[%c0_3, %c0_4] : memref<128x128xf32, #tpu.memory_space<vmem>>, vector<128x128xf32>
    %c0_5 = arith.constant 0 : index
    %c0_6 = arith.constant 0 : index
    %3 = vector.load %arg5[%c0_5, %c0_6] : memref<128x128xf32, #tpu.memory_space<vmem>>, vector<128x128xf32>
    %4 = vector.shape_cast %0 : vector<8x128xf32> to vector<8x1x128xf32>
    %5 = vector.shape_cast %2 : vector<128x128xf32> to vector<1x128x128xf32>
    %6 = vector.broadcast %4 : vector<8x1x128xf32> to vector<8x128x128xf32>
    %7 = vector.broadcast %5 : vector<1x128x128xf32> to vector<8x128x128xf32>
    %8 = arith.addf %6, %7 : vector<8x128x128xf32>
    %9 = arith.negf %8 : vector<8x128x128xf32>
    %10 = math.exp %9 : vector<8x128x128xf32>
    %cst = arith.constant 1.000000e+00 : f32
    %11 = vector.broadcast %cst : f32 to vector<8x128x128xf32>
    %12 = arith.addf %11, %10 : vector<8x128x128xf32>
    %13 = arith.divf %11, %12 : vector<8x128x128xf32>
    %14 = vector.shape_cast %1 : vector<8x128xf32> to vector<8x1x128xf32>
    %15 = vector.shape_cast %3 : vector<128x128xf32> to vector<1x128x128xf32>
    %16 = vector.broadcast %14 : vector<8x1x128xf32> to vector<8x128x128xf32>
    %17 = vector.broadcast %15 : vector<1x128x128xf32> to vector<8x128x128xf32>
    %18 = arith.addf %16, %17 : vector<8x128x128xf32>
    %19 = arith.negf %18 : vector<8x128x128xf32>
    %20 = math.exp %19 : vector<8x128x128xf32>
    %cst_7 = arith.constant 1.000000e+00 : f32
    %21 = vector.broadcast %cst_7 : f32 to vector<8x128x128xf32>
    %22 = arith.addf %21, %20 : vector<8x128x128xf32>
    %23 = arith.divf %21, %22 : vector<8x128x128xf32>
    %24 = arith.subf %13, %23 : vector<8x128x128xf32>
    %25 = arith.truncf %24 : vector<8x128x128xf32> to vector<8x128x128xbf16>
    %c0_8 = arith.constant 0 : index
    %c0_9 = arith.constant 0 : index
    %26 = vector.load %arg6[%c0_8, %c0_9] : memref<128x1xf32, #tpu.memory_space<vmem>>, vector<128x1xf32>
    %27 = arith.truncf %26 : vector<128x1xf32> to vector<128x1xbf16>
    %28 = vector.shape_cast %25 : vector<8x128x128xbf16> to vector<1024x128xbf16>
    %cst_10 = arith.constant dense<0.000000e+00> : vector<1024x1xf32>
    %29 = tpu.matmul %28, %27, %cst_10 {dimension_numbers = #tpu.dot_dimension_numbers<[1], [0], [0], [1], [0, 0, 1, 1], [], []>} : vector<1024x128xbf16>, vector<128x1xbf16>, vector<1024x1xf32> -> vector<1024x1xf32>
    %30 = vector.shape_cast %29 : vector<1024x1xf32> to vector<8x128xf32>
    %c0_11 = arith.constant 0 : index
    %31 = memref.load %arg7[%c0_11] : memref<1xf32, #tpu.memory_space<smem>>
    %32 = vector.broadcast %31 : f32 to vector<8x128xf32>
    %33 = arith.addf %30, %32 : vector<8x128xf32>
    %34 = arith.negf %33 : vector<8x128xf32>
    %35 = math.exp %34 : vector<8x128xf32>
    %cst_12 = arith.constant 1.000000e+00 : f32
    %36 = vector.broadcast %cst_12 : f32 to vector<8x128xf32>
    %37 = arith.addf %36, %35 : vector<8x128xf32>
    %38 = arith.divf %36, %37 : vector<8x128xf32>
    %c0_13 = arith.constant 0 : index
    %c0_14 = arith.constant 0 : index
    %39 = vector.load %arg8[%c0_13, %c0_14] : memref<8x128xf32, #tpu.memory_space<vmem>>, vector<8x128xf32>
    tpu.vector_store %arg8[%c0_13, %c0_14], %38 {strides = array<i32>} : memref<8x128xf32, #tpu.memory_space<vmem>>, vector<8x128xf32>,
    return
  }
  func.func @transform_0(%arg0: i32, %arg1: i32) -> (i32, i32) {
    %c0_i32 = arith.constant 0 : i32
    %c0_i32_0 = arith.constant 0 : i32
    return %arg0, %c0_i32 : i32, i32
  }
  func.func @transform_1(%arg0: i32, %arg1: i32) -> (i32, i32) {
    %c0_i32 = arith.constant 0 : i32
    %c0_i32_0 = arith.constant 0 : i32
    return %arg0, %c0_i32 : i32, i32
  }
  func.func @transform_2(%arg0: i32, %arg1: i32) -> (i32, i32) {
    %c0_i32 = arith.constant 0 : i32
    %c0_i32_0 = arith.constant 0 : i32
    return %arg1, %c0_i32 : i32, i32
  }
  func.func @transform_3(%arg0: i32, %arg1: i32) -> (i32, i32) {
    %c0_i32 = arith.constant 0 : i32
    %c0_i32_0 = arith.constant 0 : i32
    return %arg1, %c0_i32 : i32, i32
  }
  func.func @transform_4(%arg0: i32, %arg1: i32) -> (i32, i32) {
    %c0_i32 = arith.constant 0 : i32
    %c0_i32_0 = arith.constant 0 : i32
    %c0_i32_1 = arith.constant 0 : i32
    return %c0_i32, %c0_i32_0 : i32, i32
  }
  func.func @transform_5(%arg0: i32, %arg1: i32) -> i32 {
    %c0_i32 = arith.constant 0 : i32
    %c0_i32_0 = arith.constant 0 : i32
    return %c0_i32 : i32
  }
  func.func @transform_6(%arg0: i32, %arg1: i32) -> (i32, i32) {
    %c0_i32 = arith.constant 0 : i32
    return %arg0, %arg1 : i32, i32
  }
}

</mosaic_0001>

<bundles_post_ra>
// kernel: tpu_custom_call.1
= control target key start
LH: loop header
LB: loop body
LE: loop exit
PB: predicated region body
PF: predicated region fallthrough
CT: control target
= control target key end

     0   :  { %s9472_s0 = inlined_call_operand.hbm [shape: f32[16,128], index: 0, kind: input, shape index: {}]   ;;  %s9473_s1 = inlined_call_operand.hbm [shape: f32[16,128], index: 1, kind: input, shape index: {}]   ;;  %s9474_s2 = inlined_call_operand.vmem [shape: f32[128,128], index: 2, kind: input, shape index: {}]   ;;  %s9475_s3 = inlined_call_operand.hbm [shape: f32[128,128], index: 3, kind: input, shape index: {}]   ;;  %s9476_s4 = inlined_call_operand.vmem [shape: f32[128,1], index: 4, kind: input, shape index: {}]   ;;  %s9477_s5 = inlined_call_operand.<no memory space> [shape: f32[1], index: 5, kind: input, shape index: {}]   ;;  %s9478_s6 = inlined_call_operand.hbm [shape: f32[16,128], index: 6, kind: output, shape index: {}]  }
   0x1   :  { %9484 = sst [smem:[#allocation16_spill]] %s9475_s3 }
   0x2   :  { %11 = sst [smem:[#allocation2]] %s9477_s5 }
   0x3   :  { %12 = vsyncpa [#allocation4], 0 }
   0x4   :  { %14 = vsyncpa [#allocation4 + $0x1], 0 }
   0x5   :  { %15 = vsyncpa [#allocation7], 0 }
   0x6   :  { %17 = vsyncpa [#allocation7 + $0x1], 0 }
   0x7   :  { %18 = vsyncpa [#allocation5], 0 }
   0x8   :  { %20 = vsyncpa [#allocation5 + $0x1], 0  ;;  %s7936_s23 = smov 0   ;;  %s7938_s24 = smov 0  }
   0x9   :  { %s7940_s25 = smov 0   ;;  %s7942_s26 = smov 0  }
   0xa   :  { %s7944_s27 = smov 0   ;;  %s7946_s28 = smov 0  }
   0xb LB: > { %9485 = sst [smem:[#allocation14_spill]] %s7884_s27  ;;  %s7967_s5 = sadd.s32 4294967295, %s7888_s28   ;;  %s7888_s28 = sphi %s7946_s28, %s26_s28   ;;  %s7884_s27 = sphi %s7944_s27, %s9503_s27   ;;  %s7880_s26 = sphi %s7942_s26, %s9502_s26   ;;  %s7876_s25 = sphi %s7940_s25, %s9506_s25   ;;  %s7872_s24 = sphi %s7938_s24, %s9505_s24   ;;  %s7868_s23 = sphi %s7936_s23, %s9504_s23  }
   0xc   : > { %s5366_s29 = sadd.s32 4294967294, %s7888_s28   ;;  %p58_p0 = scmp.ne.s32.totalorder %s7872_s24, %s7868_s23 }
   0xd   : > { %p59_p1 = scmp.eq.s32.totalorder %s7967_s5, 0  ;;  %p210_p3 = scmp.eq.s32.totalorder %s5366_s29, 1 }
   0xe   : > { %p5367_p5 = scmp.ge.s32.totalorder %s7888_s28, 1  ;;  %p217_p7 = scmp.lt.s32.totalorder %s7888_s28, 3 }
   0xf   : > { %p7976_p4 = por %p59_p1, %p58_p0  ;;  %p7981_p6 = por %p210_p3, %p58_p0 }
  0x10   : > { %p7986_p8 = pnand %p5367_p5, %p217_p7  ;;  %s7890_s9 = smov [#allocation8]  }
  0x11   : > { %s9487_s7 = scalar_select %p7981_p6, 1, 0 }
  0x12   : > { %s241_s10 = sshll.u32 %s7890_s9, 4  ;;  %p6010_p9 = pneg %p7986_p8  ;;  %s242_s10 = int_to_ptr.vmem [resolvable:$true] %s241_s10 }
  0x13   : > { %s38_s12 = sadd.s32 1, %s7884_s27  ;;  %s7729_s13 = scalar_lea.vmem %s242_s10, 2048 }
  0x14   : > { %p7995_p11 = pnand %p6010_p9, %p59_p1  ;;  %p7730_p13 = scmp.ne.s32.totalorder %s242_s10, %s7729_s13 }
  0x15   : > { %p7737_p5 = scmp.lt.s32.totalorder %s242_s10, %s242_s10  ;;  %p7738_p7 = scmp.lt.s32.totalorder %s7729_s13, %s7729_s13 }
  0x16   : > { %p7720_p12 = pneg %p7995_p11 }
  0x17   : > { %p7739_p2 = por %p7738_p7, %p7737_p5 }
  0x18   : > { %p7732_p0 = pnand %p7730_p13, %p7720_p12 }
  0x1a   : > { %p7733_p3 = pneg %p7732_p0 }
  0x1c   : > { %p7740_p6 = pnand %p7739_p2, %p7733_p3 }
  0x1e   : > { %7743 = shalt.err (!%p7740_p6)
}
  0x1f   : > { %s7891_s14 = smov 128   ;;  %s7892_s15 = smov 8  }
  0x20   : > { %s9490_s3 = sld [smem:[#allocation16_spill]]  ;;  %p40_p2 = scmp.ge.s32.totalorder %s38_s12, 2 }
  0x21   : > { %s45_s18 = sadd.s32 1, %s7876_s25  ;;  %p52_p6 = scmp.ne.s32.totalorder %s7876_s25, %s7872_s24 }
  0x22   : > { %p53_p9 = scmp.eq.s32.totalorder %s7888_s28, 0  ;;  %s9508_s12 = smov (%p40_p2, %s38_s12), 0 }
  0x23   : > { %9491 = sst [smem:[#allocation15_spill]] %s9508_s12  ;;  %p9493_p13 = scmp.eq.s32.totalorder %s7967_s5, 1 }
  0x24   : > { %p8013_p12 = por %p53_p9, %p52_p6  ;;  %s42_s21 = ssub.s32 %s7884_s27, %s9508_s12 }
  0x25   : > { %p8019_p0 = por %p9493_p13, %p52_p6  ;;  %p43_p3 = scmp.eq.s32.totalorder %s42_s21, 0 }
  0x26   : > { %6013 = dma.hbm_to_vmem [thread:$0]  (!%p7995_p11), %s9490_s3, 2048, %s242_s10, [#allocation7], %s7891_s14, %s7891_s14, %s7892_s15  }
  0x27   : > { %p6026_p11 = scmp.lt.s32.totalorder %s7888_s28, 2  ;;  %s261_s22 = sand.u32 1, %s7876_s25  }
  0x28   : > { %s5371_s29 = sshll.u32 %s261_s22, 3  ;;  %s5372_s10 = sshll.u32 %s7884_s27, 7 }
  0x29   : > { %s8028_s9 = scalar_select %p43_p3, %s7876_s25, %s45_s18  }
  0x2a   : > { %s270_s14 = scalar_lea.hbm %s9472_s0, %s5372_s10  ;;  %s265_s15 = scalar_lea.vmem [#allocation3], %s5371_s29 }
  0x2b   : > { %s272_s16 = sshll.u32 %s265_s15, 4  ;;  %p8036_p5 = pnand %p6026_p11, %p8013_p12  ;;  %s273_s16 = int_to_ptr.vmem [resolvable:$true] %s272_s16 }
  0x2c   : > { %s8043_s18 = scalar_lea.hbm %s9473_s1, %s5372_s10  ;;  %s279_s21 = sand.u32 1, %s7888_s28  }
  0x2d   : > { %s262_s27 = scalar_lea.sflag [#allocation4], %s261_s22  ;;  %p7746_p7 = pneg %p8036_p5 }
  0x2e   : > { %s7757_s11 = scalar_lea.vmem %s273_s16, 128  ;;  %s7893_s19 = smov [#allocation3]  }
  0x2f   : > { %p7758_p2 = scmp.ne.s32.totalorder %s273_s16, %s7757_s11  ;;  %s7762_s13 = sshll.u32 %s7893_s19, 4  ;;  %s7763_s13 = int_to_ptr.vmem [resolvable:$false] %s7762_s13 }
  0x30   : > { %s7764_s15 = scalar_lea.vmem %s7763_s13, 256  ;;  %p7765_p12 = scmp.lt.s32.totalorder %s273_s16, %s7763_s13 }
  0x31   : > { %p7760_p6 = pnand %p7758_p2, %p7746_p7  ;;  %p7766_p13 = scmp.lt.s32.totalorder %s7764_s15, %s7757_s11 }
  0x33   : > { %p7761_p9 = pneg %p7760_p6  ;;  %p7767_p11 = por %p7766_p13, %p7765_p12 }
  0x35   : > { %p7768_p3 = pnand %p7767_p11, %p7761_p9 }
  0x37   : > { %7771 = shalt.err (!%p7768_p3)
}
  0x38   : > { %6017 = dma.hbm_to_vmem [thread:$0]  (!%p8036_p5), %s270_s14, 128, %s273_s16, %s262_s27  }
  0x39   : > { %s283_s3 = scalar_lea.vmem [#allocation6], %s5371_s29  ;;  %s280_s22 = scalar_lea.sflag [#allocation7], %s279_s21 }
  0x3a   : > { %s290_s12 = sshll.u32 %s283_s3, 4  ;;  %s7894_s19 = smov [#allocation6]   ;;  %s291_s12 = int_to_ptr.vmem [resolvable:$true] %s290_s12 }
  0x3b   : > { %s7785_s10 = scalar_lea.vmem %s291_s12, 128  ;;  %s7790_s13 = sshll.u32 %s7894_s19, 4  ;;  %s7791_s13 = int_to_ptr.vmem [resolvable:$false] %s7790_s13 }
  0x3c   : > { %p7786_p2 = scmp.ne.s32.totalorder %s291_s12, %s7785_s10  ;;  %s7792_s11 = scalar_lea.vmem %s7791_s13, 256 }
  0x3d   : > { %p7793_p9 = scmp.lt.s32.totalorder %s291_s12, %s7791_s13  ;;  %p7794_p12 = scmp.lt.s32.totalorder %s7792_s11, %s7785_s10 }
  0x3e   : > { %p7788_p6 = pnand %p7786_p2, %p7746_p7 }
  0x3f   : > { %p7795_p13 = por %p7794_p12, %p7793_p9 }
  0x40   : > { %p7789_p10 = pneg %p7788_p6 }
  0x42   : > { %p7796_p11 = pnand %p7795_p13, %p7789_p10 }
  0x44   : > { %7799 = shalt.err (!%p7796_p11)
}
  0x45   : > { %6020 = dma.hbm_to_vmem [thread:$0]  (!%p8036_p5), %s8043_s18, 128, %s291_s12, %s280_s22  }
  0x46   : > { %299 = sbr.rel (%p7986_p8) target bundleno = 1065 (0x429), region = 44  ;;  %s8062_s27 = sand.u32 (!%p7986_p8), 1, %s7872_s24  }
  0x47   : > { %s8065_s29 = sshll.u32 (!%p7986_p8), %s8062_s27, 3  ;;  %s302_s14 = scalar_lea.sflag (!%p7986_p8), [#allocation4], %s8062_s27 }
  0x48   : > { %s305_s16 = scalar_lea.vmem (!%p7986_p8), [#allocation3], %s8065_s29 }
  0x4b   : > { %7851 = dma.done.wait (%p7976_p4), %s302_s14, 128  }
  0x4c   : > { %7853 = vsyncadd (%p7976_p4), %s302_s14, 4294967168  ;;  %s310_s8 = sand.u32 1, %s7967_s5   ;;  %s314_s18 = scalar_lea.vmem [#allocation6], %s8065_s29 }
  0x4d   : > { %s311_s17 = scalar_lea.sflag [#allocation7], %s310_s8 }
  0x4e   : > { %7855 = dma.done.wait (%p7976_p4), %s311_s17, 128  }
  0x4f   : > { %7857 = vsyncadd (%p7976_p4), %s311_s17, 4294967168 }
  0x50   : > { %7859 = dma.done.wait (%p59_p1), [#allocation7], 2048  }
  0x51   : > { %7861 = vsyncadd (%p59_p1), [#allocation7], 4294965248  ;;  %v7895_v0 = vmov 1966171168   ;;  %v404_v2 = vlaneseq  ;;  %v2577_v5 = vld [vmem:[%s9476_s4 + $0x70] sm:$0xff]  ;;  %v2578_v6 = vld [vmem:[%s9476_s4 + $0x78] sm:$0xff] }
  0x52   : > { %v402_v1 = vunpack.c.l.s4 %v7895_v0  ;;  %v2575_v7 = vld [vmem:[%s9476_s4 + $0x60] sm:$0xff]  ;;  %v2586_v8 = vpack.c.bf16 %v2578_v6, %v2577_v5  ;;  %v2576_v9 = vld [vmem:[%s9476_s4 + $0x68] sm:$0xff]  ;;  %v2573_v11 = vld [vmem:[%s9476_s4 + $0x50] sm:$0xff]  ;;  %s3132_s19 = sld [smem:[#allocation2]]  ;;  %vm4553_vm0 = vcmask 130112   ;;  %vm4560_vm1 = vcmask 195712  }
  0x53   : > { %v8084_v4 = vshrl.u32 %v404_v2, 7  ;;  %v2585_v10 = vpack.c.bf16 %v2576_v9, %v2575_v7  ;;  %v2574_v12 = vld [vmem:[%s9476_s4 + $0x58] sm:$0xff]  ;;  %v365_v15 = vld [vmem:[%s305_s16] sm:$0xff]  ;;  %v2569_v24 = vld [vmem:[%s9476_s4 + $0x30] sm:$0xff]  ;;  %vm4567_vm2 = vcmask 261312   ;;  %vm4574_vm3 = vcmask 326912  }
  0x54   : > { %v403_v3 = vunpack.c.0.s8 %v402_v1  ;;  %5840 = vmatprep.subr.bf16.mxu0 %v2586_v8  ;;  %5984 = vmatprep.subr.bf16.mxu1 %v2586_v8  ;;  %v2584_v14 = vpack.c.bf16 %v2574_v12, %v2573_v11  ;;  %v366_v16 = vld [vmem:[%s314_s18] sm:$0xff]  ;;  %v2571_v17 = vld [vmem:[%s9476_s4 + $0x40] sm:$0xff]  ;;  %v2572_v18 = vld [vmem:[%s9476_s4 + $0x48] sm:$0xff]  ;;  %v400_v22 = vcombine.high %v365_v15, %v365_v15  ;;  %vm4581_vm4 = vcmask 392512   ;;  %s5765_s18 = sshll.u32 %s7880_s26, 7  ;;  %s356_s3 = scalar_lea.vmem [#allocation9], %s8065_s29 }
  0x55   : > { %5841 = vmatpush3.bf16.msra.mxu0 %v2586_v8  ;;  %5992 = vmatpush3.bf16.msra.mxu1 %v2586_v8  ;;  %v8119_v20 = vsub.s32 0, %v8084_v4  ;;  %v1386_v23 = vcombine.high %v366_v16, %v366_v16  ;;  %v2570_v25 = vld [vmem:[%s9476_s4 + $0x38] sm:$0xff]  ;;  %v2583_v27 = vpack.c.bf16 %v2572_v18, %v2571_v17  ;;  %v367_v28 = vld [vmem:[%s9474_s2] sm:$0xff]  ;;  %v368_v29 = vld [vmem:[%s9474_s2 + $0x8] sm:$0xff]  ;;  %vm4588_vm5 = vcmask 458112   ;;  %s5237_s30 = sshll.u32 %s356_s3, 4  ;;  %s9430_s5 = scalar_lea.hbm %s9478_s6, %s5765_s18  ;;  %s5238_s30 = int_to_ptr.vmem [resolvable:$true] %s5237_s30 }
  0x56   : > { %v8105_v13 = vsub.s32 %v403_v3, %v8084_v4  ;;  %5842 = vmatprep.subr.bf16.mxu0 %v2585_v10  ;;  %5985 = vmatprep.subr.bf16.mxu1 %v2585_v10  ;;  %v369_v31 = vld [vmem:[%s9474_s2 + $0x10] sm:$0xff]  ;;  %v383_v33 = vld [vmem:[#allocation8] sm:$0xff]  ;;  %v384_v34 = vld [vmem:[#allocation8 + $0x8] sm:$0xff]  ;;  %v2582_v37 = vpack.c.bf16 %v2570_v25, %v2569_v24  ;;  %vm4595_vm6 = vcmask 523712   ;;  %vm4602_vm7 = vcmask 589312   ;;  %s5223_s26 = scalar_lea.sflag [#allocation5], %s8062_s27 }
  0x57   : > { %v370_v36 = vld [vmem:[%s9474_s2 + $0x18] sm:$0xff]  ;;  %v385_v39 = vld [vmem:[#allocation8 + $0x10] sm:$0xff]  ;;  %v2567_v49 = vld [vmem:[%s9476_s4 + $0x20] sm:$0xff]  ;;  %vm4609_vm8 = vcmask 654912   ;;  %vm4616_vm9 = vcmask 720512   ;;  %vm9481_vm10 = vcmask 786112  }
  0x58   : > { %v8116_v19 = vrot.slane %v365_v15, %v8105_v13  ;;  %v8122_v21 = vrot.slane %v366_v16, %v8105_v13  ;;  %v8148_v32 = vrot.slane %v400_v22, %v8105_v13  ;;  %v8166_v41 = vrot.slane %v1386_v23, %v8105_v13  ;;  %v386_v44 = vld [vmem:[#allocation8 + $0x18] sm:$0xff]  ;;  %v2568_v50 = vld [vmem:[%s9476_s4 + $0x28] sm:$0xff]  ;;  %v2565_v57 = vld [vmem:[%s9476_s4 + $0x10] sm:$0xff]  ;;  %s7800_s29 = scalar_lea.vmem %s5238_s30, 128  ;;  %s7897_s10 = smov [#allocation9]  }
  0x59   : > { %5843 = vmatpush3.bf16.msra.mxu0 %v2585_v10  ;;  %5993 = vmatpush3.bf16.msra.mxu1 %v2585_v10  ;;  %v2566_v58 = vld [vmem:[%s9476_s4 + $0x18] sm:$0xff]  ;;  %v2581_v61 = vpack.c.bf16 %v2568_v50, %v2567_v49  ;;  %v2563_v15 = vld [vmem:[%s9476_s4] sm:$0xff]  ;;  %v2564_v16 = vld [vmem:[%s9476_s4 + $0x8] sm:$0xff]  ;;  %vm9482_vm11 = vcmask 851712   ;;  %vm9483_vm12 = vcmask 917312   ;;  %vm4644_vm13 = vcmask 982912   ;;  %p7801_p1 = scmp.ne.s32.totalorder %s5238_s30, %s7800_s29 }
  0x5a   : > { %v8132_v26 = vrot.slane %v8116_v19, %v8105_v13  ;;  %5844 = vmatprep.subr.bf16.mxu0 %v2584_v14  ;;  %5986 = vmatprep.subr.bf16.mxu1 %v2584_v14  ;;  %v8142_v30 = vrot.slane %v8122_v21, %v8105_v13  ;;  %v8163_v40 = vrot.slane %v8148_v32, %v8105_v13  ;;  %vm4651_vm14 = vcmask 1048512  }
  0x5b   : > { %v8194_v63 = vrot.slane %v8166_v41, %v8105_v13  ;;  %v2580_v5 = vpack.c.bf16 %v2566_v58, %v2565_v57  ;;  %v2579_v25 = vpack.c.bf16 %v2564_v16, %v2563_v15  ;;  %vm5206_vm15 = vcmask 1041409   ;;  %p7802_p4 = pnand %p7801_p1, %p8019_p0 }
  0x5c   : > { %v8152_v35 = vrot.slane %v8132_v26, %v8119_v20  ;;  %v8159_v38 = vrot.slane %v8142_v30, %v8119_v20  ;;  %v8190_v60 = vrot.slane %v8163_v40, %v8119_v20 }
  0x5d   : > { %5845 = vmatpush3.bf16.msra.mxu0 %v2584_v14  ;;  %5994 = vmatpush3.bf16.msra.mxu1 %v2584_v14  ;;  %v8200_v7 = vrot.slane %v8194_v63, %v8119_v20  ;;  %p7803_p8 = pneg %p7802_p4 }
  0x5e   : > { %v489_v42 = vadd.f32 %v8152_v35, %v367_v28  ;;  %v490_v43 = vadd.f32 %v8152_v35, %v368_v29  ;;  %v491_v45 = vadd.f32 %v8152_v35, %v369_v31  ;;  %5846 = vmatprep.subr.bf16.mxu0 %v2583_v27  ;;  %5987 = vmatprep.subr.bf16.mxu1 %v2583_v27 }
  0x5f   : > { %v1475_v46 = vadd.f32 %v8159_v38, %v383_v33  ;;  %v1476_v47 = vadd.f32 %v8159_v38, %v384_v34  ;;  %v492_v48 = vadd.f32 %v8152_v35, %v370_v36  ;;  %v1477_v53 = vadd.f32 %v8159_v38, %v385_v39 }
  0x60   : > { %v5380_v51 = vmul.f32 -1.442695, %v489_v42  ;;  %v5381_v52 = vmul.f32 -1.442695, %v490_v43  ;;  %v1478_v56 = vadd.f32 %v8159_v38, %v386_v44  ;;  %v5382_v59 = vmul.f32 -1.442695, %v491_v45 }
  0x61   : > { %v5508_v54 = vmul.f32 -1.442695, %v1475_v46  ;;  %v5509_v55 = vmul.f32 -1.442695, %v1476_v47  ;;  %5847 = vmatpush3.bf16.msra.mxu0 %v2583_v27  ;;  %5995 = vmatpush3.bf16.msra.mxu1 %v2583_v27  ;;  %v5383_v62 = vmul.f32 -1.442695, %v492_v48  ;;  %v553_v1 = vadd.f32 %v8190_v60, %v367_v28 }
  0x62   : > { %6086 = vpow2.f32 %v5380_v51  ;;  %5848 = vmatprep.subr.bf16.mxu0 %v2582_v37  ;;  %5988 = vmatprep.subr.bf16.mxu1 %v2582_v37  ;;  %v5510_v0 = vmul.f32 -1.442695, %v1477_v53  ;;  %v554_v3 = vadd.f32 %v8190_v60, %v368_v29  ;;  %v5511_v6 = vmul.f32 -1.442695, %v1478_v56  ;;  %v371_v53 = vld [vmem:[%s9474_s2 + $0x20] sm:$0xff]  ;;  %v372_v56 = vld [vmem:[%s9474_s2 + $0x28] sm:$0xff] }
  0x63   : > { %6088 = vpow2.f32 %v5381_v52  ;;  %v5444_v8 = vmul.f32 -1.442695, %v553_v1  ;;  %v555_v9 = vadd.f32 %v8190_v60, %v369_v31  ;;  %v556_v10 = vadd.f32 %v8190_v60, %v370_v36 }
  0x64   : > { %6090 = vpow2.f32 %v5508_v54  ;;  %v5445_v11 = vmul.f32 -1.442695, %v554_v3  ;;  %v1539_v12 = vadd.f32 %v8200_v7, %v383_v33  ;;  %v1540_v14 = vadd.f32 %v8200_v7, %v384_v34 }
  0x65   : > { %6092 = vpow2.f32 %v5509_v55  ;;  %5849 = vmatpush3.bf16.msra.mxu0 %v2582_v37  ;;  %5996 = vmatpush3.bf16.msra.mxu1 %v2582_v37  ;;  %v1541_v17 = vadd.f32 %v8200_v7, %v385_v39  ;;  %v1542_v23 = vadd.f32 %v8200_v7, %v386_v44  ;;  %v5446_v24 = vmul.f32 -1.442695, %v555_v9 }
  0x66   : > { %6094 = vpow2.f32 %v5382_v59  ;;  %5850 = vmatprep.subr.bf16.mxu0 %v2581_v61  ;;  %5989 = vmatprep.subr.bf16.mxu1 %v2581_v61  ;;  %v5572_v18 = vmul.f32 -1.442695, %v1539_v12  ;;  %v5573_v22 = vmul.f32 -1.442695, %v1540_v14  ;;  %v5447_v27 = vmul.f32 -1.442695, %v556_v10 }
  0x67   : > { %6096 = vpow2.f32 %v5383_v62  ;;  %v5574_v28 = vmul.f32 -1.442695, %v1541_v17  ;;  %v5575_v29 = vmul.f32 -1.442695, %v1542_v23  ;;  %v387_v59 = vld [vmem:[#allocation8 + $0x20] sm:$0xff]  ;;  %v493_v1 = vadd.f32 %v8152_v35, %v371_v53  ;;  %v374_v12 = vld [vmem:[%s9474_s2 + $0x38] sm:$0xff] }
  0x68   : > { %6098 = vpow2.f32 %v5510_v0  ;;  %v388_v0 = vld [vmem:[#allocation8 + $0x28] sm:$0xff]  ;;  %v389_v17 = vld [vmem:[#allocation8 + $0x30] sm:$0xff] }
  0x69   : > { %6100 = vpow2.f32 %v5511_v6  ;;  %5851 = vmatpush3.bf16.msra.mxu0 %v2581_v61  ;;  %5997 = vmatpush3.bf16.msra.mxu1 %v2581_v61  ;;  %v494_v6 = vadd.f32 %v8152_v35, %v372_v56  ;;  %v1480_v16 = vadd.f32 %v8159_v38, %v388_v0  ;;  %v5384_v23 = vmul.f32 -1.442695, %v493_v1 }
  0x6a   : > { %6102 = vpow2.f32 %v5444_v8  ;;  %5852 = vmatprep.subr.bf16.mxu0 %v2580_v5  ;;  %5990 = vmatprep.subr.bf16.mxu1 %v2580_v5  ;;  %v373_v8 = vld [vmem:[%s9474_s2 + $0x30] sm:$0xff] }
  0x6b   : > { %6104 = vpow2.f32 %v5445_v11  ;;  %v1479_v11 = vadd.f32 %v8159_v38, %v387_v59 }
  0x6c   : > { %6106 = vpow2.f32 %v5572_v18 }
  0x6d   : > { %6108 = vpow2.f32 %v5573_v22  ;;  %5853 = vmatpush3.bf16.msra.mxu0 %v2580_v5  ;;  %5998 = vmatpush3.bf16.msra.mxu1 %v2580_v5 }
  0x6e   : > { %6110 = vpow2.f32 %v5446_v24  ;;  %5854 = vmatprep.subr.bf16.mxu0 %v2579_v25  ;;  %5991 = vmatprep.subr.bf16.mxu1 %v2579_v25  ;;  %v390_v24 = vld [vmem:[#allocation8 + $0x38] sm:$0xff] }
  0x6f   : > { %v6087_v31 = vpop.eup %6086  ;;  %6112 = vpow2.f32 %v5447_v27 }
  0x70   : > { %v6089_v33 = vpop.eup %6088  ;;  %v1001_v34 = vadd.f32 1.0, %v6087_v31  ;;  %6114 = vpow2.f32 %v5574_v28  ;;  %v496_v31 = vadd.f32 %v8152_v35, %v374_v12 }
  0x71   : > { %v6091_v36 = vpop.eup %6090  ;;  %v1002_v37 = vadd.f32 1.0, %v6089_v33  ;;  %6116 = vpow2.f32 %v5575_v29  ;;  %5855 = vmatpush3.bf16.msra.mxu0 %v2579_v25  ;;  %5999 = vmatpush3.bf16.msra.mxu1 %v2579_v25  ;;  %v495_v25 = vadd.f32 %v8152_v35, %v373_v8  ;;  %v5385_v29 = vmul.f32 -1.442695, %v494_v6 }
  0x72   : > { %v6093_v39 = vpop.eup %6092  ;;  %6118 = vrcp.f32 %v1001_v34  ;;  %v1987_v42 = vadd.f32 1.0, %v6091_v36  ;;  %v5512_v34 = vmul.f32 -1.442695, %v1479_v11  ;;  %v1481_v36 = vadd.f32 %v8159_v38, %v389_v17 }
  0x73   : > { %v6095_v43 = vpop.eup %6094  ;;  %6120 = vrcp.f32 %v1002_v37  ;;  %v1988_v44 = vadd.f32 1.0, %v6093_v39  ;;  %v5513_v39 = vmul.f32 -1.442695, %v1480_v16  ;;  %v1545_v11 = vadd.f32 %v8200_v7, %v389_v17 }
  0x74   : > { %v6097_v45 = vpop.eup %6096  ;;  %6122 = vrcp.f32 %v1987_v42  ;;  %v1003_v46 = vadd.f32 1.0, %v6095_v43  ;;  %v1482_v42 = vadd.f32 %v8159_v38, %v390_v24  ;;  %v1546_v16 = vadd.f32 %v8200_v7, %v390_v24 }
  0x75   : > { %v6099_v47 = vpop.eup %6098  ;;  %6124 = vrcp.f32 %v1988_v44  ;;  %v1004_v48 = vadd.f32 1.0, %v6097_v45  ;;  %v5386_v45 = vmul.f32 -1.442695, %v495_v25 }
  0x76   : > { %v6101_v49 = vpop.eup %6100  ;;  %6126 = vrcp.f32 %v1003_v46  ;;  %v1989_v50 = vadd.f32 1.0, %v6099_v47  ;;  %v557_v46 = vadd.f32 %v8190_v60, %v371_v53 }
  0x77   : > { %v6103_v51 = vpop.eup %6102  ;;  %6128 = vrcp.f32 %v1004_v48  ;;  %v1990_v52 = vadd.f32 1.0, %v6101_v49  ;;  %v5387_v49 = vmul.f32 -1.442695, %v496_v31  ;;  %v5579_v31 = vmul.f32 -1.442695, %v1546_v16 }
  0x78   : > { %v6105_v54 = vpop.eup %6104  ;;  %6130 = vrcp.f32 %v1989_v50  ;;  %v1065_v55 = vadd.f32 1.0, %v6103_v51  ;;  %v558_v50 = vadd.f32 %v8190_v60, %v372_v56  ;;  %v5448_v53 = vmul.f32 -1.442695, %v557_v46 }
  0x79   : > { %v6107_v57 = vpop.eup %6106  ;;  %6132 = vrcp.f32 %v1990_v52  ;;  %v1066_v58 = vadd.f32 1.0, %v6105_v54  ;;  %v5514_v52 = vmul.f32 -1.442695, %v1481_v36  ;;  %v1543_v54 = vadd.f32 %v8200_v7, %v387_v59 }
  0x7a   : > { %v6109_v61 = vpop.eup %6108  ;;  %6134 = vrcp.f32 %v1065_v55  ;;  %v2051_v62 = vadd.f32 1.0, %v6107_v57  ;;  %v5449_v6 = vmul.f32 -1.442695, %v558_v50 }
  0x7b   : > { %v6111_v3 = vpop.eup %6110  ;;  %6136 = vrcp.f32 %v1066_v58  ;;  %v2052_v5 = vadd.f32 1.0, %v6109_v61  ;;  %v5515_v58 = vmul.f32 -1.442695, %v1482_v42  ;;  %v1544_v61 = vadd.f32 %v8200_v7, %v388_v0 }
  0x7c   : > { %v6113_v9 = vpop.eup %6112  ;;  %6138 = vrcp.f32 %v2051_v62  ;;  %v1067_v10 = vadd.f32 1.0, %v6111_v3  ;;  %v559_v3 = vadd.f32 %v8190_v60, %v373_v8 }
  0x7d   : > { %v6115_v14 = vpop.eup %6114  ;;  %6140 = vrcp.f32 %v2052_v5  ;;  %v1068_v15 = vadd.f32 1.0, %v6113_v9  ;;  %v560_v9 = vadd.f32 %v8190_v60, %v374_v12 }
  0x7e   : > { %v6117_v18 = vpop.eup %6116  ;;  %6142 = vrcp.f32 %v1067_v10  ;;  %v2053_v22 = vadd.f32 1.0, %v6115_v14  ;;  %v5576_v10 = vmul.f32 -1.442695, %v1543_v54 }
  0x7f   : > { %v6119_v27 = vpop.eup %6118  ;;  %6144 = vrcp.f32 %v1068_v15  ;;  %v2054_v28 = vadd.f32 1.0, %v6117_v18  ;;  %v5577_v15 = vmul.f32 -1.442695, %v1544_v61  ;;  %v5451_v12 = vmul.f32 -1.442695, %v560_v9  ;;  %v375_v61 = vld [vmem:[%s9474_s2 + $0x40] sm:$0xff] }
  0x80   : > { %v6121_v33 = vpop.eup %6120  ;;  %6146 = vrcp.f32 %v2053_v22  ;;  %v5450_v22 = vmul.f32 -1.442695, %v559_v3 }
  0x81   : > { %v6123_v37 = vpop.eup %6122  ;;  %6148 = vrcp.f32 %v2054_v28  ;;  %v5578_v28 = vmul.f32 -1.442695, %v1545_v11 }
  0x82   : > { %v6125_v43 = vpop.eup %6124  ;;  %v2371_v44 = vsub.f32 %v6119_v27, %v6123_v37  ;;  %6150 = vpow2.f32 %v5384_v23 }
  0x83   : > { %v6127_v47 = vpop.eup %6126  ;;  %v2372_v48 = vsub.f32 %v6121_v33, %v6125_v43  ;;  %6152 = vpow2.f32 %v5385_v29 }
  0x84   : > { %v6129_v51 = vpop.eup %6128  ;;  %6154 = vpow2.f32 %v5512_v34 }
  0x85   : > { %v6131_v55 = vpop.eup %6130  ;;  %v2499_v57 = vpack.c.bf16 %v2372_v48, %v2371_v44  ;;  %6156 = vpow2.f32 %v5513_v39 }
  0x86   : > { %v6133_v62 = vpop.eup %6132  ;;  %v2373_v1 = vsub.f32 %v6127_v47, %v6131_v55  ;;  %6158 = vpow2.f32 %v5386_v45 }
  0x87   : > { %v6135_v5 = vpop.eup %6134  ;;  %5856 = vmatprep.mubr.bf16.mxu0 %v2499_v57  ;;  %v2374_v56 = vsub.f32 %v6129_v51, %v6133_v62  ;;  %6160 = vpow2.f32 %v5387_v49 }
  0x88   : > { %v6137_v59 = vpop.eup %6136  ;;  %6162 = vpow2.f32 %v5514_v52 }
  0x89   : > { %v6139_v14 = vpop.eup %6138  ;;  %v2500_v0 = vpack.c.bf16 %v2374_v56, %v2373_v1  ;;  %6164 = vpow2.f32 %v5515_v58  ;;  %v391_v56 = vld [vmem:[#allocation8 + $0x40] sm:$0xff] }
  0x8a   : > { %v6141_v18 = vpop.eup %6140  ;;  %v2435_v8 = vsub.f32 %v6135_v5, %v6139_v14  ;;  %6166 = vpow2.f32 %v5448_v53  ;;  %v376_v53 = vld [vmem:[%s9474_s2 + $0x48] sm:$0xff] }
  0x8b   : > { %v6143_v23 = vpop.eup %6142  ;;  %5857 = vmatmul.mubr.bf16.vlgmr.msra.gmra.mxu0 %v2500_v0  ;;  %v2436_v25 = vsub.f32 %v6137_v59, %v6141_v18  ;;  %6168 = vpow2.f32 %v5449_v6  ;;  %v392_v59 = vld [vmem:[#allocation8 + $0x48] sm:$0xff]  ;;  %v498_v0 = vadd.f32 %v8152_v35, %v376_v53 }
  0x8c   : > { %v6145_v27 = vpop.eup %6144  ;;  %6170 = vpow2.f32 %v5576_v10  ;;  %v497_v10 = vadd.f32 %v8152_v35, %v375_v61 }
  0x8d   : > { %v6147_v29 = vpop.eup %6146  ;;  %v2531_v17 = vpack.c.bf16 %v2436_v25, %v2435_v8  ;;  %6172 = vpow2.f32 %v5577_v15  ;;  %v377_v15 = vld [vmem:[%s9474_s2 + $0x50] sm:$0xff]  ;;  %v1483_v8 = vadd.f32 %v8159_v38, %v391_v56 }
  0x8e   : > { %v6149_v33 = vpop.eup %6148  ;;  %v2437_v34 = vsub.f32 %v6143_v23, %v6147_v29  ;;  %6174 = vpow2.f32 %v5450_v22  ;;  %v378_v22 = vld [vmem:[%s9474_s2 + $0x58] sm:$0xff] }
  0x8f   : > { %v6151_v24 = vpop.eup %6150  ;;  %5920 = vmatprep.mubr.bf16.mxu1 %v2531_v17  ;;  %v2438_v36 = vsub.f32 %v6145_v27, %v6149_v33  ;;  %6176 = vpow2.f32 %v5451_v12  ;;  %v1484_v12 = vadd.f32 %v8159_v38, %v392_v59  ;;  %v393_v27 = vld [vmem:[#allocation8 + $0x50] sm:$0xff]  ;;  %v5388_v17 = vmul.f32 -1.442695, %v497_v10 }
  0x90   : > { %v6153_v37 = vpop.eup %6152  ;;  %v1005_v39 = vadd.f32 1.0, %v6151_v24  ;;  %6178 = vpow2.f32 %v5578_v28  ;;  %v499_v33 = vadd.f32 %v8152_v35, %v377_v15 }
  0x91   : > { %v6155_v42 = vpop.eup %6154  ;;  %v2532_v43 = vpack.c.bf16 %v2438_v36, %v2437_v34  ;;  %v1006_v44 = vadd.f32 1.0, %v6153_v37  ;;  %6180 = vpow2.f32 %v5579_v31  ;;  %v394_v31 = vld [vmem:[#allocation8 + $0x58] sm:$0xff]  ;;  %v5389_v36 = vmul.f32 -1.442695, %v498_v0 }
  0x92   : > { %v6157_v45 = vpop.eup %6156  ;;  %6182 = vrcp.f32 %v1005_v39  ;;  %v1991_v46 = vadd.f32 1.0, %v6155_v42  ;;  %v500_v37 = vadd.f32 %v8152_v35, %v378_v22  ;;  %v5516_v42 = vmul.f32 -1.442695, %v1483_v8 }
  0x93   : > { %v6159_v47 = vpop.eup %6158  ;;  %5921 = vmatmul.mubr.bf16.vlgmr.msra.gmra.mxu1 %v2532_v43  ;;  %6184 = vrcp.f32 %v1006_v44  ;;  %v1992_v48 = vadd.f32 1.0, %v6157_v45  ;;  %v1485_v43 = vadd.f32 %v8159_v38, %v393_v27  ;;  %v5517_v45 = vmul.f32 -1.442695, %v1484_v12 }
  0x94   : > { %v6161_v49 = vpop.eup %6160  ;;  %6186 = vrcp.f32 %v1991_v46  ;;  %v1007_v50 = vadd.f32 1.0, %v6159_v47  ;;  %v1486_v46 = vadd.f32 %v8159_v38, %v394_v31  ;;  %v1549_v8 = vadd.f32 %v8200_v7, %v393_v27 }
  0x95   : > { %v6163_v51 = vpop.eup %6162  ;;  %6188 = vrcp.f32 %v1992_v48  ;;  %v1008_v52 = vadd.f32 1.0, %v6161_v49  ;;  %v5390_v49 = vmul.f32 -1.442695, %v499_v33  ;;  %v1550_v12 = vadd.f32 %v8200_v7, %v394_v31 }
  0x96   : > { %v6165_v54 = vpop.eup %6164  ;;  %6190 = vrcp.f32 %v1007_v50  ;;  %v1993_v55 = vadd.f32 1.0, %v6163_v51  ;;  %v561_v50 = vadd.f32 %v8190_v60, %v375_v61 }
  0x97   : > { %v6167_v57 = vpop.eup %6166  ;;  %6192 = vrcp.f32 %v1008_v52  ;;  %v1994_v58 = vadd.f32 1.0, %v6165_v54  ;;  %v5391_v54 = vmul.f32 -1.442695, %v500_v37  ;;  %v5583_v37 = vmul.f32 -1.442695, %v1550_v12 }
  0x98   : > { %v6169_v62 = vpop.eup %6168  ;;  %6194 = vrcp.f32 %v1993_v55  ;;  %v1069_v1 = vadd.f32 1.0, %v6167_v57  ;;  %v562_v55 = vadd.f32 %v8190_v60, %v376_v53  ;;  %v5452_v61 = vmul.f32 -1.442695, %v561_v50 }
  0x99   : > { %v6171_v3 = vpop.eup %6170  ;;  %6196 = vrcp.f32 %v1994_v58  ;;  %v1070_v5 = vadd.f32 1.0, %v6169_v62  ;;  %v5518_v58 = vmul.f32 -1.442695, %v1485_v43  ;;  %v1547_v62 = vadd.f32 %v8200_v7, %v391_v56 }
  0x9a   : > { %v6173_v6 = vpop.eup %6172  ;;  %6198 = vrcp.f32 %v1069_v1  ;;  %v2055_v9 = vadd.f32 1.0, %v6171_v3  ;;  %v5453_v0 = vmul.f32 -1.442695, %v562_v55 }
  0x9b   : > { %v6175_v11 = vpop.eup %6174  ;;  %6200 = vrcp.f32 %v1070_v5  ;;  %v2056_v14 = vadd.f32 1.0, %v6173_v6  ;;  %v5519_v5 = vmul.f32 -1.442695, %v1486_v46  ;;  %v1548_v6 = vadd.f32 %v8200_v7, %v392_v59 }
  0x9c   : > { %v6177_v16 = vpop.eup %6176  ;;  %6202 = vrcp.f32 %v2055_v9  ;;  %v1071_v18 = vadd.f32 1.0, %v6175_v11  ;;  %v563_v11 = vadd.f32 %v8190_v60, %v377_v15 }
  0x9d   : > { %v6179_v23 = vpop.eup %6178  ;;  %6204 = vrcp.f32 %v2056_v14  ;;  %v1072_v25 = vadd.f32 1.0, %v6177_v16  ;;  %v564_v16 = vadd.f32 %v8190_v60, %v378_v22 }
  0x9e   : > { %v6181_v28 = vpop.eup %6180  ;;  %6206 = vrcp.f32 %v1071_v18  ;;  %v2057_v29 = vadd.f32 1.0, %v6179_v23  ;;  %v5580_v18 = vmul.f32 -1.442695, %v1547_v62 }
  0x9f   : > { %v6183_v34 = vpop.eup %6182  ;;  %6208 = vrcp.f32 %v1072_v25  ;;  %v2058_v24 = vadd.f32 1.0, %v6181_v28  ;;  %v5581_v25 = vmul.f32 -1.442695, %v1548_v6  ;;  %v5455_v22 = vmul.f32 -1.442695, %v564_v16  ;;  %v379_v6 = vld [vmem:[%s9474_s2 + $0x60] sm:$0xff] }
  0xa0   : > { %v6185_v39 = vpop.eup %6184  ;;  %6210 = vrcp.f32 %v2057_v29  ;;  %v5454_v29 = vmul.f32 -1.442695, %v563_v11 }
  0xa1   : > { %v6187_v44 = vpop.eup %6186  ;;  %6212 = vrcp.f32 %v2058_v24  ;;  %v5582_v24 = vmul.f32 -1.442695, %v1549_v8 }
  0xa2   : > { %v6189_v47 = vpop.eup %6188  ;;  %v2375_v48 = vsub.f32 %v6183_v34, %v6187_v44  ;;  %6214 = vpow2.f32 %v5388_v17 }
  0xa3   : > { %v6191_v51 = vpop.eup %6190  ;;  %v2376_v52 = vsub.f32 %v6185_v39, %v6189_v47  ;;  %6216 = vpow2.f32 %v5389_v36 }
  0xa4   : > { %v6193_v57 = vpop.eup %6192  ;;  %6218 = vpow2.f32 %v5516_v42 }
  0xa5   : > { %v6195_v1 = vpop.eup %6194  ;;  %v2501_v3 = vpack.c.bf16 %v2376_v52, %v2375_v48  ;;  %6220 = vpow2.f32 %v5517_v45 }
  0xa6   : > { %v6197_v9 = vpop.eup %6196  ;;  %v2377_v10 = vsub.f32 %v6191_v51, %v6195_v1  ;;  %6222 = vpow2.f32 %v5390_v49 }
  0xa7   : > { %v6199_v14 = vpop.eup %6198  ;;  %5860 = vmatprep.mubr.bf16.mxu0 %v2501_v3  ;;  %v2378_v53 = vsub.f32 %v6193_v57, %v6197_v9  ;;  %6224 = vpow2.f32 %v5391_v54 }
  0xa8   : > { %v6201_v56 = vpop.eup %6200  ;;  %6226 = vpow2.f32 %v5518_v58 }
  0xa9   : > { %v6203_v23 = vpop.eup %6202  ;;  %v2502_v59 = vpack.c.bf16 %v2378_v53, %v2377_v10  ;;  %6228 = vpow2.f32 %v5519_v5  ;;  %v395_v53 = vld [vmem:[#allocation8 + $0x60] sm:$0xff] }
  0xaa   : > { %v6205_v28 = vpop.eup %6204  ;;  %v2439_v15 = vsub.f32 %v6199_v14, %v6203_v23  ;;  %6230 = vpow2.f32 %v5452_v61  ;;  %v380_v61 = vld [vmem:[%s9474_s2 + $0x68] sm:$0xff] }
  0xab   : > { %v6207_v17 = vpop.eup %6206  ;;  %5861 = vmatmul.mubr.bf16.gmra.mxu0 %v2502_v59  ;;  %v2440_v33 = vsub.f32 %v6201_v56, %v6205_v28  ;;  %6232 = vpow2.f32 %v5453_v0  ;;  %v396_v56 = vld [vmem:[#allocation8 + $0x68] sm:$0xff]  ;;  %v502_v59 = vadd.f32 %v8152_v35, %v380_v61 }
  0xac   : > { %v6209_v34 = vpop.eup %6208  ;;  %6234 = vpow2.f32 %v5580_v18  ;;  %v501_v18 = vadd.f32 %v8152_v35, %v379_v6 }
  0xad   : > { %v6211_v36 = vpop.eup %6210  ;;  %v2533_v27 = vpack.c.bf16 %v2440_v33, %v2439_v15  ;;  %6236 = vpow2.f32 %v5581_v25  ;;  %v381_v25 = vld [vmem:[%s9474_s2 + $0x70] sm:$0xff]  ;;  %v1487_v15 = vadd.f32 %v8159_v38, %v395_v53 }
  0xae   : > { %v6213_v39 = vpop.eup %6212  ;;  %v2441_v42 = vsub.f32 %v6207_v17, %v6211_v36  ;;  %6238 = vpow2.f32 %v5454_v29  ;;  %v382_v29 = vld [vmem:[%s9474_s2 + $0x78] sm:$0xff] }
  0xaf   : > { %v6215_v31 = vpop.eup %6214  ;;  %5924 = vmatprep.mubr.bf16.mxu1 %v2533_v27  ;;  %v2442_v43 = vsub.f32 %v6209_v34, %v6213_v39  ;;  %6240 = vpow2.f32 %v5455_v22  ;;  %v1488_v22 = vadd.f32 %v8159_v38, %v396_v56  ;;  %v397_v34 = vld [vmem:[#allocation8 + $0x70] sm:$0xff]  ;;  %v5392_v27 = vmul.f32 -1.442695, %v501_v18 }
  0xb0   : > { %v6217_v44 = vpop.eup %6216  ;;  %v1009_v45 = vadd.f32 1.0, %v6215_v31  ;;  %6242 = vpow2.f32 %v5582_v24  ;;  %v503_v39 = vadd.f32 %v8152_v35, %v381_v25 }
  0xb1   : > { %v6219_v46 = vpop.eup %6218  ;;  %v2534_v47 = vpack.c.bf16 %v2442_v43, %v2441_v42  ;;  %v1010_v48 = vadd.f32 1.0, %v6217_v44  ;;  %6244 = vpow2.f32 %v5583_v37  ;;  %v398_v37 = vld [vmem:[#allocation8 + $0x78] sm:$0xff]  ;;  %v5393_v43 = vmul.f32 -1.442695, %v502_v59 }
  0xb2   : > { %v6221_v49 = vpop.eup %6220  ;;  %6246 = vrcp.f32 %v1009_v45  ;;  %v1995_v50 = vadd.f32 1.0, %v6219_v46  ;;  %v504_v44 = vadd.f32 %v8152_v35, %v382_v29  ;;  %v5520_v46 = vmul.f32 -1.442695, %v1487_v15 }
  0xb3   : > { %v6223_v51 = vpop.eup %6222  ;;  %5925 = vmatmul.mubr.bf16.gmra.mxu1 %v2534_v47  ;;  %6248 = vrcp.f32 %v1010_v48  ;;  %v1996_v52 = vadd.f32 1.0, %v6221_v49  ;;  %v1489_v47 = vadd.f32 %v8159_v38, %v397_v34  ;;  %v5521_v49 = vmul.f32 -1.442695, %v1488_v22 }
  0xb4   : > { %v6225_v54 = vpop.eup %6224  ;;  %6250 = vrcp.f32 %v1995_v50  ;;  %v1011_v55 = vadd.f32 1.0, %v6223_v51  ;;  %v1490_v50 = vadd.f32 %v8159_v38, %v398_v37  ;;  %v5395_v35 = vmul.f32 -1.442695, %v504_v44 }
  0xb5   : > { %v6227_v57 = vpop.eup %6226  ;;  %6252 = vrcp.f32 %v1996_v52  ;;  %v1012_v58 = vadd.f32 1.0, %v6225_v54  ;;  %v5394_v54 = vmul.f32 -1.442695, %v503_v39 }
  0xb6   : > { %v6229_v62 = vpop.eup %6228  ;;  %6254 = vrcp.f32 %v1011_v55  ;;  %v1997_v1 = vadd.f32 1.0, %v6227_v57  ;;  %v565_v55 = vadd.f32 %v8190_v60, %v379_v6  ;;  %v5523_v38 = vmul.f32 -1.442695, %v1490_v50 }
  0xb7   : > { %v6231_v3 = vpop.eup %6230  ;;  %6256 = vrcp.f32 %v1012_v58  ;;  %v1998_v5 = vadd.f32 1.0, %v6229_v62  ;;  %v566_v62 = vadd.f32 %v8190_v60, %v380_v61 }
  0xb8   : > { %v6233_v9 = vpop.eup %6232  ;;  %6258 = vrcp.f32 %v1997_v1  ;;  %v1073_v10 = vadd.f32 1.0, %v6231_v3  ;;  %v5522_v3 = vmul.f32 -1.442695, %v1489_v47  ;;  %v5456_v6 = vmul.f32 -1.442695, %v565_v55 }
  0xb9   : > { %v6235_v11 = vpop.eup %6234  ;;  %6260 = vrcp.f32 %v1998_v5  ;;  %v1074_v14 = vadd.f32 1.0, %v6233_v9  ;;  %v1551_v5 = vadd.f32 %v8200_v7, %v395_v53 }
  0xba   : > { %v6237_v0 = vpop.eup %6236  ;;  %6262 = vrcp.f32 %v1073_v10  ;;  %v2059_v16 = vadd.f32 1.0, %v6235_v11  ;;  %v1552_v11 = vadd.f32 %v8200_v7, %v396_v56 }
  0xbb   : > { %v6239_v8 = vpop.eup %6238  ;;  %6264 = vrcp.f32 %v1074_v14  ;;  %v2060_v23 = vadd.f32 1.0, %v6237_v0  ;;  %v5584_v59 = vmul.f32 -1.442695, %v1551_v5  ;;  %v416_v5 = vcombine.high %v8148_v32, %v8148_v32  ;;  %v7622_v32 = vld [vmem:[%s9474_s2] sm:$0xff] }
  0xbc   : > { %v6241_v12 = vpop.eup %6240  ;;  %6266 = vrcp.f32 %v2059_v16  ;;  %v1075_v28 = vadd.f32 1.0, %v6239_v8  ;;  %v567_v16 = vadd.f32 %v8190_v60, %v381_v25  ;;  %v5457_v8 = vmul.f32 -1.442695, %v566_v62 }
  0xbd   : > { %v6243_v17 = vpop.eup %6242  ;;  %6268 = vrcp.f32 %v2060_v23  ;;  %v1076_v33 = vadd.f32 1.0, %v6241_v12  ;;  %v568_v23 = vadd.f32 %v8190_v60, %v382_v29  ;;  %v1553_v12 = vadd.f32 %v8200_v7, %v397_v34 }
  0xbe   : > { %v6245_v24 = vpop.eup %6244  ;;  %6270 = vrcp.f32 %v1075_v28  ;;  %v2061_v36 = vadd.f32 1.0, %v6243_v17  ;;  %v5585_v15 = vmul.f32 -1.442695, %v1552_v11  ;;  %v1554_v17 = vadd.f32 %v8200_v7, %v398_v37 }
  0xbf   : > { %v6247_v42 = vpop.eup %6246  ;;  %6272 = vrcp.f32 %v1076_v33  ;;  %v2062_v31 = vadd.f32 1.0, %v6245_v24  ;;  %v5458_v22 = vmul.f32 -1.442695, %v567_v16  ;;  %v5459_v60 = vmul.f32 -1.442695, %v568_v23 }
  0xc0   : > { %v6249_v45 = vpop.eup %6248  ;;  %6274 = vrcp.f32 %v2061_v36  ;;  %v415_v34 = vcombine.high %v8116_v19, %v8116_v19 }
  0xc1   : > { %v6251_v48 = vpop.eup %6250  ;;  %6276 = vrcp.f32 %v2062_v31  ;;  %v5587_v31 = vmul.f32 -1.442695, %v1554_v17  ;;  %v7624_v17 = vld [vmem:[#allocation8] sm:$0xff] }
  0xc2   : > { %v6253_v51 = vpop.eup %6252  ;;  %v2379_v52 = vsub.f32 %v6247_v42, %v6251_v48  ;;  %6278 = vpow2.f32 %v5392_v27  ;;  %v5586_v27 = vmul.f32 -1.442695, %v1553_v12  ;;  %v8303_v19 = vrot.slane %v415_v34, %v8105_v13  ;;  %v7623_v12 = vld [vmem:[%s9474_s2 + $0x8] sm:$0xff]  ;;  %v7626_v34 = vld [vmem:[%s9474_s2 + $0x10] sm:$0xff] }
  0xc3   : > { %v6255_v57 = vpop.eup %6254  ;;  %v2380_v58 = vsub.f32 %v6249_v45, %v6253_v51  ;;  %6280 = vpow2.f32 %v5393_v43 }
  0xc4   : > { %v6257_v1 = vpop.eup %6256  ;;  %6282 = vpow2.f32 %v5520_v46  ;;  %v1401_v46 = vcombine.high %v8122_v21, %v8122_v21 }
  0xc5   : > { %v6259_v9 = vpop.eup %6258  ;;  %v2503_v10 = vpack.c.bf16 %v2380_v58, %v2379_v52  ;;  %6284 = vpow2.f32 %v5521_v49 }
  0xc6   : > { %v6261_v14 = vpop.eup %6260  ;;  %v2381_v0 = vsub.f32 %v6255_v57, %v6259_v9  ;;  %6286 = vpow2.f32 %v5394_v54  ;;  %v8306_v21 = vrot.slane %v1401_v46, %v8105_v13 }
  0xc7   : > { %v6263_v18 = vpop.eup %6262  ;;  %5864 = vmatprep.mubr.bf16.mxu0 %v2503_v10  ;;  %v2382_v61 = vsub.f32 %v6257_v1, %v6261_v14  ;;  %6288 = vpow2.f32 %v5395_v35  ;;  %v8310_v1 = vrot.slane %v8303_v19, %v8119_v20  ;;  %v1402_v14 = vcombine.high %v8166_v41, %v8166_v41 }
  0xc8   : > { %v6265_v53 = vpop.eup %6264  ;;  %6290 = vpow2.f32 %v5522_v3  ;;  %v8325_v41 = vrot.slane %v416_v5, %v8105_v13 }
  0xc9   : > { %v6267_v28 = vpop.eup %6266  ;;  %v2504_v56 = vpack.c.bf16 %v2382_v61, %v2381_v0  ;;  %6292 = vpow2.f32 %v5523_v38  ;;  %v505_v61 = vadd.f32 %v7622_v32, %v8310_v1 }
  0xca   : > { %v6269_v33 = vpop.eup %6268  ;;  %v2443_v25 = vsub.f32 %v6263_v18, %v6267_v28  ;;  %6294 = vpow2.f32 %v5456_v6  ;;  %v8318_v6 = vrot.slane %v8306_v21, %v8119_v20  ;;  %v506_v28 = vadd.f32 %v7623_v12, %v8310_v1 }
  0xcb   : > { %v6271_v24 = vpop.eup %6270  ;;  %5865 = vmatmul.mubr.bf16.gmra.mxu0 %v2504_v56  ;;  %v2444_v36 = vsub.f32 %v6265_v53, %v6269_v33  ;;  %6296 = vpow2.f32 %v5457_v8 }
  0xcc   : > { %v6273_v29 = vpop.eup %6272  ;;  %6298 = vpow2.f32 %v5584_v59  ;;  %v1491_v33 = vadd.f32 %v7624_v17, %v8318_v6 }
  0xcd   : > { %v6275_v39 = vpop.eup %6274  ;;  %v2535_v42 = vpack.c.bf16 %v2444_v36, %v2443_v25  ;;  %6300 = vpow2.f32 %v5585_v15  ;;  %v8333_v25 = vrot.slane %v1402_v14, %v8105_v13  ;;  %v5396_v36 = vmul.f32 -1.442695, %v505_v61 }
  0xce   : > { %v6277_v7 = vpop.eup %6276  ;;  %v2445_v37 = vsub.f32 %v6271_v24, %v6275_v39  ;;  %6302 = vpow2.f32 %v5458_v22  ;;  %v8342_v13 = vrot.slane %v8325_v41, %v8119_v20  ;;  %v5524_v46 = vmul.f32 -1.442695, %v1491_v33 }
  0xcf   : > { %v6279_v43 = vpop.eup %6278  ;;  %5928 = vmatprep.mubr.bf16.mxu1 %v2535_v42  ;;  %v2446_v44 = vsub.f32 %v6273_v29, %v6277_v7  ;;  %6304 = vpow2.f32 %v5459_v60  ;;  %v7625_v60 = vld [vmem:[#allocation8 + $0x8] sm:$0xff]  ;;  %v507_v42 = vadd.f32 %v7626_v34, %v8310_v1 }
  0xd0   : > { %v6281_v45 = vpop.eup %6280  ;;  %v1013_v47 = vadd.f32 1.0, %v6279_v43  ;;  %6306 = vpow2.f32 %v5586_v27  ;;  %v1492_v29 = vadd.f32 %v7625_v60, %v8318_v6  ;;  %v7627_v43 = vld [vmem:[%s9474_s2 + $0x18] sm:$0xff] }
  0xd1   : > { %v6283_v48 = vpop.eup %6282  ;;  %v2536_v49 = vpack.c.bf16 %v2446_v44, %v2445_v37  ;;  %v1014_v50 = vadd.f32 1.0, %v6281_v45  ;;  %6308 = vpow2.f32 %v5587_v31  ;;  %v5397_v37 = vmul.f32 -1.442695, %v506_v28 }
  0xd2   : > { %v6285_v51 = vpop.eup %6284  ;;  %6310 = vrcp.f32 %v1013_v47  ;;  %v1999_v52 = vadd.f32 1.0, %v6283_v48  ;;  %v508_v44 = vadd.f32 %v7627_v43, %v8310_v1  ;;  %v7628_v47 = vld [vmem:[#allocation8 + $0x10] sm:$0xff]  ;;  %v572_v28 = vadd.f32 %v7627_v43, %v8342_v13 }
  0xd3   : > { %v6287_v54 = vpop.eup %6286  ;;  %5929 = vmatmul.mubr.bf16.gmra.mxu1 %v2536_v49  ;;  %6312 = vrcp.f32 %v1014_v50  ;;  %v2000_v55 = vadd.f32 1.0, %v6285_v51  ;;  %v1493_v48 = vadd.f32 %v7628_v47, %v8318_v6  ;;  %v8351_v49 = vrot.slane %v8333_v25, %v8119_v20 }
  0xd4   : > { %v6289_v57 = vpop.eup %6288  ;;  %6314 = vrcp.f32 %v1999_v52  ;;  %v1015_v58 = vadd.f32 1.0, %v6287_v54  ;;  %v5525_v51 = vmul.f32 -1.442695, %v1492_v29  ;;  %v7629_v52 = vld [vmem:[#allocation8 + $0x18] sm:$0xff]  ;;  %v5399_v5 = vmul.f32 -1.442695, %v508_v44 }
  0xd5   : > { %v6291_v35 = vpop.eup %6290  ;;  %6316 = vrcp.f32 %v2000_v55  ;;  %v1016_v62 = vadd.f32 1.0, %v6289_v57  ;;  %v1494_v54 = vadd.f32 %v7629_v52, %v8318_v6 }
  0xd6   : > { %v6293_v3 = vpop.eup %6292  ;;  %6318 = vrcp.f32 %v1015_v58  ;;  %v2001_v9 = vadd.f32 1.0, %v6291_v35  ;;  %v5398_v58 = vmul.f32 -1.442695, %v507_v42  ;;  %v569_v35 = vadd.f32 %v7622_v32, %v8342_v13 }
  0xd7   : > { %v6295_v10 = vpop.eup %6294  ;;  %6320 = vrcp.f32 %v1016_v62  ;;  %v2002_v38 = vadd.f32 1.0, %v6293_v3  ;;  %v5463_v42 = vmul.f32 -1.442695, %v572_v28 }
  0xd8   : > { %v6297_v11 = vpop.eup %6296  ;;  %6322 = vrcp.f32 %v2001_v9  ;;  %v1077_v0 = vadd.f32 1.0, %v6295_v10  ;;  %v570_v9 = vadd.f32 %v7623_v12, %v8342_v13  ;;  %v5460_v32 = vmul.f32 -1.442695, %v569_v35 }
  0xd9   : > { %v6299_v16 = vpop.eup %6298  ;;  %6324 = vrcp.f32 %v2002_v38  ;;  %v1078_v18 = vadd.f32 1.0, %v6297_v11  ;;  %v5526_v38 = vmul.f32 -1.442695, %v1493_v48  ;;  %v1555_v11 = vadd.f32 %v7624_v17, %v8351_v49 }
  0xda   : > { %v6301_v8 = vpop.eup %6300  ;;  %6326 = vrcp.f32 %v1077_v0  ;;  %v2063_v23 = vadd.f32 1.0, %v6299_v16  ;;  %v5527_v16 = vmul.f32 -1.442695, %v1494_v54  ;;  %v5461_v12 = vmul.f32 -1.442695, %v570_v9 }
  0xdb   : > { %v6303_v53 = vpop.eup %6302  ;;  %6328 = vrcp.f32 %v1078_v18  ;;  %v2064_v59 = vadd.f32 1.0, %v6301_v8  ;;  %v1556_v18 = vadd.f32 %v7625_v60, %v8351_v49  ;;  %v1557_v17 = vadd.f32 %v7628_v47, %v8351_v49 }
  0xdc   : > { %v6305_v56 = vpop.eup %6304  ;;  %6330 = vrcp.f32 %v2063_v23  ;;  %v1079_v15 = vadd.f32 1.0, %v6303_v53  ;;  %v571_v23 = vadd.f32 %v7626_v34, %v8342_v13 }
  0xdd   : > { %v6307_v22 = vpop.eup %6306  ;;  %6332 = vrcp.f32 %v2064_v59  ;;  %v1080_v24 = vadd.f32 1.0, %v6305_v56 }
  0xde   : > { %v6309_v27 = vpop.eup %6308  ;;  %6334 = vrcp.f32 %v1079_v15  ;;  %v2065_v39 = vadd.f32 1.0, %v6307_v22  ;;  %v5588_v15 = vmul.f32 -1.442695, %v1555_v11 }
  0xdf   : > { %v6311_v31 = vpop.eup %6310  ;;  %6336 = vrcp.f32 %v1080_v24  ;;  %v2066_v7 = vadd.f32 1.0, %v6309_v27  ;;  %v5589_v24 = vmul.f32 -1.442695, %v1556_v18  ;;  %v5462_v27 = vmul.f32 -1.442695, %v571_v23 }
  0xe0   : > { %v6313_v45 = vpop.eup %6312  ;;  %6338 = vrcp.f32 %v2065_v39 }
  0xe1   : > { %v6315_v50 = vpop.eup %6314  ;;  %6340 = vrcp.f32 %v2066_v7  ;;  %v5590_v7 = vmul.f32 -1.442695, %v1557_v17 }
  0xe2   : > { %v6317_v55 = vpop.eup %6316  ;;  %v2383_v57 = vsub.f32 %v6311_v31, %v6315_v50  ;;  %6342 = vpow2.f32 %v5396_v36  ;;  %v1558_v36 = vadd.f32 %v7629_v52, %v8351_v49 }
  0xe3   : > { %v6319_v62 = vpop.eup %6318  ;;  %v2384_v3 = vsub.f32 %v6313_v45, %v6317_v55  ;;  %6344 = vpow2.f32 %v5397_v37 }
  0xe4   : > { %v6321_v10 = vpop.eup %6320  ;;  %6346 = vpow2.f32 %v5524_v46  ;;  %v5591_v44 = vmul.f32 -1.442695, %v1558_v36 }
  0xe5   : > { %v6323_v14 = vpop.eup %6322  ;;  %v2505_v0 = vpack.c.bf16 %v2384_v3, %v2383_v57  ;;  %6348 = vpow2.f32 %v5525_v51 }
  0xe6   : > { %v6325_v61 = vpop.eup %6324  ;;  %v2385_v8 = vsub.f32 %v6319_v62, %v6323_v14  ;;  %6350 = vpow2.f32 %v5398_v58 }
  0xe7   : > { %v6327_v53 = vpop.eup %6326  ;;  %5868 = vmatprep.mubr.bf16.mxu0 %v2505_v0  ;;  %v2386_v59 = vsub.f32 %v6321_v10, %v6325_v61  ;;  %6352 = vpow2.f32 %v5399_v5 }
  0xe8   : > { %v6329_v56 = vpop.eup %6328  ;;  %6354 = vpow2.f32 %v5526_v38 }
  0xe9   : > { %v6331_v33 = vpop.eup %6330  ;;  %v2506_v22 = vpack.c.bf16 %v2386_v59, %v2385_v8  ;;  %6356 = vpow2.f32 %v5527_v16 }
  0xea   : > { %v6333_v60 = vpop.eup %6332  ;;  %v2447_v29 = vsub.f32 %v6327_v53, %v6331_v33  ;;  %6358 = vpow2.f32 %v5460_v32  ;;  %v7630_v53 = vld [vmem:[%s9474_s2 + $0x20] sm:$0xff] }
  0xeb   : > { %v6335_v39 = vpop.eup %6334  ;;  %5869 = vmatmul.mubr.bf16.gmra.mxu0 %v2506_v22  ;;  %v2448_v34 = vsub.f32 %v6329_v56, %v6333_v60  ;;  %6360 = vpow2.f32 %v5461_v12  ;;  %v509_v59 = vadd.f32 %v7630_v53, %v8310_v1  ;;  %v7631_v56 = vld [vmem:[%s9474_s2 + $0x28] sm:$0xff]  ;;  %v7632_v22 = vld [vmem:[#allocation8 + $0x20] sm:$0xff] }
  0xec   : > { %v6337_v31 = vpop.eup %6336  ;;  %6362 = vpow2.f32 %v5588_v15  ;;  %v510_v15 = vadd.f32 %v7631_v56, %v8310_v1 }
  0xed   : > { %v6339_v37 = vpop.eup %6338  ;;  %v2537_v43 = vpack.c.bf16 %v2448_v34, %v2447_v29  ;;  %6364 = vpow2.f32 %v5589_v24  ;;  %v1495_v24 = vadd.f32 %v7632_v22, %v8318_v6  ;;  %v7633_v29 = vld [vmem:[#allocation8 + $0x28] sm:$0xff] }
  0xee   : > { %v6341_v45 = vpop.eup %6340  ;;  %v2449_v46 = vsub.f32 %v6335_v39, %v6339_v37  ;;  %6366 = vpow2.f32 %v5462_v27  ;;  %v1496_v27 = vadd.f32 %v7633_v29, %v8318_v6 }
  0xef   : > { %v6343_v47 = vpop.eup %6342  ;;  %5932 = vmatprep.mubr.bf16.mxu1 %v2537_v43  ;;  %v2450_v48 = vsub.f32 %v6337_v31, %v6341_v45  ;;  %6368 = vpow2.f32 %v5463_v42  ;;  %v5400_v42 = vmul.f32 -1.442695, %v509_v59  ;;  %v7634_v31 = vld [vmem:[%s9474_s2 + $0x30] sm:$0xff]  ;;  %v7635_v45 = vld [vmem:[%s9474_s2 + $0x38] sm:$0xff] }
  0xf0   : > { %v6345_v50 = vpop.eup %6344  ;;  %v1017_v51 = vadd.f32 1.0, %v6343_v47  ;;  %6370 = vpow2.f32 %v5590_v7  ;;  %v511_v7 = vadd.f32 %v7634_v31, %v8310_v1  ;;  %v575_v59 = vadd.f32 %v7634_v31, %v8342_v13 }
  0xf1   : > { %v6347_v52 = vpop.eup %6346  ;;  %v2538_v54 = vpack.c.bf16 %v2450_v48, %v2449_v46  ;;  %v1018_v55 = vadd.f32 1.0, %v6345_v50  ;;  %6372 = vpow2.f32 %v5591_v44  ;;  %v5401_v44 = vmul.f32 -1.442695, %v510_v15  ;;  %v7636_v50 = vld [vmem:[#allocation8 + $0x30] sm:$0xff] }
  0xf2   : > { %v6349_v57 = vpop.eup %6348  ;;  %6374 = vrcp.f32 %v1017_v51  ;;  %v2003_v58 = vadd.f32 1.0, %v6347_v52  ;;  %v512_v46 = vadd.f32 %v7635_v45, %v8310_v1  ;;  %v5528_v48 = vmul.f32 -1.442695, %v1495_v24 }
  0xf3   : > { %v6351_v35 = vpop.eup %6350  ;;  %5933 = vmatmul.mubr.bf16.gmra.mxu1 %v2538_v54  ;;  %6376 = vrcp.f32 %v1018_v55  ;;  %v2004_v62 = vadd.f32 1.0, %v6349_v57  ;;  %v1497_v51 = vadd.f32 %v7636_v50, %v8318_v6  ;;  %v5529_v54 = vmul.f32 -1.442695, %v1496_v27  ;;  %v7637_v55 = vld [vmem:[#allocation8 + $0x38] sm:$0xff] }
  0xf4   : > { %v6353_v3 = vpop.eup %6352  ;;  %6378 = vrcp.f32 %v2003_v58  ;;  %v1019_v5 = vadd.f32 1.0, %v6351_v35  ;;  %v1498_v57 = vadd.f32 %v7637_v55, %v8318_v6  ;;  %v576_v15 = vadd.f32 %v7635_v45, %v8342_v13 }
  0xf5   : > { %v6355_v9 = vpop.eup %6354  ;;  %6380 = vrcp.f32 %v2004_v62  ;;  %v1020_v10 = vadd.f32 1.0, %v6353_v3  ;;  %v5402_v62 = vmul.f32 -1.442695, %v511_v7  ;;  %v573_v3 = vadd.f32 %v7630_v53, %v8342_v13 }
  0xf6   : > { %v6357_v38 = vpop.eup %6356  ;;  %6382 = vrcp.f32 %v1019_v5  ;;  %v2005_v11 = vadd.f32 1.0, %v6355_v9  ;;  %v5467_v7 = vmul.f32 -1.442695, %v576_v15 }
  0xf7   : > { %v6359_v14 = vpop.eup %6358  ;;  %6384 = vrcp.f32 %v1020_v10  ;;  %v2006_v0 = vadd.f32 1.0, %v6357_v38  ;;  %v5403_v10 = vmul.f32 -1.442695, %v512_v46  ;;  %v574_v38 = vadd.f32 %v7631_v56, %v8342_v13 }
  0xf8   : > { %v6361_v16 = vpop.eup %6360  ;;  %6386 = vrcp.f32 %v2005_v11  ;;  %v1081_v18 = vadd.f32 1.0, %v6359_v14  ;;  %v5530_v14 = vmul.f32 -1.442695, %v1497_v51  ;;  %v5464_v53 = vmul.f32 -1.442695, %v573_v3 }
  0xf9   : > { %v6363_v61 = vpop.eup %6362  ;;  %6388 = vrcp.f32 %v2006_v0  ;;  %v1082_v8 = vadd.f32 1.0, %v6361_v16  ;;  %v1559_v0 = vadd.f32 %v7632_v22, %v8351_v49  ;;  %v5465_v56 = vmul.f32 -1.442695, %v574_v38 }
  0xfa   : > { %v6365_v32 = vpop.eup %6364  ;;  %6390 = vrcp.f32 %v1081_v18  ;;  %v2067_v23 = vadd.f32 1.0, %v6363_v61  ;;  %v5531_v61 = vmul.f32 -1.442695, %v1498_v57  ;;  %v1561_v22 = vadd.f32 %v7636_v50, %v8351_v49 }
  0xfb   : > { %v6367_v12 = vpop.eup %6366  ;;  %6392 = vrcp.f32 %v1082_v8  ;;  %v2068_v28 = vadd.f32 1.0, %v6365_v32  ;;  %v1560_v8 = vadd.f32 %v7633_v29, %v8351_v49  ;;  %v1562_v29 = vadd.f32 %v7637_v55, %v8351_v49 }
  0xfc   : > { %v6369_v17 = vpop.eup %6368  ;;  %6394 = vrcp.f32 %v2067_v23  ;;  %v1083_v33 = vadd.f32 1.0, %v6367_v12 }
  0xfd   : > { %v6371_v36 = vpop.eup %6370  ;;  %6396 = vrcp.f32 %v2068_v28  ;;  %v1084_v60 = vadd.f32 1.0, %v6369_v17  ;;  %v5595_v46 = vmul.f32 -1.442695, %v1562_v29 }
  0xfe   : > { %v6373_v39 = vpop.eup %6372  ;;  %6398 = vrcp.f32 %v1083_v33  ;;  %v2069_v34 = vadd.f32 1.0, %v6371_v36  ;;  %v5592_v33 = vmul.f32 -1.442695, %v1559_v0 }
  0xff   : > { %v6375_v37 = vpop.eup %6374  ;;  %6400 = vrcp.f32 %v1084_v60  ;;  %v2070_v43 = vadd.f32 1.0, %v6373_v39  ;;  %v5593_v60 = vmul.f32 -1.442695, %v1560_v8 }
 0x100   : > { %v6377_v47 = vpop.eup %6376  ;;  %6402 = vrcp.f32 %v2069_v34  ;;  %v5466_v34 = vmul.f32 -1.442695, %v575_v59 }
 0x101   : > { %v6379_v52 = vpop.eup %6378  ;;  %6404 = vrcp.f32 %v2070_v43  ;;  %v5594_v43 = vmul.f32 -1.442695, %v1561_v22 }
 0x102   : > { %v6381_v58 = vpop.eup %6380  ;;  %v2387_v35 = vsub.f32 %v6375_v37, %v6379_v52  ;;  %6406 = vpow2.f32 %v5400_v42 }
 0x103   : > { %v6383_v5 = vpop.eup %6382  ;;  %v2388_v9 = vsub.f32 %v6377_v47, %v6381_v58  ;;  %6408 = vpow2.f32 %v5401_v44 }
 0x104   : > { %v6385_v11 = vpop.eup %6384  ;;  %6410 = vpow2.f32 %v5528_v48 }
 0x105   : > { %v6387_v16 = vpop.eup %6386  ;;  %v2507_v18 = vpack.c.bf16 %v2388_v9, %v2387_v35  ;;  %6412 = vpow2.f32 %v5529_v54 }
 0x106   : > { %v6389_v32 = vpop.eup %6388  ;;  %v2389_v23 = vsub.f32 %v6383_v5, %v6387_v16  ;;  %6414 = vpow2.f32 %v5402_v62 }
 0x107   : > { %v6391_v12 = vpop.eup %6390  ;;  %5872 = vmatprep.mubr.bf16.mxu0 %v2507_v18  ;;  %v2390_v28 = vsub.f32 %v6385_v11, %v6389_v32  ;;  %6416 = vpow2.f32 %v5403_v10 }
 0x108   : > { %v6393_v17 = vpop.eup %6392  ;;  %6418 = vpow2.f32 %v5530_v14 }
 0x109   : > { %v6395_v24 = vpop.eup %6394  ;;  %v2508_v36 = vpack.c.bf16 %v2390_v28, %v2389_v23  ;;  %6420 = vpow2.f32 %v5531_v61 }
 0x10a   : > { %v6397_v27 = vpop.eup %6396  ;;  %v2451_v39 = vsub.f32 %v6391_v12, %v6395_v24  ;;  %6422 = vpow2.f32 %v5464_v53  ;;  %v7638_v12 = vld [vmem:[%s9474_s2 + $0x40] sm:$0xff] }
 0x10b   : > { %v6399_v42 = vpop.eup %6398  ;;  %5873 = vmatmul.mubr.bf16.gmra.mxu0 %v2508_v36  ;;  %v2452_v31 = vsub.f32 %v6393_v17, %v6397_v27  ;;  %6424 = vpow2.f32 %v5465_v56  ;;  %v513_v28 = vadd.f32 %v7638_v12, %v8310_v1  ;;  %v7639_v17 = vld [vmem:[%s9474_s2 + $0x48] sm:$0xff]  ;;  %v7640_v36 = vld [vmem:[#allocation8 + $0x40] sm:$0xff] }
 0x10c   : > { %v6401_v37 = vpop.eup %6400  ;;  %6426 = vpow2.f32 %v5592_v33  ;;  %v514_v33 = vadd.f32 %v7639_v17, %v8310_v1 }
 0x10d   : > { %v6403_v44 = vpop.eup %6402  ;;  %v2539_v45 = vpack.c.bf16 %v2452_v31, %v2451_v39  ;;  %6428 = vpow2.f32 %v5593_v60  ;;  %v1499_v60 = vadd.f32 %v7640_v36, %v8318_v6  ;;  %v7641_v39 = vld [vmem:[#allocation8 + $0x48] sm:$0xff] }
 0x10e   : > { %v6405_v47 = vpop.eup %6404  ;;  %v2453_v48 = vsub.f32 %v6399_v42, %v6403_v44  ;;  %6430 = vpow2.f32 %v5466_v34  ;;  %v1500_v34 = vadd.f32 %v7641_v39, %v8318_v6 }
 0x10f   : > { %v6407_v50 = vpop.eup %6406  ;;  %5936 = vmatprep.mubr.bf16.mxu1 %v2539_v45  ;;  %v2454_v51 = vsub.f32 %v6401_v37, %v6405_v47  ;;  %6432 = vpow2.f32 %v5467_v7  ;;  %v5404_v7 = vmul.f32 -1.442695, %v513_v28  ;;  %v7642_v37 = vld [vmem:[%s9474_s2 + $0x50] sm:$0xff]  ;;  %v7643_v47 = vld [vmem:[%s9474_s2 + $0x58] sm:$0xff] }
 0x110   : > { %v6409_v52 = vpop.eup %6408  ;;  %v1021_v54 = vadd.f32 1.0, %v6407_v50  ;;  %6434 = vpow2.f32 %v5594_v43  ;;  %v515_v43 = vadd.f32 %v7642_v37, %v8310_v1  ;;  %v579_v28 = vadd.f32 %v7642_v37, %v8342_v13 }
 0x111   : > { %v6411_v55 = vpop.eup %6410  ;;  %v2540_v57 = vpack.c.bf16 %v2454_v51, %v2453_v48  ;;  %v1022_v58 = vadd.f32 1.0, %v6409_v52  ;;  %6436 = vpow2.f32 %v5595_v46  ;;  %v5405_v46 = vmul.f32 -1.442695, %v514_v33  ;;  %v7644_v52 = vld [vmem:[#allocation8 + $0x50] sm:$0xff] }
 0x112   : > { %v6413_v35 = vpop.eup %6412  ;;  %6438 = vrcp.f32 %v1021_v54  ;;  %v2007_v62 = vadd.f32 1.0, %v6411_v55  ;;  %v516_v48 = vadd.f32 %v7643_v47, %v8310_v1  ;;  %v5532_v51 = vmul.f32 -1.442695, %v1499_v60 }
 0x113   : > { %v6415_v3 = vpop.eup %6414  ;;  %5937 = vmatmul.mubr.bf16.gmra.mxu1 %v2540_v57  ;;  %6440 = vrcp.f32 %v1022_v58  ;;  %v2008_v5 = vadd.f32 1.0, %v6413_v35  ;;  %v1501_v54 = vadd.f32 %v7644_v52, %v8318_v6  ;;  %v5533_v57 = vmul.f32 -1.442695, %v1500_v34  ;;  %v7645_v58 = vld [vmem:[#allocation8 + $0x58] sm:$0xff] }
 0x114   : > { %v6417_v9 = vpop.eup %6416  ;;  %6442 = vrcp.f32 %v2007_v62  ;;  %v1023_v10 = vadd.f32 1.0, %v6415_v3  ;;  %v1502_v35 = vadd.f32 %v7645_v58, %v8318_v6  ;;  %v580_v33 = vadd.f32 %v7643_v47, %v8342_v13 }
 0x115   : > { %v6419_v38 = vpop.eup %6418  ;;  %6444 = vrcp.f32 %v2008_v5  ;;  %v1024_v11 = vadd.f32 1.0, %v6417_v9  ;;  %v5406_v5 = vmul.f32 -1.442695, %v515_v43  ;;  %v577_v9 = vadd.f32 %v7638_v12, %v8342_v13 }
 0x116   : > { %v6421_v14 = vpop.eup %6420  ;;  %6446 = vrcp.f32 %v1023_v10  ;;  %v2009_v0 = vadd.f32 1.0, %v6419_v38  ;;  %v5471_v43 = vmul.f32 -1.442695, %v580_v33 }
 0x117   : > { %v6423_v16 = vpop.eup %6422  ;;  %6448 = vrcp.f32 %v1024_v11  ;;  %v2010_v18 = vadd.f32 1.0, %v6421_v14  ;;  %v5407_v11 = vmul.f32 -1.442695, %v516_v48  ;;  %v578_v14 = vadd.f32 %v7639_v17, %v8342_v13 }
 0x118   : > { %v6425_v61 = vpop.eup %6424  ;;  %6450 = vrcp.f32 %v2009_v0  ;;  %v1085_v8 = vadd.f32 1.0, %v6423_v16  ;;  %v5534_v16 = vmul.f32 -1.442695, %v1501_v54  ;;  %v5468_v12 = vmul.f32 -1.442695, %v577_v9 }
 0x119   : > { %v6427_v32 = vpop.eup %6426  ;;  %6452 = vrcp.f32 %v2010_v18  ;;  %v1086_v23 = vadd.f32 1.0, %v6425_v61  ;;  %v1563_v18 = vadd.f32 %v7640_v36, %v8351_v49  ;;  %v5469_v17 = vmul.f32 -1.442695, %v578_v14 }
 0x11a   : > { %v6429_v53 = vpop.eup %6428  ;;  %6454 = vrcp.f32 %v1085_v8  ;;  %v2071_v59 = vadd.f32 1.0, %v6427_v32  ;;  %v5535_v32 = vmul.f32 -1.442695, %v1502_v35  ;;  %v1565_v36 = vadd.f32 %v7644_v52, %v8351_v49 }
 0x11b   : > { %v6431_v56 = vpop.eup %6430  ;;  %6456 = vrcp.f32 %v1086_v23  ;;  %v2072_v15 = vadd.f32 1.0, %v6429_v53  ;;  %v1564_v23 = vadd.f32 %v7641_v39, %v8351_v49  ;;  %v1566_v39 = vadd.f32 %v7645_v58, %v8351_v49 }
 0x11c   : > { %v6433_v22 = vpop.eup %6432  ;;  %6458 = vrcp.f32 %v2071_v59  ;;  %v1087_v24 = vadd.f32 1.0, %v6431_v56 }
 0x11d   : > { %v6435_v29 = vpop.eup %6434  ;;  %6460 = vrcp.f32 %v2072_v15  ;;  %v1088_v27 = vadd.f32 1.0, %v6433_v22  ;;  %v5599_v48 = vmul.f32 -1.442695, %v1566_v39 }
 0x11e   : > { %v6437_v42 = vpop.eup %6436  ;;  %6462 = vrcp.f32 %v1087_v24  ;;  %v2073_v31 = vadd.f32 1.0, %v6435_v29  ;;  %v5596_v24 = vmul.f32 -1.442695, %v1563_v18 }
 0x11f   : > { %v6439_v44 = vpop.eup %6438  ;;  %6464 = vrcp.f32 %v1088_v27  ;;  %v2074_v45 = vadd.f32 1.0, %v6437_v42  ;;  %v5597_v27 = vmul.f32 -1.442695, %v1564_v23 }
 0x120   : > { %v6441_v50 = vpop.eup %6440  ;;  %6466 = vrcp.f32 %v2073_v31  ;;  %v5470_v31 = vmul.f32 -1.442695, %v579_v28 }
 0x121   : > { %v6443_v55 = vpop.eup %6442  ;;  %6468 = vrcp.f32 %v2074_v45  ;;  %v5598_v45 = vmul.f32 -1.442695, %v1565_v36 }
 0x122   : > { %v6445_v62 = vpop.eup %6444  ;;  %v2391_v3 = vsub.f32 %v6439_v44, %v6443_v55  ;;  %6470 = vpow2.f32 %v5404_v7 }
 0x123   : > { %v6447_v10 = vpop.eup %6446  ;;  %v2392_v38 = vsub.f32 %v6441_v50, %v6445_v62  ;;  %6472 = vpow2.f32 %v5405_v46 }
 0x124   : > { %v6449_v0 = vpop.eup %6448  ;;  %6474 = vpow2.f32 %v5532_v51 }
 0x125   : > { %v6451_v61 = vpop.eup %6450  ;;  %v2509_v8 = vpack.c.bf16 %v2392_v38, %v2391_v3  ;;  %6476 = vpow2.f32 %v5533_v57 }
 0x126   : > { %v6453_v53 = vpop.eup %6452  ;;  %v2393_v59 = vsub.f32 %v6447_v10, %v6451_v61  ;;  %6478 = vpow2.f32 %v5406_v5 }
 0x127   : > { %v6455_v56 = vpop.eup %6454  ;;  %5876 = vmatprep.mubr.bf16.mxu0 %v2509_v8  ;;  %v2394_v15 = vsub.f32 %v6449_v0, %v6453_v53  ;;  %6480 = vpow2.f32 %v5407_v11 }
 0x128   : > { %v6457_v22 = vpop.eup %6456  ;;  %6482 = vpow2.f32 %v5534_v16 }
 0x129   : > { %v6459_v60 = vpop.eup %6458  ;;  %v2510_v29 = vpack.c.bf16 %v2394_v15, %v2393_v59  ;;  %6484 = vpow2.f32 %v5535_v32 }
 0x12a   : > { %v6461_v34 = vpop.eup %6460  ;;  %v2455_v42 = vsub.f32 %v6455_v56, %v6459_v60  ;;  %6486 = vpow2.f32 %v5468_v12  ;;  %v7646_v56 = vld [vmem:[%s9474_s2 + $0x60] sm:$0xff] }
 0x12b   : > { %v6463_v7 = vpop.eup %6462  ;;  %5877 = vmatmul.mubr.bf16.gmra.mxu0 %v2510_v29  ;;  %v2456_v37 = vsub.f32 %v6457_v22, %v6461_v34  ;;  %6488 = vpow2.f32 %v5469_v17  ;;  %v517_v15 = vadd.f32 %v7646_v56, %v8310_v1  ;;  %v7647_v22 = vld [vmem:[%s9474_s2 + $0x68] sm:$0xff]  ;;  %v7648_v29 = vld [vmem:[#allocation8 + $0x60] sm:$0xff] }
 0x12c   : > { %v6465_v44 = vpop.eup %6464  ;;  %6490 = vpow2.f32 %v5596_v24  ;;  %v518_v24 = vadd.f32 %v7647_v22, %v8310_v1 }
 0x12d   : > { %v6467_v46 = vpop.eup %6466  ;;  %v2541_v47 = vpack.c.bf16 %v2456_v37, %v2455_v42  ;;  %6492 = vpow2.f32 %v5597_v27  ;;  %v1503_v27 = vadd.f32 %v7648_v29, %v8318_v6  ;;  %v7649_v42 = vld [vmem:[#allocation8 + $0x68] sm:$0xff] }
 0x12e   : > { %v6469_v50 = vpop.eup %6468  ;;  %v2457_v51 = vsub.f32 %v6463_v7, %v6467_v46  ;;  %6494 = vpow2.f32 %v5470_v31  ;;  %v1504_v31 = vadd.f32 %v7649_v42, %v8318_v6 }
 0x12f   : > { %v6471_v52 = vpop.eup %6470  ;;  %5940 = vmatprep.mubr.bf16.mxu1 %v2541_v47  ;;  %v2458_v54 = vsub.f32 %v6465_v44, %v6469_v50  ;;  %6496 = vpow2.f32 %v5471_v43  ;;  %v5408_v43 = vmul.f32 -1.442695, %v517_v15  ;;  %v7650_v44 = vld [vmem:[%s9474_s2 + $0x70] sm:$0xff]  ;;  %v7651_v50 = vld [vmem:[%s9474_s2 + $0x78] sm:$0xff] }
 0x130   : > { %v6473_v55 = vpop.eup %6472  ;;  %v1025_v57 = vadd.f32 1.0, %v6471_v52  ;;  %6498 = vpow2.f32 %v5598_v45  ;;  %v519_v45 = vadd.f32 %v7650_v44, %v8310_v1 }
 0x131   : > { %v6475_v58 = vpop.eup %6474  ;;  %v2542_v35 = vpack.c.bf16 %v2458_v54, %v2457_v51  ;;  %v1026_v62 = vadd.f32 1.0, %v6473_v55  ;;  %6500 = vpow2.f32 %v5599_v48  ;;  %v5409_v48 = vmul.f32 -1.442695, %v518_v24  ;;  %v7652_v55 = vld [vmem:[#allocation8 + $0x70] sm:$0xff] }
 0x132   : > { %v6477_v3 = vpop.eup %6476  ;;  %6502 = vrcp.f32 %v1025_v57  ;;  %v2011_v5 = vadd.f32 1.0, %v6475_v58  ;;  %v520_v51 = vadd.f32 %v7651_v50, %v8310_v1  ;;  %v5536_v54 = vmul.f32 -1.442695, %v1503_v27 }
 0x133   : > { %v6479_v9 = vpop.eup %6478  ;;  %5941 = vmatmul.mubr.bf16.gmra.mxu1 %v2542_v35  ;;  %6504 = vrcp.f32 %v1026_v62  ;;  %v2012_v10 = vadd.f32 1.0, %v6477_v3  ;;  %v1505_v57 = vadd.f32 %v7652_v55, %v8318_v6  ;;  %v5537_v35 = vmul.f32 -1.442695, %v1504_v31  ;;  %v7653_v62 = vld [vmem:[#allocation8 + $0x78] sm:$0xff] }
 0x134   : > { %v6481_v38 = vpop.eup %6480  ;;  %6506 = vrcp.f32 %v2011_v5  ;;  %v1027_v11 = vadd.f32 1.0, %v6479_v9  ;;  %v1506_v3 = vadd.f32 %v7653_v62, %v8318_v6 }
 0x135   : > { %v6483_v14 = vpop.eup %6482  ;;  %6508 = vrcp.f32 %v2012_v10  ;;  %v1028_v0 = vadd.f32 1.0, %v6481_v38  ;;  %v5410_v10 = vmul.f32 -1.442695, %v519_v45  ;;  %v581_v38 = vadd.f32 %v7646_v56, %v8342_v13 }
 0x136   : > { %v6485_v16 = vpop.eup %6484  ;;  %6510 = vrcp.f32 %v1027_v11  ;;  %v2013_v18 = vadd.f32 1.0, %v6483_v14  ;;  %v5411_v14 = vmul.f32 -1.442695, %v520_v51  ;;  %v5539_v6 = vmul.f32 -1.442695, %v1506_v3 }
 0x137   : > { %v6487_v61 = vpop.eup %6486  ;;  %6512 = vrcp.f32 %v1028_v0  ;;  %v2014_v8 = vadd.f32 1.0, %v6485_v16  ;;  %v582_v0 = vadd.f32 %v7647_v22, %v8342_v13 }
 0x138   : > { %v6489_v32 = vpop.eup %6488  ;;  %6514 = vrcp.f32 %v2013_v18  ;;  %v1089_v23 = vadd.f32 1.0, %v6487_v61  ;;  %v5538_v18 = vmul.f32 -1.442695, %v1505_v57  ;;  %v1567_v61 = vadd.f32 %v7648_v29, %v8351_v49 }
 0x139   : > { %v6491_v53 = vpop.eup %6490  ;;  %6516 = vrcp.f32 %v2014_v8  ;;  %v1090_v59 = vadd.f32 1.0, %v6489_v32  ;;  %v445_v57 = vcombine.high %v8132_v26, %v8132_v26 }
 0x13a   : > { %v6493_v12 = vpop.eup %6492  ;;  %6518 = vrcp.f32 %v1089_v23  ;;  %v2075_v28 = vadd.f32 1.0, %v6491_v53  ;;  %v1568_v23 = vadd.f32 %v7649_v42, %v8351_v49  ;;  %v5600_v24 = vmul.f32 -1.442695, %v1567_v61 }
 0x13b   : > { %v6495_v17 = vpop.eup %6494  ;;  %6520 = vrcp.f32 %v1090_v59  ;;  %v2076_v33 = vadd.f32 1.0, %v6493_v12  ;;  %v5472_v12 = vmul.f32 -1.442695, %v581_v38  ;;  %v1431_v38 = vcombine.high %v8142_v30, %v8142_v30 }
 0x13c   : > { %v6497_v36 = vpop.eup %6496  ;;  %6522 = vrcp.f32 %v2075_v28  ;;  %v1091_v60 = vadd.f32 1.0, %v6495_v17  ;;  %v583_v28 = vadd.f32 %v7650_v44, %v8342_v13  ;;  %v5473_v17 = vmul.f32 -1.442695, %v582_v0 }
 0x13d   : > { %v6499_v39 = vpop.eup %6498  ;;  %6524 = vrcp.f32 %v2076_v33  ;;  %v1092_v34 = vadd.f32 1.0, %v6497_v36  ;;  %v584_v33 = vadd.f32 %v7651_v50, %v8342_v13  ;;  %v1569_v36 = vadd.f32 %v7652_v55, %v8351_v49 }
 0x13e   : > { %v6501_v7 = vpop.eup %6500  ;;  %6526 = vrcp.f32 %v1091_v60  ;;  %v2077_v37 = vadd.f32 1.0, %v6499_v39  ;;  %v5601_v27 = vmul.f32 -1.442695, %v1568_v23  ;;  %v1570_v39 = vadd.f32 %v7653_v62, %v8351_v49 }
 0x13f   : > { %v6503_v46 = vpop.eup %6502  ;;  %6528 = vrcp.f32 %v1092_v34  ;;  %v2078_v47 = vadd.f32 1.0, %v6501_v7  ;;  %v5474_v31 = vmul.f32 -1.442695, %v583_v28  ;;  %v5475_v13 = vmul.f32 -1.442695, %v584_v33  ;;  %v7655_v33 = vld [vmem:[%s9474_s2 + $0x8] sm:$0xff] }
 0x140   : > { %v6505_v52 = vpop.eup %6504  ;;  %6530 = vrcp.f32 %v2077_v37  ;;  %v5602_v44 = vmul.f32 -1.442695, %v1569_v36  ;;  %v8451_v26 = vrot.slane %v445_v57, %v8119_v20  ;;  %v446_v28 = vcombine.high %v8163_v40, %v8163_v40 }
 0x141   : > { %v6507_v58 = vpop.eup %6506  ;;  %6532 = vrcp.f32 %v2078_v47  ;;  %v5603_v47 = vmul.f32 -1.442695, %v1570_v39  ;;  %v1432_v36 = vcombine.high %v8194_v63, %v8194_v63 }
 0x142   : > { %v6509_v5 = vpop.eup %6508  ;;  %v2395_v9 = vsub.f32 %v6503_v46, %v6507_v58  ;;  %6534 = vpow2.f32 %v5408_v43 }
 0x143   : > { %v6511_v11 = vpop.eup %6510  ;;  %v2396_v1 = vsub.f32 %v6505_v52, %v6509_v5  ;;  %6536 = vpow2.f32 %v5409_v48 }
 0x144   : > { %v6513_v16 = vpop.eup %6512  ;;  %6538 = vpow2.f32 %v5536_v54 }
 0x145   : > { %v6515_v8 = vpop.eup %6514  ;;  %v2511_v32 = vpack.c.bf16 %v2396_v1, %v2395_v9  ;;  %6540 = vpow2.f32 %v5537_v35 }
 0x146   : > { %v6517_v53 = vpop.eup %6516  ;;  %v2397_v59 = vsub.f32 %v6511_v11, %v6515_v8  ;;  %6542 = vpow2.f32 %v5410_v10 }
 0x147   : > { %v6519_v56 = vpop.eup %6518  ;;  %5880 = vmatprep.mubr.bf16.mxu0 %v2511_v32  ;;  %v2398_v15 = vsub.f32 %v6513_v16, %v6517_v53  ;;  %6544 = vpow2.f32 %v5411_v14  ;;  %v7654_v53 = vld [vmem:[%s9474_s2] sm:$0xff] }
 0x148   : > { %v6521_v22 = vpop.eup %6520  ;;  %6546 = vpow2.f32 %v5538_v18 }
 0x149   : > { %v6523_v60 = vpop.eup %6522  ;;  %v2512_v29 = vpack.c.bf16 %v2398_v15, %v2397_v59  ;;  %6548 = vpow2.f32 %v5539_v6  ;;  %v8454_v6 = vrot.slane %v1431_v38, %v8119_v20  ;;  %v521_v59 = vadd.f32 %v7654_v53, %v8451_v26 }
 0x14a   : > { %v6525_v34 = vpop.eup %6524  ;;  %v2459_v42 = vsub.f32 %v6519_v56, %v6523_v60  ;;  %6550 = vpow2.f32 %v5472_v12 }
 0x14b   : > { %v6527_v7 = vpop.eup %6526  ;;  %5881 = vmatmul.mubr.bf16.gmra.mxu0 %v2512_v29  ;;  %v2460_v37 = vsub.f32 %v6521_v22, %v6525_v34  ;;  %6552 = vpow2.f32 %v5473_v17  ;;  %v522_v22 = vadd.f32 %v7655_v33, %v8451_v26  ;;  %v7656_v29 = vld [vmem:[#allocation8] sm:$0xff]  ;;  %v5412_v34 = vmul.f32 -1.442695, %v521_v59 }
 0x14c   : > { %v6529_v43 = vpop.eup %6528  ;;  %6554 = vpow2.f32 %v5600_v24  ;;  %v1507_v40 = vadd.f32 %v7656_v29, %v8454_v6 }
 0x14d   : > { %v6531_v45 = vpop.eup %6530  ;;  %v2543_v46 = vpack.c.bf16 %v2460_v37, %v2459_v42  ;;  %6556 = vpow2.f32 %v5601_v27  ;;  %v7657_v42 = vld [vmem:[#allocation8 + $0x8] sm:$0xff] }
 0x14e   : > { %v6533_v48 = vpop.eup %6532  ;;  %v2461_v50 = vsub.f32 %v6527_v7, %v6531_v45  ;;  %6558 = vpow2.f32 %v5474_v31  ;;  %v1508_v31 = vadd.f32 %v7657_v42, %v8454_v6 }
 0x14f   : > { %v6535_v49 = vpop.eup %6534  ;;  %5944 = vmatprep.mubr.bf16.mxu1 %v2543_v46  ;;  %v2462_v51 = vsub.f32 %v6529_v43, %v6533_v48  ;;  %6560 = vpow2.f32 %v5475_v13  ;;  %v7658_v13 = vld [vmem:[%s9474_s2 + $0x10] sm:$0xff]  ;;  %v8475_v43 = vrot.slane %v446_v28, %v8119_v20  ;;  %v5413_v46 = vmul.f32 -1.442695, %v522_v22 }
 0x150   : > { %v6537_v52 = vpop.eup %6536  ;;  %v1029_v54 = vadd.f32 1.0, %v6535_v49  ;;  %6562 = vpow2.f32 %v5602_v44  ;;  %v523_v63 = vadd.f32 %v7658_v13, %v8451_v26  ;;  %v5540_v49 = vmul.f32 -1.442695, %v1507_v40 }
 0x151   : > { %v6539_v55 = vpop.eup %6538  ;;  %v2544_v58 = vpack.c.bf16 %v2462_v51, %v2461_v50  ;;  %v1030_v35 = vadd.f32 1.0, %v6537_v52  ;;  %6564 = vpow2.f32 %v5603_v47  ;;  %v7659_v47 = vld [vmem:[%s9474_s2 + $0x18] sm:$0xff]  ;;  %v7660_v51 = vld [vmem:[#allocation8 + $0x10] sm:$0xff]  ;;  %v5541_v57 = vmul.f32 -1.442695, %v1508_v31 }
 0x152   : > { %v6541_v62 = vpop.eup %6540  ;;  %6566 = vrcp.f32 %v1029_v54  ;;  %v2015_v3 = vadd.f32 1.0, %v6539_v55  ;;  %v524_v48 = vadd.f32 %v7659_v47, %v8451_v26  ;;  %v1509_v52 = vadd.f32 %v7660_v51, %v8454_v6 }
 0x153   : > { %v6543_v5 = vpop.eup %6542  ;;  %5945 = vmatmul.mubr.bf16.gmra.mxu1 %v2544_v58  ;;  %6568 = vrcp.f32 %v1030_v35  ;;  %v2016_v9 = vadd.f32 1.0, %v6541_v62  ;;  %v8483_v54 = vrot.slane %v1432_v36, %v8119_v20  ;;  %v7661_v58 = vld [vmem:[#allocation8 + $0x18] sm:$0xff]  ;;  %v587_v59 = vadd.f32 %v7658_v13, %v8475_v43 }
 0x154   : > { %v6545_v10 = vpop.eup %6544  ;;  %6570 = vrcp.f32 %v2015_v3  ;;  %v1031_v11 = vadd.f32 1.0, %v6543_v5  ;;  %v1510_v35 = vadd.f32 %v7661_v58, %v8454_v6  ;;  %v5414_v5 = vmul.f32 -1.442695, %v523_v63 }
 0x155   : > { %v6547_v1 = vpop.eup %6546  ;;  %6572 = vrcp.f32 %v2016_v9  ;;  %v1032_v14 = vadd.f32 1.0, %v6545_v10  ;;  %v585_v9 = vadd.f32 %v7654_v53, %v8475_v43  ;;  %v1573_v22 = vadd.f32 %v7660_v51, %v8483_v54 }
 0x156   : > { %v6549_v0 = vpop.eup %6548  ;;  %6574 = vrcp.f32 %v1031_v11  ;;  %v2017_v16 = vadd.f32 1.0, %v6547_v1  ;;  %v5415_v11 = vmul.f32 -1.442695, %v524_v48  ;;  %v586_v1 = vadd.f32 %v7655_v33, %v8475_v43 }
 0x157   : > { %v6551_v18 = vpop.eup %6550  ;;  %6576 = vrcp.f32 %v1032_v14  ;;  %v2018_v61 = vadd.f32 1.0, %v6549_v0  ;;  %v5542_v0 = vmul.f32 -1.442695, %v1509_v52  ;;  %v5476_v53 = vmul.f32 -1.442695, %v585_v9 }
 0x158   : > { %v6553_v8 = vpop.eup %6552  ;;  %6578 = vrcp.f32 %v2017_v16  ;;  %v1093_v32 = vadd.f32 1.0, %v6551_v18  ;;  %v1571_v16 = vadd.f32 %v7656_v29, %v8483_v54  ;;  %v1574_v29 = vadd.f32 %v7661_v58, %v8483_v54 }
 0x159   : > { %v6555_v30 = vpop.eup %6554  ;;  %6580 = vrcp.f32 %v2018_v61  ;;  %v1094_v23 = vadd.f32 1.0, %v6553_v8  ;;  %v5543_v8 = vmul.f32 -1.442695, %v1510_v35 }
 0x15a   : > { %v6557_v12 = vpop.eup %6556  ;;  %6582 = vrcp.f32 %v1093_v32  ;;  %v2079_v56 = vadd.f32 1.0, %v6555_v30  ;;  %v1572_v32 = vadd.f32 %v7657_v42, %v8483_v54  ;;  %v5604_v33 = vmul.f32 -1.442695, %v1571_v16 }
 0x15b   : > { %v6559_v15 = vpop.eup %6558  ;;  %6584 = vrcp.f32 %v1094_v23  ;;  %v2080_v17 = vadd.f32 1.0, %v6557_v12 }
 0x15c   : > { %v6561_v24 = vpop.eup %6560  ;;  %6586 = vrcp.f32 %v2079_v56  ;;  %v1095_v60 = vadd.f32 1.0, %v6559_v15  ;;  %v5477_v56 = vmul.f32 -1.442695, %v586_v1  ;;  %v588_v15 = vadd.f32 %v7659_v47, %v8475_v43 }
 0x15d   : > { %v6563_v27 = vpop.eup %6562  ;;  %6588 = vrcp.f32 %v2080_v17  ;;  %v1096_v39 = vadd.f32 1.0, %v6561_v24 }
 0x15e   : > { %v6565_v7 = vpop.eup %6564  ;;  %6590 = vrcp.f32 %v1095_v60  ;;  %v2081_v37 = vadd.f32 1.0, %v6563_v27  ;;  %v5605_v60 = vmul.f32 -1.442695, %v1572_v32  ;;  %v5479_v31 = vmul.f32 -1.442695, %v588_v15 }
 0x15f   : > { %v6567_v44 = vpop.eup %6566  ;;  %6592 = vrcp.f32 %v1096_v39  ;;  %v2082_v45 = vadd.f32 1.0, %v6565_v7  ;;  %v5478_v39 = vmul.f32 -1.442695, %v587_v59 }
 0x160   : > { %v6569_v50 = vpop.eup %6568  ;;  %6594 = vrcp.f32 %v2081_v37  ;;  %v5606_v37 = vmul.f32 -1.442695, %v1573_v22 }
 0x161   : > { %v6571_v55 = vpop.eup %6570  ;;  %6596 = vrcp.f32 %v2082_v45 }
 0x162   : > { %v6573_v62 = vpop.eup %6572  ;;  %v2399_v3 = vsub.f32 %v6567_v44, %v6571_v55  ;;  %6598 = vpow2.f32 %v5412_v34  ;;  %v5607_v44 = vmul.f32 -1.442695, %v1574_v29 }
 0x163   : > { %v6575_v10 = vpop.eup %6574  ;;  %v2400_v38 = vsub.f32 %v6569_v50, %v6573_v62  ;;  %6600 = vpow2.f32 %v5413_v46 }
 0x164   : > { %v6577_v14 = vpop.eup %6576  ;;  %6602 = vpow2.f32 %v5540_v49 }
 0x165   : > { %v6579_v18 = vpop.eup %6578  ;;  %v2513_v61 = vpack.c.bf16 %v2400_v38, %v2399_v3  ;;  %6604 = vpow2.f32 %v5541_v57 }
 0x166   : > { %v6581_v30 = vpop.eup %6580  ;;  %v2401_v23 = vsub.f32 %v6575_v10, %v6579_v18  ;;  %6606 = vpow2.f32 %v5414_v5 }
 0x167   : > { %v6583_v12 = vpop.eup %6582  ;;  %5884 = vmatprep.mubr.bf16.mxu0 %v2513_v61  ;;  %v2402_v28 = vsub.f32 %v6577_v14, %v6581_v30  ;;  %6608 = vpow2.f32 %v5415_v11  ;;  %v7662_v30 = vld [vmem:[%s9474_s2 + $0x20] sm:$0xff] }
 0x168   : > { %v6585_v17 = vpop.eup %6584  ;;  %6610 = vpow2.f32 %v5542_v0 }
 0x169   : > { %v6587_v24 = vpop.eup %6586  ;;  %v2514_v36 = vpack.c.bf16 %v2402_v28, %v2401_v23  ;;  %6612 = vpow2.f32 %v5543_v8  ;;  %v525_v23 = vadd.f32 %v7662_v30, %v8451_v26 }
 0x16a   : > { %v6589_v40 = vpop.eup %6588  ;;  %v2463_v27 = vsub.f32 %v6583_v12, %v6587_v24  ;;  %6614 = vpow2.f32 %v5476_v53  ;;  %v7663_v12 = vld [vmem:[%s9474_s2 + $0x28] sm:$0xff] }
 0x16b   : > { %v6591_v34 = vpop.eup %6590  ;;  %5885 = vmatmul.mubr.bf16.gmra.mxu0 %v2514_v36  ;;  %v2464_v42 = vsub.f32 %v6585_v17, %v6589_v40  ;;  %6616 = vpow2.f32 %v5477_v56  ;;  %v526_v28 = vadd.f32 %v7663_v12, %v8451_v26  ;;  %v7664_v17 = vld [vmem:[#allocation8 + $0x20] sm:$0xff]  ;;  %v7665_v36 = vld [vmem:[#allocation8 + $0x28] sm:$0xff] }
 0x16c   : > { %v6593_v7 = vpop.eup %6592  ;;  %6618 = vpow2.f32 %v5604_v33  ;;  %v1511_v33 = vadd.f32 %v7664_v17, %v8454_v6 }
 0x16d   : > { %v6595_v13 = vpop.eup %6594  ;;  %v2545_v63 = vpack.c.bf16 %v2464_v42, %v2463_v27  ;;  %6620 = vpow2.f32 %v5605_v60  ;;  %v1512_v60 = vadd.f32 %v7665_v36, %v8454_v6  ;;  %v5416_v27 = vmul.f32 -1.442695, %v525_v23 }
 0x16e   : > { %v6597_v45 = vpop.eup %6596  ;;  %v2465_v46 = vsub.f32 %v6591_v34, %v6595_v13  ;;  %6622 = vpow2.f32 %v5478_v39  ;;  %v7666_v39 = vld [vmem:[%s9474_s2 + $0x30] sm:$0xff] }
 0x16f   : > { %v6599_v47 = vpop.eup %6598  ;;  %5948 = vmatprep.mubr.bf16.mxu1 %v2545_v63  ;;  %v2466_v48 = vsub.f32 %v6593_v7, %v6597_v45  ;;  %6624 = vpow2.f32 %v5479_v31  ;;  %v527_v34 = vadd.f32 %v7666_v39, %v8451_v26  ;;  %v5417_v7 = vmul.f32 -1.442695, %v526_v28  ;;  %v7668_v45 = vld [vmem:[#allocation8 + $0x30] sm:$0xff] }
 0x170   : > { %v6601_v50 = vpop.eup %6600  ;;  %v1033_v49 = vadd.f32 1.0, %v6599_v47  ;;  %6626 = vpow2.f32 %v5606_v37  ;;  %v7667_v37 = vld [vmem:[%s9474_s2 + $0x38] sm:$0xff] }
 0x171   : > { %v6603_v51 = vpop.eup %6602  ;;  %v2546_v52 = vpack.c.bf16 %v2466_v48, %v2465_v46  ;;  %v1034_v55 = vadd.f32 1.0, %v6601_v50  ;;  %6628 = vpow2.f32 %v5607_v44  ;;  %v528_v13 = vadd.f32 %v7667_v37, %v8451_v26  ;;  %v7669_v50 = vld [vmem:[#allocation8 + $0x38] sm:$0xff] }
 0x172   : > { %v6605_v57 = vpop.eup %6604  ;;  %6630 = vrcp.f32 %v1033_v49  ;;  %v2019_v58 = vadd.f32 1.0, %v6603_v51  ;;  %v5544_v44 = vmul.f32 -1.442695, %v1511_v33  ;;  %v1513_v46 = vadd.f32 %v7668_v45, %v8454_v6 }
 0x173   : > { %v6607_v35 = vpop.eup %6606  ;;  %5949 = vmatmul.mubr.bf16.gmra.mxu1 %v2546_v52  ;;  %6632 = vrcp.f32 %v1034_v55  ;;  %v2020_v62 = vadd.f32 1.0, %v6605_v57  ;;  %v5545_v48 = vmul.f32 -1.442695, %v1512_v60  ;;  %v1514_v49 = vadd.f32 %v7669_v50, %v8454_v6 }
 0x174   : > { %v6609_v3 = vpop.eup %6608  ;;  %6634 = vrcp.f32 %v2019_v58  ;;  %v1035_v5 = vadd.f32 1.0, %v6607_v35  ;;  %v5418_v55 = vmul.f32 -1.442695, %v527_v34  ;;  %v589_v57 = vadd.f32 %v7662_v30, %v8475_v43 }
 0x175   : > { %v6611_v9 = vpop.eup %6610  ;;  %6636 = vrcp.f32 %v2020_v62  ;;  %v1036_v10 = vadd.f32 1.0, %v6609_v3  ;;  %v5419_v62 = vmul.f32 -1.442695, %v528_v13  ;;  %v590_v3 = vadd.f32 %v7663_v12, %v8475_v43 }
 0x176   : > { %v6613_v38 = vpop.eup %6612  ;;  %6638 = vrcp.f32 %v1035_v5  ;;  %v2021_v11 = vadd.f32 1.0, %v6611_v9  ;;  %v5546_v9 = vmul.f32 -1.442695, %v1513_v46  ;;  %v592_v23 = vadd.f32 %v7667_v37, %v8475_v43 }
 0x177   : > { %v6615_v1 = vpop.eup %6614  ;;  %6640 = vrcp.f32 %v1036_v10  ;;  %v2022_v14 = vadd.f32 1.0, %v6613_v38  ;;  %v1575_v10 = vadd.f32 %v7664_v17, %v8483_v54  ;;  %v5481_v30 = vmul.f32 -1.442695, %v590_v3 }
 0x178   : > { %v6617_v0 = vpop.eup %6616  ;;  %6642 = vrcp.f32 %v2021_v11  ;;  %v1097_v16 = vadd.f32 1.0, %v6615_v1  ;;  %v5547_v1 = vmul.f32 -1.442695, %v1514_v49  ;;  %v1577_v12 = vadd.f32 %v7668_v45, %v8483_v54 }
 0x179   : > { %v6619_v18 = vpop.eup %6618  ;;  %6644 = vrcp.f32 %v2022_v14  ;;  %v1098_v61 = vadd.f32 1.0, %v6617_v0  ;;  %v1576_v14 = vadd.f32 %v7665_v36, %v8483_v54  ;;  %v1578_v17 = vadd.f32 %v7669_v50, %v8483_v54 }
 0x17a   : > { %v6621_v8 = vpop.eup %6620  ;;  %6646 = vrcp.f32 %v1097_v16  ;;  %v2083_v32 = vadd.f32 1.0, %v6619_v18  ;;  %v5480_v18 = vmul.f32 -1.442695, %v589_v57 }
 0x17b   : > { %v6623_v53 = vpop.eup %6622  ;;  %6648 = vrcp.f32 %v1098_v61  ;;  %v2084_v59 = vadd.f32 1.0, %v6621_v8  ;;  %v591_v61 = vadd.f32 %v7666_v39, %v8475_v43 }
 0x17c   : > { %v6625_v56 = vpop.eup %6624  ;;  %6650 = vrcp.f32 %v2083_v32  ;;  %v1099_v15 = vadd.f32 1.0, %v6623_v53 }
 0x17d   : > { %v6627_v22 = vpop.eup %6626  ;;  %6652 = vrcp.f32 %v2084_v59  ;;  %v1100_v24 = vadd.f32 1.0, %v6625_v56  ;;  %v5608_v59 = vmul.f32 -1.442695, %v1575_v10 }
 0x17e   : > { %v6629_v29 = vpop.eup %6628  ;;  %6654 = vrcp.f32 %v1099_v15  ;;  %v2085_v40 = vadd.f32 1.0, %v6627_v22  ;;  %v5609_v15 = vmul.f32 -1.442695, %v1576_v14 }
 0x17f   : > { %v6631_v42 = vpop.eup %6630  ;;  %6656 = vrcp.f32 %v1100_v24  ;;  %v2086_v31 = vadd.f32 1.0, %v6629_v29  ;;  %v5482_v24 = vmul.f32 -1.442695, %v591_v61  ;;  %v5483_v29 = vmul.f32 -1.442695, %v592_v23 }
 0x180   : > { %v6633_v63 = vpop.eup %6632  ;;  %6658 = vrcp.f32 %v2085_v40 }
 0x181   : > { %v6635_v47 = vpop.eup %6634  ;;  %6660 = vrcp.f32 %v2086_v31 }
 0x182   : > { %v6637_v51 = vpop.eup %6636  ;;  %v2403_v52 = vsub.f32 %v6631_v42, %v6635_v47  ;;  %6662 = vpow2.f32 %v5416_v27  ;;  %v5610_v27 = vmul.f32 -1.442695, %v1577_v12  ;;  %v5611_v42 = vmul.f32 -1.442695, %v1578_v17 }
 0x183   : > { %v6639_v58 = vpop.eup %6638  ;;  %v2404_v35 = vsub.f32 %v6633_v63, %v6637_v51  ;;  %6664 = vpow2.f32 %v5417_v7 }
 0x184   : > { %v6641_v5 = vpop.eup %6640  ;;  %6666 = vpow2.f32 %v5544_v44 }
 0x185   : > { %v6643_v38 = vpop.eup %6642  ;;  %v2515_v11 = vpack.c.bf16 %v2404_v35, %v2403_v52  ;;  %6668 = vpow2.f32 %v5545_v48 }
 0x186   : > { %v6645_v0 = vpop.eup %6644  ;;  %v2405_v16 = vsub.f32 %v6639_v58, %v6643_v38  ;;  %6670 = vpow2.f32 %v5418_v55 }
 0x187   : > { %v6647_v8 = vpop.eup %6646  ;;  %5888 = vmatprep.mubr.bf16.mxu0 %v2515_v11  ;;  %v2406_v32 = vsub.f32 %v6641_v5, %v6645_v0  ;;  %6672 = vpow2.f32 %v5419_v62  ;;  %v7670_v0 = vld [vmem:[%s9474_s2 + $0x40] sm:$0xff] }
 0x188   : > { %v6649_v53 = vpop.eup %6648  ;;  %6674 = vpow2.f32 %v5546_v9 }
 0x189   : > { %v6651_v28 = vpop.eup %6650  ;;  %v2516_v56 = vpack.c.bf16 %v2406_v32, %v2405_v16  ;;  %6676 = vpow2.f32 %v5547_v1  ;;  %v529_v16 = vadd.f32 %v7670_v0, %v8451_v26 }
 0x18a   : > { %v6653_v33 = vpop.eup %6652  ;;  %v2467_v22 = vsub.f32 %v6647_v8, %v6651_v28  ;;  %6678 = vpow2.f32 %v5480_v18  ;;  %v7671_v8 = vld [vmem:[%s9474_s2 + $0x48] sm:$0xff] }
 0x18b   : > { %v6655_v36 = vpop.eup %6654  ;;  %5889 = vmatmul.mubr.bf16.gmra.mxu0 %v2516_v56  ;;  %v2468_v60 = vsub.f32 %v6649_v53, %v6653_v33  ;;  %6680 = vpow2.f32 %v5481_v30  ;;  %v530_v32 = vadd.f32 %v7671_v8, %v8451_v26  ;;  %v7672_v53 = vld [vmem:[#allocation8 + $0x40] sm:$0xff]  ;;  %v7673_v56 = vld [vmem:[#allocation8 + $0x48] sm:$0xff] }
 0x18c   : > { %v6657_v40 = vpop.eup %6656  ;;  %6682 = vpow2.f32 %v5608_v59  ;;  %v1515_v59 = vadd.f32 %v7672_v53, %v8454_v6 }
 0x18d   : > { %v6659_v39 = vpop.eup %6658  ;;  %v2547_v34 = vpack.c.bf16 %v2468_v60, %v2467_v22  ;;  %6684 = vpow2.f32 %v5609_v15  ;;  %v1516_v15 = vadd.f32 %v7673_v56, %v8454_v6  ;;  %v5420_v22 = vmul.f32 -1.442695, %v529_v16 }
 0x18e   : > { %v6661_v31 = vpop.eup %6660  ;;  %v2469_v7 = vsub.f32 %v6655_v36, %v6659_v39  ;;  %6686 = vpow2.f32 %v5482_v24  ;;  %v7674_v24 = vld [vmem:[%s9474_s2 + $0x50] sm:$0xff] }
 0x18f   : > { %v6663_v37 = vpop.eup %6662  ;;  %5952 = vmatprep.mubr.bf16.mxu1 %v2547_v34  ;;  %v2470_v13 = vsub.f32 %v6657_v40, %v6661_v31  ;;  %6688 = vpow2.f32 %v5483_v29  ;;  %v531_v36 = vadd.f32 %v7674_v24, %v8451_v26  ;;  %v5421_v40 = vmul.f32 -1.442695, %v530_v32  ;;  %v7676_v31 = vld [vmem:[#allocation8 + $0x50] sm:$0xff] }
 0x190   : > { %v6665_v63 = vpop.eup %6664  ;;  %v1037_v44 = vadd.f32 1.0, %v6663_v37  ;;  %6690 = vpow2.f32 %v5610_v27  ;;  %v7675_v27 = vld [vmem:[%s9474_s2 + $0x58] sm:$0xff] }
 0x191   : > { %v6667_v45 = vpop.eup %6666  ;;  %v2548_v46 = vpack.c.bf16 %v2470_v13, %v2469_v7  ;;  %v1038_v47 = vadd.f32 1.0, %v6665_v63  ;;  %6692 = vpow2.f32 %v5611_v42  ;;  %v532_v39 = vadd.f32 %v7675_v27, %v8451_v26  ;;  %v7677_v63 = vld [vmem:[#allocation8 + $0x58] sm:$0xff] }
 0x192   : > { %v6669_v48 = vpop.eup %6668  ;;  %6694 = vrcp.f32 %v1037_v44  ;;  %v2023_v50 = vadd.f32 1.0, %v6667_v45  ;;  %v5548_v42 = vmul.f32 -1.442695, %v1515_v59  ;;  %v1517_v7 = vadd.f32 %v7676_v31, %v8454_v6 }
 0x193   : > { %v6671_v49 = vpop.eup %6670  ;;  %5953 = vmatmul.mubr.bf16.gmra.mxu1 %v2548_v46  ;;  %6696 = vrcp.f32 %v1038_v47  ;;  %v2024_v51 = vadd.f32 1.0, %v6669_v48  ;;  %v5549_v13 = vmul.f32 -1.442695, %v1516_v15  ;;  %v1518_v44 = vadd.f32 %v7677_v63, %v8454_v6 }
 0x194   : > { %v6673_v52 = vpop.eup %6672  ;;  %6698 = vrcp.f32 %v2023_v50  ;;  %v1039_v55 = vadd.f32 1.0, %v6671_v49  ;;  %v5422_v47 = vmul.f32 -1.442695, %v531_v36  ;;  %v593_v48 = vadd.f32 %v7670_v0, %v8475_v43 }
 0x195   : > { %v6675_v57 = vpop.eup %6674  ;;  %6700 = vrcp.f32 %v2024_v51  ;;  %v1040_v58 = vadd.f32 1.0, %v6673_v52  ;;  %v5423_v51 = vmul.f32 -1.442695, %v532_v39  ;;  %v594_v52 = vadd.f32 %v7671_v8, %v8475_v43 }
 0x196   : > { %v6677_v35 = vpop.eup %6676  ;;  %6702 = vrcp.f32 %v1039_v55  ;;  %v2025_v62 = vadd.f32 1.0, %v6675_v57  ;;  %v5550_v57 = vmul.f32 -1.442695, %v1517_v7  ;;  %v596_v16 = vadd.f32 %v7675_v27, %v8475_v43 }
 0x197   : > { %v6679_v3 = vpop.eup %6678  ;;  %6704 = vrcp.f32 %v1040_v58  ;;  %v2026_v5 = vadd.f32 1.0, %v6677_v35  ;;  %v1579_v58 = vadd.f32 %v7672_v53, %v8483_v54  ;;  %v5485_v0 = vmul.f32 -1.442695, %v594_v52 }
 0x198   : > { %v6681_v9 = vpop.eup %6680  ;;  %6706 = vrcp.f32 %v2025_v62  ;;  %v1101_v10 = vadd.f32 1.0, %v6679_v3  ;;  %v5551_v3 = vmul.f32 -1.442695, %v1518_v44  ;;  %v1581_v8 = vadd.f32 %v7676_v31, %v8483_v54 }
 0x199   : > { %v6683_v38 = vpop.eup %6682  ;;  %6708 = vrcp.f32 %v2026_v5  ;;  %v1102_v11 = vadd.f32 1.0, %v6681_v9  ;;  %v1580_v5 = vadd.f32 %v7673_v56, %v8483_v54  ;;  %v1582_v53 = vadd.f32 %v7677_v63, %v8483_v54 }
 0x19a   : > { %v6685_v1 = vpop.eup %6684  ;;  %6710 = vrcp.f32 %v1101_v10  ;;  %v2087_v14 = vadd.f32 1.0, %v6683_v38  ;;  %v5484_v38 = vmul.f32 -1.442695, %v593_v48 }
 0x19b   : > { %v6687_v18 = vpop.eup %6686  ;;  %6712 = vrcp.f32 %v1102_v11  ;;  %v2088_v61 = vadd.f32 1.0, %v6685_v1  ;;  %v595_v11 = vadd.f32 %v7674_v24, %v8475_v43 }
 0x19c   : > { %v6689_v30 = vpop.eup %6688  ;;  %6714 = vrcp.f32 %v2087_v14  ;;  %v1103_v23 = vadd.f32 1.0, %v6687_v18 }
 0x19d   : > { %v6691_v12 = vpop.eup %6690  ;;  %6716 = vrcp.f32 %v2088_v61  ;;  %v1104_v28 = vadd.f32 1.0, %v6689_v30  ;;  %v5612_v61 = vmul.f32 -1.442695, %v1579_v58 }
 0x19e   : > { %v6693_v17 = vpop.eup %6692  ;;  %6718 = vrcp.f32 %v1103_v23  ;;  %v2089_v33 = vadd.f32 1.0, %v6691_v12  ;;  %v5613_v23 = vmul.f32 -1.442695, %v1580_v5 }
 0x19f   : > { %v6695_v60 = vpop.eup %6694  ;;  %6720 = vrcp.f32 %v1104_v28  ;;  %v2090_v29 = vadd.f32 1.0, %v6693_v17  ;;  %v5486_v28 = vmul.f32 -1.442695, %v595_v11  ;;  %v5487_v17 = vmul.f32 -1.442695, %v596_v16 }
 0x1a0   : > { %v6697_v34 = vpop.eup %6696  ;;  %6722 = vrcp.f32 %v2089_v33 }
 0x1a1   : > { %v6699_v37 = vpop.eup %6698  ;;  %6724 = vrcp.f32 %v2090_v29 }
 0x1a2   : > { %v6701_v45 = vpop.eup %6700  ;;  %v2407_v46 = vsub.f32 %v6695_v60, %v6699_v37  ;;  %6726 = vpow2.f32 %v5420_v22  ;;  %v5614_v22 = vmul.f32 -1.442695, %v1581_v8  ;;  %v5615_v60 = vmul.f32 -1.442695, %v1582_v53 }
 0x1a3   : > { %v6703_v50 = vpop.eup %6702  ;;  %v2408_v49 = vsub.f32 %v6697_v34, %v6701_v45  ;;  %6728 = vpow2.f32 %v5421_v40 }
 0x1a4   : > { %v6705_v55 = vpop.eup %6704  ;;  %6730 = vpow2.f32 %v5548_v42 }
 0x1a5   : > { %v6707_v35 = vpop.eup %6706  ;;  %v2517_v62 = vpack.c.bf16 %v2408_v49, %v2407_v46  ;;  %6732 = vpow2.f32 %v5549_v13 }
 0x1a6   : > { %v6709_v9 = vpop.eup %6708  ;;  %v2409_v10 = vsub.f32 %v6703_v50, %v6707_v35  ;;  %6734 = vpow2.f32 %v5422_v47 }
 0x1a7   : > { %v6711_v1 = vpop.eup %6710  ;;  %5892 = vmatprep.mubr.bf16.mxu0 %v2517_v62  ;;  %v2410_v14 = vsub.f32 %v6705_v55, %v6709_v9  ;;  %6736 = vpow2.f32 %v5423_v51  ;;  %v7678_v9 = vld [vmem:[%s9474_s2 + $0x60] sm:$0xff] }
 0x1a8   : > { %v6713_v18 = vpop.eup %6712  ;;  %6738 = vpow2.f32 %v5550_v57 }
 0x1a9   : > { %v6715_v32 = vpop.eup %6714  ;;  %v2518_v30 = vpack.c.bf16 %v2410_v14, %v2409_v10  ;;  %6740 = vpow2.f32 %v5551_v3  ;;  %v533_v10 = vadd.f32 %v7678_v9, %v8451_v26 }
 0x1aa   : > { %v6717_v59 = vpop.eup %6716  ;;  %v2471_v12 = vsub.f32 %v6711_v1, %v6715_v32  ;;  %6742 = vpow2.f32 %v5484_v38  ;;  %v7679_v1 = vld [vmem:[%s9474_s2 + $0x68] sm:$0xff] }
 0x1ab   : > { %v6719_v56 = vpop.eup %6718  ;;  %5893 = vmatmul.mubr.bf16.gmra.mxu0 %v2518_v30  ;;  %v2472_v15 = vsub.f32 %v6713_v18, %v6717_v59  ;;  %6744 = vpow2.f32 %v5485_v0  ;;  %v534_v14 = vadd.f32 %v7679_v1, %v8451_v26  ;;  %v7680_v18 = vld [vmem:[#allocation8 + $0x60] sm:$0xff]  ;;  %v7681_v30 = vld [vmem:[#allocation8 + $0x68] sm:$0xff] }
 0x1ac   : > { %v6721_v33 = vpop.eup %6720  ;;  %6746 = vpow2.f32 %v5612_v61  ;;  %v1519_v61 = vadd.f32 %v7680_v18, %v8454_v6 }
 0x1ad   : > { %v6723_v24 = vpop.eup %6722  ;;  %v2549_v36 = vpack.c.bf16 %v2472_v15, %v2471_v12  ;;  %6748 = vpow2.f32 %v5613_v23  ;;  %v1520_v23 = vadd.f32 %v7681_v30, %v8454_v6  ;;  %v5424_v12 = vmul.f32 -1.442695, %v533_v10 }
 0x1ae   : > { %v6725_v29 = vpop.eup %6724  ;;  %v2473_v40 = vsub.f32 %v6719_v56, %v6723_v24  ;;  %6750 = vpow2.f32 %v5486_v28  ;;  %v7682_v28 = vld [vmem:[%s9474_s2 + $0x70] sm:$0xff] }
 0x1af   : > { %v6727_v27 = vpop.eup %6726  ;;  %5956 = vmatprep.mubr.bf16.mxu1 %v2549_v36  ;;  %v2474_v39 = vsub.f32 %v6721_v33, %v6725_v29  ;;  %6752 = vpow2.f32 %v5487_v17  ;;  %v535_v56 = vadd.f32 %v7682_v28, %v8451_v26  ;;  %v5425_v33 = vmul.f32 -1.442695, %v534_v14  ;;  %v7684_v29 = vld [vmem:[#allocation8 + $0x70] sm:$0xff] }
 0x1b0   : > { %v6729_v34 = vpop.eup %6728  ;;  %v1041_v42 = vadd.f32 1.0, %v6727_v27  ;;  %6754 = vpow2.f32 %v5614_v22  ;;  %v7683_v22 = vld [vmem:[%s9474_s2 + $0x78] sm:$0xff] }
 0x1b1   : > { %v6731_v31 = vpop.eup %6730  ;;  %v2550_v7 = vpack.c.bf16 %v2474_v39, %v2473_v40  ;;  %v1042_v37 = vadd.f32 1.0, %v6729_v34  ;;  %6756 = vpow2.f32 %v5615_v60  ;;  %v536_v24 = vadd.f32 %v7683_v22, %v8451_v26  ;;  %v7685_v34 = vld [vmem:[#allocation8 + $0x78] sm:$0xff] }
 0x1b2   : > { %v6733_v13 = vpop.eup %6732  ;;  %6758 = vrcp.f32 %v1041_v42  ;;  %v2027_v63 = vadd.f32 1.0, %v6731_v31  ;;  %v5552_v60 = vmul.f32 -1.442695, %v1519_v61  ;;  %v1521_v40 = vadd.f32 %v7684_v29, %v8454_v6 }
 0x1b3   : > { %v6735_v44 = vpop.eup %6734  ;;  %5957 = vmatmul.mubr.bf16.gmra.mxu1 %v2550_v7  ;;  %6760 = vrcp.f32 %v1042_v37  ;;  %v2028_v45 = vadd.f32 1.0, %v6733_v13  ;;  %v5553_v39 = vmul.f32 -1.442695, %v1520_v23  ;;  %v1522_v42 = vadd.f32 %v7685_v34, %v8454_v6 }
 0x1b4   : > { %v6737_v46 = vpop.eup %6736  ;;  %6762 = vrcp.f32 %v2027_v63  ;;  %v1043_v47 = vadd.f32 1.0, %v6735_v44  ;;  %v5426_v37 = vmul.f32 -1.442695, %v535_v56  ;;  %v597_v13 = vadd.f32 %v7678_v9, %v8475_v43 }
 0x1b5   : > { %v6739_v48 = vpop.eup %6738  ;;  %6764 = vrcp.f32 %v2028_v45  ;;  %v1044_v50 = vadd.f32 1.0, %v6737_v46  ;;  %v5427_v44 = vmul.f32 -1.442695, %v536_v24  ;;  %v598_v45 = vadd.f32 %v7679_v1, %v8475_v43 }
 0x1b6   : > { %v6741_v49 = vpop.eup %6740  ;;  %6766 = vrcp.f32 %v1043_v47  ;;  %v2029_v51 = vadd.f32 1.0, %v6739_v48  ;;  %v5554_v47 = vmul.f32 -1.442695, %v1521_v40  ;;  %v1583_v48 = vadd.f32 %v7680_v18, %v8483_v54 }
 0x1b7   : > { %v6743_v52 = vpop.eup %6742  ;;  %6768 = vrcp.f32 %v1044_v50  ;;  %v2030_v55 = vadd.f32 1.0, %v6741_v49  ;;  %v5555_v6 = vmul.f32 -1.442695, %v1522_v42 }
 0x1b8   : > { %v6745_v57 = vpop.eup %6744  ;;  %6770 = vrcp.f32 %v2029_v51  ;;  %v1105_v58 = vadd.f32 1.0, %v6743_v52  ;;  %v1584_v51 = vadd.f32 %v7681_v30, %v8483_v54  ;;  %v5616_v10 = vmul.f32 -1.442695, %v1583_v48 }
 0x1b9   : > { %v6747_v35 = vpop.eup %6746  ;;  %6772 = vrcp.f32 %v2030_v55  ;;  %v1106_v62 = vadd.f32 1.0, %v6745_v57  ;;  %v5488_v57 = vmul.f32 -1.442695, %v597_v13 }
 0x1ba   : > { %v6749_v3 = vpop.eup %6748  ;;  %6774 = vrcp.f32 %v1105_v58  ;;  %v2091_v5 = vadd.f32 1.0, %v6747_v35  ;;  %v599_v58 = vadd.f32 %v7682_v28, %v8475_v43  ;;  %v5617_v14 = vmul.f32 -1.442695, %v1584_v51 }
 0x1bb   : > { %v6751_v38 = vpop.eup %6750  ;;  %6776 = vrcp.f32 %v1106_v62  ;;  %v2092_v11 = vadd.f32 1.0, %v6749_v3  ;;  %v5489_v3 = vmul.f32 -1.442695, %v598_v45 }
 0x1bc   : > { %v6753_v0 = vpop.eup %6752  ;;  %6778 = vrcp.f32 %v2091_v5  ;;  %v1107_v16 = vadd.f32 1.0, %v6751_v38  ;;  %v600_v5 = vadd.f32 %v7683_v22, %v8475_v43  ;;  %v1585_v38 = vadd.f32 %v7684_v29, %v8483_v54 }
 0x1bd   : > { %v6755_v8 = vpop.eup %6754  ;;  %6780 = vrcp.f32 %v2092_v11  ;;  %v1108_v32 = vadd.f32 1.0, %v6753_v0  ;;  %v1586_v0 = vadd.f32 %v7685_v34, %v8483_v54  ;;  %v5490_v61 = vmul.f32 -1.442695, %v599_v58  ;;  %v7687_v58 = vld [vmem:[%s9474_s2 + $0x8] sm:$0xff] }
 0x1be   : > { %v6757_v53 = vpop.eup %6756  ;;  %6782 = vrcp.f32 %v1107_v16  ;;  %v2093_v59 = vadd.f32 1.0, %v6755_v8  ;;  %v5491_v43 = vmul.f32 -1.442695, %v600_v5  ;;  %v5618_v23 = vmul.f32 -1.442695, %v1585_v38  ;;  %v7688_v5 = vld [vmem:[#allocation8] sm:$0xff] }
 0x1bf   : > { %v6759_v15 = vpop.eup %6758  ;;  %6784 = vrcp.f32 %v1108_v32  ;;  %v2094_v17 = vadd.f32 1.0, %v6757_v53 }
 0x1c0   : > { %v6761_v36 = vpop.eup %6760  ;;  %6786 = vrcp.f32 %v2093_v59 }
 0x1c1   : > { %v6763_v27 = vpop.eup %6762  ;;  %6788 = vrcp.f32 %v2094_v17 }
 0x1c2   : > { %v6765_v31 = vpop.eup %6764  ;;  %v2411_v7 = vsub.f32 %v6759_v15, %v6763_v27  ;;  %6790 = vpow2.f32 %v5424_v12  ;;  %v5619_v12 = vmul.f32 -1.442695, %v1586_v0 }
 0x1c3   : > { %v6767_v63 = vpop.eup %6766  ;;  %v2412_v26 = vsub.f32 %v6761_v36, %v6765_v31  ;;  %6792 = vpow2.f32 %v5425_v33  ;;  %v1433_v31 = vcombine.high %v8306_v21, %v8306_v21 }
 0x1c4   : > { %v6769_v46 = vpop.eup %6768  ;;  %6794 = vpow2.f32 %v5552_v60  ;;  %v447_v60 = vcombine.high %v8303_v19, %v8303_v19 }
 0x1c5   : > { %v6771_v50 = vpop.eup %6770  ;;  %v2519_v49 = vpack.c.bf16 %v2412_v26, %v2411_v7  ;;  %6796 = vpow2.f32 %v5553_v39 }
 0x1c6   : > { %v6773_v52 = vpop.eup %6772  ;;  %v2413_v55 = vsub.f32 %v6767_v63, %v6771_v50  ;;  %6798 = vpow2.f32 %v5426_v37  ;;  %v8583_v13 = vrot.slane %v447_v60, %v8119_v20  ;;  %v7686_v50 = vld [vmem:[%s9474_s2] sm:$0xff] }
 0x1c7   : > { %v6775_v35 = vpop.eup %6774  ;;  %5896 = vmatprep.mubr.bf16.mxu0 %v2519_v49  ;;  %v2414_v62 = vsub.f32 %v6769_v46, %v6773_v52  ;;  %6800 = vpow2.f32 %v5427_v44  ;;  %v448_v52 = vcombine.high %v8325_v41, %v8325_v41 }
 0x1c8   : > { %v6777_v9 = vpop.eup %6776  ;;  %6802 = vpow2.f32 %v5554_v47  ;;  %v8586_v47 = vrot.slane %v1433_v31, %v8119_v20  ;;  %v537_v49 = vadd.f32 %v7686_v50, %v8583_v13 }
 0x1c9   : > { %v6779_v11 = vpop.eup %6778  ;;  %v2520_v1 = vpack.c.bf16 %v2414_v62, %v2413_v55  ;;  %6804 = vpow2.f32 %v5555_v6 }
 0x1ca   : > { %v6781_v16 = vpop.eup %6780  ;;  %v2475_v18 = vsub.f32 %v6775_v35, %v6779_v11  ;;  %6806 = vpow2.f32 %v5488_v57  ;;  %v538_v35 = vadd.f32 %v7687_v58, %v8583_v13  ;;  %v5428_v11 = vmul.f32 -1.442695, %v537_v49 }
 0x1cb   : > { %v6783_v8 = vpop.eup %6782  ;;  %5897 = vmatmul.mubr.bf16.gmra.mxu0 %v2520_v1  ;;  %v2476_v32 = vsub.f32 %v6777_v9, %v6781_v16  ;;  %6808 = vpow2.f32 %v5489_v3  ;;  %v1523_v9 = vadd.f32 %v7688_v5, %v8586_v47  ;;  %v7689_v1 = vld [vmem:[#allocation8 + $0x8] sm:$0xff] }
 0x1cc   : > { %v6785_v30 = vpop.eup %6784  ;;  %6810 = vpow2.f32 %v5616_v10  ;;  %v1434_v10 = vcombine.high %v8333_v25, %v8333_v25 }
 0x1cd   : > { %v6787_v53 = vpop.eup %6786  ;;  %v2551_v59 = vpack.c.bf16 %v2476_v32, %v2475_v18  ;;  %6812 = vpow2.f32 %v5617_v14  ;;  %v1524_v14 = vadd.f32 %v7689_v1, %v8586_v47  ;;  %v7690_v18 = vld [vmem:[%s9474_s2 + $0x10] sm:$0xff] }
 0x1ce   : > { %v6789_v28 = vpop.eup %6788  ;;  %v2477_v56 = vsub.f32 %v6783_v8, %v6787_v53  ;;  %6814 = vpow2.f32 %v5490_v61  ;;  %v539_v61 = vadd.f32 %v7690_v18, %v8583_v13  ;;  %v8607_v8 = vrot.slane %v448_v52, %v8119_v20 }
 0x1cf   : > { %v6791_v54 = vpop.eup %6790  ;;  %5960 = vmatprep.mubr.bf16.mxu1 %v2551_v59  ;;  %v2478_v15 = vsub.f32 %v6785_v30, %v6789_v28  ;;  %6816 = vpow2.f32 %v5491_v43  ;;  %v5429_v43 = vmul.f32 -1.442695, %v538_v35  ;;  %v7691_v30 = vld [vmem:[%s9474_s2 + $0x18] sm:$0xff]  ;;  %v5556_v59 = vmul.f32 -1.442695, %v1523_v9 }
 0x1d0   : > { %v6793_v17 = vpop.eup %6792  ;;  %v1045_v33 = vadd.f32 1.0, %v6791_v54  ;;  %6818 = vpow2.f32 %v5618_v23  ;;  %v540_v23 = vadd.f32 %v7691_v30, %v8583_v13  ;;  %v601_v60 = vadd.f32 %v7686_v50, %v8607_v8 }
 0x1d1   : > { %v6795_v22 = vpop.eup %6794  ;;  %v2552_v24 = vpack.c.bf16 %v2478_v15, %v2477_v56  ;;  %v1046_v36 = vadd.f32 1.0, %v6793_v17  ;;  %6820 = vpow2.f32 %v5619_v12  ;;  %v7692_v12 = vld [vmem:[#allocation8 + $0x10] sm:$0xff]  ;;  %v8615_v56 = vrot.slane %v1434_v10, %v8119_v20  ;;  %v7693_v17 = vld [vmem:[#allocation8 + $0x18] sm:$0xff] }
 0x1d2   : > { %v6797_v29 = vpop.eup %6796  ;;  %6822 = vrcp.f32 %v1045_v33  ;;  %v2031_v40 = vadd.f32 1.0, %v6795_v22  ;;  %v1525_v28 = vadd.f32 %v7692_v12, %v8586_v47  ;;  %v5557_v15 = vmul.f32 -1.442695, %v1524_v14 }
 0x1d3   : > { %v6799_v27 = vpop.eup %6798  ;;  %5961 = vmatmul.mubr.bf16.gmra.mxu1 %v2552_v24  ;;  %6824 = vrcp.f32 %v1046_v36  ;;  %v2032_v39 = vadd.f32 1.0, %v6797_v29  ;;  %v1526_v33 = vadd.f32 %v7693_v17, %v8586_v47  ;;  %v5430_v36 = vmul.f32 -1.442695, %v539_v61 }
 0x1d4   : > { %v6801_v34 = vpop.eup %6800  ;;  %6826 = vrcp.f32 %v2031_v40  ;;  %v1047_v42 = vadd.f32 1.0, %v6799_v27  ;;  %v5431_v27 = vmul.f32 -1.442695, %v540_v23  ;;  %v604_v50 = vadd.f32 %v7691_v30, %v8607_v8 }
 0x1d5   : > { %v6803_v7 = vpop.eup %6802  ;;  %6828 = vrcp.f32 %v2032_v39  ;;  %v1048_v37 = vadd.f32 1.0, %v6801_v34  ;;  %v602_v39 = vadd.f32 %v7687_v58, %v8607_v8  ;;  %v5558_v34 = vmul.f32 -1.442695, %v1525_v28 }
 0x1d6   : > { %v6805_v19 = vpop.eup %6804  ;;  %6830 = vrcp.f32 %v1047_v42  ;;  %v2033_v63 = vadd.f32 1.0, %v6803_v7  ;;  %v1587_v42 = vadd.f32 %v7688_v5, %v8615_v56  ;;  %v1590_v58 = vadd.f32 %v7693_v17, %v8615_v56  ;;  %v5858_v17 = vpop.f32.mrf.mxu0 }
 0x1d7   : > { %v6807_v26 = vpop.eup %6806  ;;  %6832 = vrcp.f32 %v1048_v37  ;;  %v2034_v44 = vadd.f32 1.0, %v6805_v19  ;;  %v5559_v37 = vmul.f32 -1.442695, %v1526_v33  ;;  %v1588_v19 = vadd.f32 %v7689_v1, %v8615_v56 }
 0x1d8   : > { %v6809_v45 = vpop.eup %6808  ;;  %6834 = vrcp.f32 %v2033_v63  ;;  %v1109_v46 = vadd.f32 1.0, %v6807_v26  ;;  %v5495_v10 = vmul.f32 -1.442695, %v604_v50  ;;  %v5623_v14 = vmul.f32 -1.442695, %v1590_v58 }
 0x1d9   : > { %v6811_v48 = vpop.eup %6810  ;;  %6836 = vrcp.f32 %v2034_v44  ;;  %v1110_v21 = vadd.f32 1.0, %v6809_v45  ;;  %v5492_v44 = vmul.f32 -1.442695, %v601_v60  ;;  %v603_v45 = vadd.f32 %v7690_v18, %v8607_v8 }
 0x1da   : > { %v6813_v6 = vpop.eup %6812  ;;  %6838 = vrcp.f32 %v1109_v46  ;;  %v2095_v51 = vadd.f32 1.0, %v6811_v48 }
 0x1db   : > { %v6815_v55 = vpop.eup %6814  ;;  %6840 = vrcp.f32 %v1110_v21  ;;  %v2096_v57 = vadd.f32 1.0, %v6813_v6  ;;  %v5493_v21 = vmul.f32 -1.442695, %v602_v39  ;;  %v5620_v6 = vmul.f32 -1.442695, %v1587_v42 }
 0x1dc   : > { %v6817_v62 = vpop.eup %6816  ;;  %6842 = vrcp.f32 %v2095_v51  ;;  %v1111_v3 = vadd.f32 1.0, %v6815_v55  ;;  %v1589_v51 = vadd.f32 %v7692_v12, %v8615_v56 }
 0x1dd   : > { %v6819_v38 = vpop.eup %6818  ;;  %6844 = vrcp.f32 %v2096_v57  ;;  %v1112_v41 = vadd.f32 1.0, %v6817_v62  ;;  %v5621_v57 = vmul.f32 -1.442695, %v1588_v19  ;;  %v5922_v19 = vpop.f32.mrf.mxu1 }
 0x1de   : > { %v6821_v0 = vpop.eup %6820  ;;  %6846 = vrcp.f32 %v1111_v3  ;;  %v2097_v16 = vadd.f32 1.0, %v6819_v38  ;;  %v5494_v3 = vmul.f32 -1.442695, %v603_v45 }
 0x1df   : > { %v6823_v25 = vpop.eup %6822  ;;  %6848 = vrcp.f32 %v1112_v41  ;;  %v2098_v32 = vadd.f32 1.0, %v6821_v0  ;;  %v5622_v41 = vmul.f32 -1.442695, %v1589_v51 }
 0x1e0   : > { %v6825_v53 = vpop.eup %6824  ;;  %6850 = vrcp.f32 %v2097_v16 }
 0x1e1   : > { %v6827_v54 = vpop.eup %6826  ;;  %6852 = vrcp.f32 %v2098_v32 }
 0x1e2   : > { %v6829_v22 = vpop.eup %6828  ;;  %v2415_v24 = vsub.f32 %v6823_v25, %v6827_v54  ;;  %6854 = vpow2.f32 %v5428_v11 }
 0x1e3   : > { %v6831_v29 = vpop.eup %6830  ;;  %v2416_v40 = vsub.f32 %v6825_v53, %v6829_v22  ;;  %6856 = vpow2.f32 %v5429_v43 }
 0x1e4   : > { %v6833_v20 = vpop.eup %6832  ;;  %6858 = vpow2.f32 %v5556_v59 }
 0x1e5   : > { %v6835_v31 = vpop.eup %6834  ;;  %v2521_v7 = vpack.c.bf16 %v2416_v40, %v2415_v24  ;;  %6860 = vpow2.f32 %v5557_v15 }
 0x1e6   : > { %v6837_v63 = vpop.eup %6836  ;;  %v2417_v26 = vsub.f32 %v6831_v29, %v6835_v31  ;;  %6862 = vpow2.f32 %v5430_v36  ;;  %v8626_v29 = vstv %s3132_s19  ;;  %s7804_s19 = sshll.u32 %s7897_s10, 4  ;;  %s7805_s19 = int_to_ptr.vmem [resolvable:$false] %s7804_s19 }
 0x1e7   : > { %v6839_v46 = vpop.eup %6838  ;;  %5900 = vmatprep.mubr.bf16.mxu0 %v2521_v7  ;;  %v2418_v48 = vsub.f32 %v6833_v20, %v6837_v63  ;;  %6864 = vpow2.f32 %v5431_v27  ;;  %v2621_v20 = vpop.f32.mrf.mxu0  ;;  %s7806_s13 = scalar_lea.vmem %s7805_s19, 256  ;;  %p7807_p10 = scmp.lt.s32.totalorder %s5238_s30, %s7805_s19 }
 0x1e8   : > { %v6841_v49 = vpop.eup %6840  ;;  %6866 = vpow2.f32 %v5558_v34  ;;  %p7808_p5 = scmp.lt.s32.totalorder %s7806_s13, %s7800_s29 }
 0x1e9   : > { %v6843_v52 = vpop.eup %6842  ;;  %v2522_v55 = vpack.c.bf16 %v2418_v48, %v2417_v26  ;;  %6868 = vpow2.f32 %v5559_v37  ;;  %v3136_v37 = vadd.f32 %v5858_v17, %v8626_v29  ;;  %v3200_v48 = vadd.f32 %v5922_v19, %v8626_v29 }
 0x1ea   : > { %v6845_v35 = vpop.eup %6844  ;;  %v2479_v62 = vsub.f32 %v6839_v46, %v6843_v52  ;;  %6870 = vpow2.f32 %v5492_v44  ;;  %v3134_v44 = vadd.f32 %v8626_v29, %v2621_v20  ;;  %p7809_p7 = por %p7808_p5, %p7807_p10 }
 0x1eb   : > { %v6847_v5 = vpop.eup %6846  ;;  %5901 = vmatmul.mubr.bf16.gmra.mxu0 %v2522_v55  ;;  %v2480_v9 = vsub.f32 %v6841_v49, %v6845_v35  ;;  %6872 = vpow2.f32 %v5493_v21  ;;  %v8634_v49 = vld [vmem:[%s9474_s2 + $0x20] sm:$0xff]  ;;  %v5638_v55 = vmul.f32 -1.442695, %v3136_v37  ;;  %v5859_v35 = vpop.f32.mrf.mxu0  ;;  %v7896_v37 = vmov 0  }
 0x1ec   : > { %v6849_v38 = vpop.eup %6848  ;;  %6874 = vpow2.f32 %v5620_v6  ;;  %v541_v6 = vadd.f32 %v8634_v49, %v8583_v13  ;;  %6082 = vset.pattern.permute.xlu1 %v7896_v37  ;;  %6083 = vset.pattern.permute.xlu0 %v7896_v37  ;;  %p7810_p3 = pnand %p7809_p7, %p7803_p8 }
 0x1ed   : > { %v6851_v11 = vpop.eup %6850  ;;  %v2553_v1 = vpack.c.bf16 %v2480_v9, %v2479_v62  ;;  %6876 = vpow2.f32 %v5621_v57  ;;  %v8641_v57 = vld [vmem:[%s9474_s2 + $0x28] sm:$0xff]  ;;  %v2877_v62 = vpop.f32.mrf.mxu1  ;;  %v5636_v9 = vmul.f32 -1.442695, %v3134_v44 }
 0x1ee   : > { %v6853_v0 = vpop.eup %6852  ;;  %v2481_v16 = vsub.f32 %v6847_v5, %v6851_v11  ;;  %6878 = vpow2.f32 %v5494_v3  ;;  %v542_v58 = vadd.f32 %v8641_v57, %v8583_v13  ;;  %v5702_v11 = vmul.f32 -1.442695, %v3200_v48 }
 0x1ef   : > { %v6855_v18 = vpop.eup %6854  ;;  %5964 = vmatprep.mubr.bf16.mxu1 %v2553_v1  ;;  %v2482_v61 = vsub.f32 %v6849_v38, %v6853_v0  ;;  %6880 = vpow2.f32 %v5495_v10  ;;  %v8645_v10 = vld [vmem:[#allocation8 + $0x20] sm:$0xff]  ;;  %v8649_v1 = vld [vmem:[#allocation8 + $0x28] sm:$0xff] }
 0x1f0   : > { %v6857_v25 = vpop.eup %6856  ;;  %v1049_v32 = vadd.f32 1.0, %v6855_v18  ;;  %6882 = vpow2.f32 %v5622_v41  ;;  %v1527_v38 = vadd.f32 %v8645_v10, %v8586_v47  ;;  %v3137_v18 = vadd.f32 %v5859_v35, %v8626_v29 }
 0x1f1   : > { %v6859_v43 = vpop.eup %6858  ;;  %v2554_v30 = vpack.c.bf16 %v2482_v61, %v2481_v16  ;;  %v1050_v23 = vadd.f32 1.0, %v6857_v25  ;;  %6884 = vpow2.f32 %v5623_v14  ;;  %v1528_v14 = vadd.f32 %v8649_v1, %v8586_v47 }
 0x1f2   : > { %v6861_v53 = vpop.eup %6860  ;;  %6886 = vrcp.f32 %v1049_v32  ;;  %v2035_v59 = vadd.f32 1.0, %v6859_v43  ;;  %v5432_v16 = vmul.f32 -1.442695, %v541_v6  ;;  %v5433_v32 = vmul.f32 -1.442695, %v542_v58  ;;  %v8657_v43 = vld [vmem:[%s9474_s2 + $0x30] sm:$0xff] }
 0x1f3   : > { %v6863_v12 = vpop.eup %6862  ;;  %5965 = vmatmul.mubr.bf16.gmra.mxu1 %v2554_v30  ;;  %6888 = vrcp.f32 %v1050_v23  ;;  %v2036_v28 = vadd.f32 1.0, %v6861_v53  ;;  %v543_v30 = vadd.f32 %v8657_v43, %v8583_v13  ;;  %v5923_v23 = vpop.f32.mrf.mxu1  ;;  %v5561_v17 = vmul.f32 -1.442695, %v1528_v14 }
 0x1f4   : > { %v6865_v54 = vpop.eup %6864  ;;  %6890 = vrcp.f32 %v2035_v59  ;;  %v1051_v15 = vadd.f32 1.0, %v6863_v12  ;;  %v5560_v12 = vmul.f32 -1.442695, %v1527_v38  ;;  %v3201_v48 = vadd.f32 %v5923_v23, %v8626_v29 }
 0x1f5   : > { %v6867_v33 = vpop.eup %6866  ;;  %6892 = vrcp.f32 %v2036_v28  ;;  %v1052_v22 = vadd.f32 1.0, %v6865_v54  ;;  %v8664_v28 = vld [vmem:[%s9474_s2 + $0x38] sm:$0xff] }
 0x1f6   : > { %v6869_v24 = vpop.eup %6868  ;;  %6894 = vrcp.f32 %v1051_v15  ;;  %v2037_v36 = vadd.f32 1.0, %v6867_v33  ;;  %v544_v54 = vadd.f32 %v8664_v28, %v8583_v13  ;;  %v8668_v33 = vld [vmem:[#allocation8 + $0x30] sm:$0xff] }
 0x1f7   : > { %v6871_v60 = vpop.eup %6870  ;;  %6896 = vrcp.f32 %v1052_v22  ;;  %v2038_v40 = vadd.f32 1.0, %v6869_v24  ;;  %v1529_v22 = vadd.f32 %v8668_v33, %v8586_v47  ;;  %v8672_v24 = vld [vmem:[#allocation8 + $0x38] sm:$0xff] }
 0x1f8   : > { %v6873_v27 = vpop.eup %6872  ;;  %6898 = vrcp.f32 %v2037_v36  ;;  %v1113_v39 = vadd.f32 1.0, %v6871_v60  ;;  %v1530_v36 = vadd.f32 %v8672_v24, %v8586_v47  ;;  %v2624_v60 = vpop.f32.mrf.mxu0 }
 0x1f9   : > { %v6875_v34 = vpop.eup %6874  ;;  %6900 = vrcp.f32 %v2038_v40  ;;  %v1114_v42 = vadd.f32 1.0, %v6873_v27  ;;  %v3135_v44 = vadd.f32 %v8626_v29, %v2624_v60 }
 0x1fa   : > { %v6877_v31 = vpop.eup %6876  ;;  %6902 = vrcp.f32 %v1113_v39  ;;  %v2099_v7 = vadd.f32 1.0, %v6875_v34  ;;  %v5639_v39 = vmul.f32 -1.442695, %v3137_v18  ;;  %v5563_v6 = vmul.f32 -1.442695, %v1530_v36 }
 0x1fb   : > { %v6879_v63 = vpop.eup %6878  ;;  %6904 = vrcp.f32 %v1114_v42  ;;  %v2100_v26 = vadd.f32 1.0, %v6877_v31  ;;  %v5434_v42 = vmul.f32 -1.442695, %v543_v30  ;;  %v3198_v31 = vadd.f32 %v8626_v29, %v2877_v62 }
 0x1fc   : > { %v6881_v45 = vpop.eup %6880  ;;  %6906 = vrcp.f32 %v2099_v7  ;;  %v1115_v46 = vadd.f32 1.0, %v6879_v63  ;;  %v2880_v7 = vpop.f32.mrf.mxu1 }
 0x1fd   : > { %v6883_v21 = vpop.eup %6882  ;;  %6908 = vrcp.f32 %v2100_v26  ;;  %v1116_v50 = vadd.f32 1.0, %v6881_v45  ;;  %v5435_v26 = vmul.f32 -1.442695, %v544_v54  ;;  %v5700_v58 = vmul.f32 -1.442695, %v3198_v31 }
 0x1fe   : > { %v6885_v51 = vpop.eup %6884  ;;  %6910 = vrcp.f32 %v1115_v46  ;;  %v2101_v52 = vadd.f32 1.0, %v6883_v21  ;;  %v5562_v46 = vmul.f32 -1.442695, %v1529_v22 }
 0x1ff   : > { %v6887_v3 = vpop.eup %6886  ;;  %6912 = vrcp.f32 %v1116_v50  ;;  %v2102_v5 = vadd.f32 1.0, %v6885_v51  ;;  %v3199_v51 = vadd.f32 %v8626_v29, %v2880_v7 }
 0x200   : > { %v6889_v41 = vpop.eup %6888  ;;  %6914 = vrcp.f32 %v2101_v52 }
 0x201   : > { %v6891_v0 = vpop.eup %6890  ;;  %6916 = vrcp.f32 %v2102_v5 }
 0x202   : > { %v6893_v61 = vpop.eup %6892  ;;  %v2419_v25 = vsub.f32 %v6887_v3, %v6891_v0  ;;  %6918 = vpow2.f32 %v5638_v55  ;;  %v5637_v3 = vmul.f32 -1.442695, %v3135_v44 }
 0x203   : > { %v6895_v53 = vpop.eup %6894  ;;  %v2420_v59 = vsub.f32 %v6889_v41, %v6893_v61  ;;  %6920 = vpow2.f32 %v5636_v9  ;;  %v5703_v9 = vmul.f32 -1.442695, %v3201_v48 }
 0x204   : > { %v6897_v15 = vpop.eup %6896  ;;  %6922 = vpow2.f32 %v5702_v11  ;;  %v5701_v11 = vmul.f32 -1.442695, %v3199_v51 }
 0x205   : > { %v6899_v40 = vpop.eup %6898  ;;  %v2523_v27 = vpack.c.bf16 %v2420_v59, %v2419_v25  ;;  %6924 = vpow2.f32 %v5432_v16 }
 0x206   : > { %v6901_v20 = vpop.eup %6900  ;;  %v2421_v34 = vsub.f32 %v6895_v53, %v6899_v40  ;;  %6926 = vpow2.f32 %v5433_v32 }
 0x207   : > { %v6903_v19 = vpop.eup %6902  ;;  %5904 = vmatprep.mubr.bf16.mxu0 %v2523_v27  ;;  %v2422_v63 = vsub.f32 %v6897_v15, %v6901_v20  ;;  %6928 = vpow2.f32 %v5560_v12  ;;  %v5862_v27 = vpop.f32.mrf.mxu0 }
 0x208   : > { %v6905_v45 = vpop.eup %6904  ;;  %6930 = vpow2.f32 %v5561_v17 }
 0x209   : > { %v6907_v21 = vpop.eup %6906  ;;  %v2524_v50 = vpack.c.bf16 %v2422_v63, %v2421_v34  ;;  %6932 = vpow2.f32 %v5639_v39  ;;  %v3140_v63 = vadd.f32 %v5862_v27, %v8626_v29 }
 0x20a   : > { %v6909_v52 = vpop.eup %6908  ;;  %v2483_v55 = vsub.f32 %v6903_v19, %v6907_v21  ;;  %6934 = vpow2.f32 %v5434_v42 }
 0x20b   : > { %v6911_v35 = vpop.eup %6910  ;;  %5905 = vmatmul.mubr.bf16.gmra.mxu0 %v2524_v50  ;;  %v2484_v62 = vsub.f32 %v6905_v45, %v6909_v52  ;;  %6936 = vpow2.f32 %v5435_v26  ;;  %v2637_v26 = vpop.f32.mrf.mxu0  ;;  %v605_v50 = vadd.f32 %v8634_v49, %v8607_v8  ;;  %v606_v52 = vadd.f32 %v8641_v57, %v8607_v8 }
 0x20c   : > { %v6913_v5 = vpop.eup %6912  ;;  %6938 = vpow2.f32 %v5562_v46  ;;  %v3138_v46 = vadd.f32 %v8626_v29, %v2637_v26  ;;  %v1592_v49 = vadd.f32 %v8649_v1, %v8615_v56  ;;  %v607_v57 = vadd.f32 %v8657_v43, %v8607_v8 }
 0x20d   : > { %v6915_v38 = vpop.eup %6914  ;;  %v2555_v41 = vpack.c.bf16 %v2484_v62, %v2483_v55  ;;  %6940 = vpow2.f32 %v5563_v6  ;;  %v1591_v62 = vadd.f32 %v8645_v10, %v8615_v56  ;;  %v608_v10 = vadd.f32 %v8664_v28, %v8607_v8 }
 0x20e   : > { %v6917_v14 = vpop.eup %6916  ;;  %v2485_v0 = vsub.f32 %v6911_v35, %v6915_v38  ;;  %6942 = vpow2.f32 %v5700_v58  ;;  %v5642_v35 = vmul.f32 -1.442695, %v3140_v63  ;;  %v5640_v38 = vmul.f32 -1.442695, %v3138_v46 }
 0x20f   : > { %v6919_v16 = vpop.eup %6918  ;;  %5968 = vmatprep.mubr.bf16.mxu1 %v2555_v41  ;;  %v2486_v18 = vsub.f32 %v6913_v5, %v6917_v14  ;;  %6944 = vpow2.f32 %v5637_v3  ;;  %v5863_v3 = vpop.f32.mrf.mxu0  ;;  %v1593_v1 = vadd.f32 %v8668_v33, %v8615_v56  ;;  %v1594_v43 = vadd.f32 %v8672_v24, %v8615_v56 }
 0x210   : > { %v6921_v61 = vpop.eup %6920  ;;  %v3648_v25 = vadd.f32 1.0, %v6919_v16  ;;  %6946 = vpow2.f32 %v5703_v9 }
 0x211   : > { %v6923_v32 = vpop.eup %6922  ;;  %v2556_v30 = vpack.c.bf16 %v2486_v18, %v2485_v0  ;;  %v3646_v23 = vadd.f32 1.0, %v6921_v61  ;;  %6948 = vpow2.f32 %v5701_v11  ;;  %v5496_v11 = vmul.f32 -1.442695, %v605_v50  ;;  %v2640_v61 = vpop.f32.mrf.mxu0 }
 0x212   : > { %v6925_v53 = vpop.eup %6924  ;;  %6950 = vrcp.f32 %v3648_v25  ;;  %v3712_v59 = vadd.f32 1.0, %v6923_v32  ;;  %v5497_v0 = vmul.f32 -1.442695, %v606_v52  ;;  %v5624_v18 = vmul.f32 -1.442695, %v1591_v62 }
 0x213   : > { %v6927_v12 = vpop.eup %6926  ;;  %5969 = vmatmul.mubr.bf16.gmra.mxu1 %v2556_v30  ;;  %6952 = vrcp.f32 %v3646_v23  ;;  %v1053_v54 = vadd.f32 1.0, %v6925_v53  ;;  %v5625_v32 = vmul.f32 -1.442695, %v1592_v49  ;;  %v5498_v23 = vmul.f32 -1.442695, %v607_v57 }
 0x214   : > { %v6929_v15 = vpop.eup %6928  ;;  %6954 = vrcp.f32 %v3712_v59  ;;  %v1054_v17 = vadd.f32 1.0, %v6927_v12  ;;  %v3141_v53 = vadd.f32 %v5863_v3, %v8626_v29  ;;  %v5499_v12 = vmul.f32 -1.442695, %v608_v10 }
 0x215   : > { %v6931_v22 = vpop.eup %6930  ;;  %6956 = vrcp.f32 %v1053_v54  ;;  %v2039_v36 = vadd.f32 1.0, %v6929_v15  ;;  %v3139_v54 = vadd.f32 %v8626_v29, %v2640_v61  ;;  %v5926_v15 = vpop.f32.mrf.mxu1 }
 0x216   : > { %v6933_v60 = vpop.eup %6932  ;;  %6958 = vrcp.f32 %v1054_v17  ;;  %v2040_v40 = vadd.f32 1.0, %v6931_v22  ;;  %v5626_v22 = vmul.f32 -1.442695, %v1593_v1 }
 0x217   : > { %v6935_v39 = vpop.eup %6934  ;;  %6960 = vrcp.f32 %v2039_v36  ;;  %v3649_v20 = vadd.f32 1.0, %v6933_v60  ;;  %v3204_v36 = vadd.f32 %v5926_v15, %v8626_v29  ;;  %v5627_v60 = vmul.f32 -1.442695, %v1594_v43  ;;  %v2893_v1 = vpop.f32.mrf.mxu1 }
 0x218   : > { %v6937_v34 = vpop.eup %6936  ;;  %6962 = vrcp.f32 %v2040_v40  ;;  %v1055_v42 = vadd.f32 1.0, %v6935_v39  ;;  %v8704_v40 = vld [vmem:[%s9474_s2 + $0x40] sm:$0xff] }
 0x219   : > { %v6939_v31 = vpop.eup %6938  ;;  %6964 = vrcp.f32 %v3649_v20  ;;  %v1056_v7 = vadd.f32 1.0, %v6937_v34  ;;  %v545_v27 = vadd.f32 %v8704_v40, %v8583_v13  ;;  %v5643_v34 = vmul.f32 -1.442695, %v3141_v53  ;;  %v8719_v53 = vld [vmem:[#allocation8 + $0x48] sm:$0xff] }
 0x21a   : > { %v6941_v37 = vpop.eup %6940  ;;  %6966 = vrcp.f32 %v1055_v42  ;;  %v2041_v19 = vadd.f32 1.0, %v6939_v31  ;;  %v8711_v42 = vld [vmem:[%s9474_s2 + $0x48] sm:$0xff] }
 0x21b   : > { %v6943_v44 = vpop.eup %6942  ;;  %6968 = vrcp.f32 %v1056_v7  ;;  %v2042_v45 = vadd.f32 1.0, %v6941_v37  ;;  %v546_v31 = vadd.f32 %v8711_v42, %v8583_v13  ;;  %v5641_v37 = vmul.f32 -1.442695, %v3139_v54  ;;  %v5927_v54 = vpop.f32.mrf.mxu1 }
 0x21c   : > { %v6945_v48 = vpop.eup %6944  ;;  %6970 = vrcp.f32 %v2041_v19  ;;  %v3710_v21 = vadd.f32 1.0, %v6943_v44  ;;  %v8715_v19 = vld [vmem:[#allocation8 + $0x40] sm:$0xff] }
 0x21d   : > { %v6947_v6 = vpop.eup %6946  ;;  %6972 = vrcp.f32 %v2042_v45  ;;  %v3647_v51 = vadd.f32 1.0, %v6945_v48  ;;  %v1531_v63 = vadd.f32 %v8715_v19, %v8586_v47  ;;  %v5706_v45 = vmul.f32 -1.442695, %v3204_v36 }
 0x21e   : > { %v6949_v55 = vpop.eup %6948  ;;  %6974 = vrcp.f32 %v3710_v21  ;;  %v3713_v58 = vadd.f32 1.0, %v6947_v6  ;;  %v5436_v21 = vmul.f32 -1.442695, %v545_v27  ;;  %v5437_v6 = vmul.f32 -1.442695, %v546_v31 }
 0x21f   : > { %v6951_v5 = vpop.eup %6950  ;;  %6976 = vrcp.f32 %v3647_v51  ;;  %v3711_v9 = vadd.f32 1.0, %v6949_v55  ;;  %v5564_v55 = vmul.f32 -1.442695, %v1531_v63  ;;  %v8738_v63 = vld [vmem:[#allocation8 + $0x50] sm:$0xff] }
 0x220   : > { %v6953_v41 = vpop.eup %6952  ;;  %6978 = vrcp.f32 %v3713_v58  ;;  %4165 = vperm.xlu1 %6082, %v6951_v5  }
 0x221   : > { %v6955_v14 = vpop.eup %6954  ;;  %6980 = vrcp.f32 %v3711_v9  ;;  %4159 = vperm.xlu0 %6083, %v6953_v41  }
 0x222   : > { %v6957_v16 = vpop.eup %6956  ;;  %6982 = vpow2.f32 %v5642_v35 }
 0x223   : > { %v6959_v25 = vpop.eup %6958  ;;  %6984 = vpow2.f32 %v5640_v38 }
 0x224   : > { %v6961_v30 = vpop.eup %6960  ;;  %6986 = vpow2.f32 %v5496_v11 }
 0x225   : > { %v6963_v28 = vpop.eup %6962  ;;  %v2423_v59 = vsub.f32 %v6957_v16, %v6961_v30  ;;  %6988 = vpow2.f32 %v5497_v0  ;;  %4357 = vperm.xlu0 %6083, %v6955_v14  }
 0x226   : > { %v6965_v33 = vpop.eup %6964  ;;  %v2424_v17 = vsub.f32 %v6959_v25, %v6963_v28  ;;  %6990 = vpow2.f32 %v5624_v18  ;;  %v1532_v28 = vadd.f32 %v8719_v53, %v8586_v47 }
 0x227   : > { %v6967_v24 = vpop.eup %6966  ;;  %6992 = vpow2.f32 %v5625_v32  ;;  %4168 = vperm.xlu1 %6082, %v6965_v33  }
 0x228   : > { %v6969_v39 = vpop.eup %6968  ;;  %v2525_v20 = vpack.c.bf16 %v2424_v17, %v2423_v59  ;;  %6994 = vpow2.f32 %v5498_v23  ;;  %v3202_v17 = vadd.f32 %v8626_v29, %v2893_v1 }
 0x229   : > { %v6971_v7 = vpop.eup %6970  ;;  %6996 = vpow2.f32 %v5499_v12 }
 0x22a   : > { %v6973_v26 = vpop.eup %6972  ;;  %5908 = vmatprep.mubr.bf16.mxu0 %v2525_v20  ;;  %v2425_v44 = vsub.f32 %v6967_v24, %v6971_v7  ;;  %6998 = vpow2.f32 %v5626_v22  ;;  %v8727_v24 = vld [vmem:[%s9474_s2 + $0x50] sm:$0xff]  ;;  %v5565_v20 = vmul.f32 -1.442695, %v1532_v28 }
 0x22b   : > { %v6975_v46 = vpop.eup %6974  ;;  %v2426_v48 = vsub.f32 %v6969_v39, %v6973_v26  ;;  %7000 = vpow2.f32 %v5627_v60  ;;  %v547_v60 = vadd.f32 %v8727_v24, %v8583_v13  ;;  %v1533_v26 = vadd.f32 %v8738_v63, %v8586_v47 }
 0x22c   : > { %v6977_v50 = vpop.eup %6976  ;;  %7002 = vpow2.f32 %v5643_v34  ;;  %4351 = vperm.xlu0 %6083, %v6975_v46   ;;  %v8734_v34 = vld [vmem:[%s9474_s2 + $0x58] sm:$0xff] }
 0x22d   : > { %v6979_v51 = vpop.eup %6978  ;;  %v2526_v52 = vpack.c.bf16 %v2426_v48, %v2425_v44  ;;  %7004 = vpow2.f32 %v5641_v37  ;;  %v548_v31 = vadd.f32 %v8734_v34, %v8583_v13  ;;  %v2896_v44 = vpop.f32.mrf.mxu1 }
 0x22e   : > { %v6981_v58 = vpop.eup %6980  ;;  %7006 = vpow2.f32 %v5706_v45  ;;  %4360 = vperm.xlu1 %6082, %v6979_v51   ;;  %v5866_v45 = vpop.f32.mrf.mxu0 }
 0x22f   : > { %v6983_v35 = vpop.eup %6982  ;;  %5909 = vmatmul.mubr.bf16.gmra.mxu0 %v2526_v52  ;;  %7008 = vpow2.f32 %v5436_v21  ;;  %v5704_v21 = vmul.f32 -1.442695, %v3202_v17  ;;  %v5438_v52 = vmul.f32 -1.442695, %v547_v60 }
 0x230   : > { %v6985_v62 = vpop.eup %6984  ;;  %v3652_v3 = vadd.f32 1.0, %v6983_v35  ;;  %7010 = vpow2.f32 %v5437_v6  ;;  %4162 = vperm.xlu0 %6083, %v6977_v50   ;;  %v8742_v50 = vld [vmem:[#allocation8 + $0x58] sm:$0xff]  ;;  %v5439_v35 = vmul.f32 -1.442695, %v548_v31 }
 0x231   : > { %v6987_v5 = vpop.eup %6986  ;;  %v3650_v9 = vadd.f32 1.0, %v6985_v62  ;;  %7012 = vpow2.f32 %v5564_v55  ;;  %v1534_v6 = vadd.f32 %v8742_v50, %v8586_v47  ;;  %v3205_v55 = vadd.f32 %v5927_v54, %v8626_v29 }
 0x232   : > { %v6989_v38 = vpop.eup %6988  ;;  %7014 = vrcp.f32 %v3652_v3  ;;  %v1117_v49 = vadd.f32 1.0, %v6987_v5  ;;  %4354 = vperm.xlu1 %6082, %v6981_v58   ;;  %v3203_v62 = vadd.f32 %v8626_v29, %v2896_v44  ;;  %v5566_v5 = vmul.f32 -1.442695, %v1533_v26 }
 0x233   : > { %v6991_v41 = vpop.eup %6990  ;;  %7016 = vrcp.f32 %v3650_v9  ;;  %v1118_v11 = vadd.f32 1.0, %v6989_v38  ;;  %v3144_v9 = vadd.f32 %v5866_v45, %v8626_v29  ;;  %v2653_v38 = vpop.f32.mrf.mxu0 }
 0x234   : > { %v6993_v57 = vpop.eup %6992  ;;  %7018 = vrcp.f32 %v1117_v49  ;;  %v2103_v14 = vadd.f32 1.0, %v6991_v41  ;;  %v5567_v41 = vmul.f32 -1.442695, %v1534_v6  ;;  %v5705_v1 = vmul.f32 -1.442695, %v3203_v62 }
 0x235   : > { %v6995_v0 = vpop.eup %6994  ;;  %7020 = vrcp.f32 %v1118_v11  ;;  %v2104_v10 = vadd.f32 1.0, %v6993_v57  ;;  %v3142_v11 = vadd.f32 %v8626_v29, %v2653_v38 }
 0x236   : > { %v6997_v16 = vpop.eup %6996  ;;  %7022 = vrcp.f32 %v2103_v14  ;;  %v1119_v18 = vadd.f32 1.0, %v6995_v0  ;;  %v5707_v0 = vmul.f32 -1.442695, %v3205_v55 }
 0x237   : > { %v6999_v61 = vpop.eup %6998  ;;  %7024 = vrcp.f32 %v2104_v10  ;;  %v1120_v25 = vadd.f32 1.0, %v6997_v16  ;;  %v609_v10 = vadd.f32 %v8704_v40, %v8607_v8  ;;  %v5644_v28 = vmul.f32 -1.442695, %v3142_v11 }
 0x238   : > { %v7001_v32 = vpop.eup %7000  ;;  %7026 = vrcp.f32 %v1119_v18  ;;  %v2105_v43 = vadd.f32 1.0, %v6999_v61  ;;  %v610_v61 = vadd.f32 %v8711_v42, %v8607_v8  ;;  %v1596_v40 = vadd.f32 %v8719_v53, %v8615_v56 }
 0x239   : > { %v7003_v30 = vpop.eup %7002  ;;  %7028 = vrcp.f32 %v1120_v25  ;;  %v2106_v23 = vadd.f32 1.0, %v7001_v32  ;;  %v5646_v32 = vmul.f32 -1.442695, %v3144_v9  ;;  %v5500_v54 = vmul.f32 -1.442695, %v609_v10 }
 0x23a   : > { %v7005_v59 = vpop.eup %7004  ;;  %7030 = vrcp.f32 %v2105_v43  ;;  %v3653_v12 = vadd.f32 1.0, %v7003_v30  ;;  %v1595_v43 = vadd.f32 %v8715_v19, %v8615_v56  ;;  %v611_v42 = vadd.f32 %v8727_v24, %v8607_v8 }
 0x23b   : > { %v7007_v15 = vpop.eup %7006  ;;  %7032 = vrcp.f32 %v2106_v23  ;;  %v3651_v33 = vadd.f32 1.0, %v7005_v59  ;;  %v5501_v17 = vmul.f32 -1.442695, %v610_v61  ;;  %v1597_v11 = vadd.f32 %v8738_v63, %v8615_v56 }
 0x23c   : > { %v7009_v22 = vpop.eup %7008  ;;  %7034 = vrcp.f32 %v3653_v12  ;;  %v3716_v36 = vadd.f32 1.0, %v7007_v15  ;;  %v5502_v24 = vmul.f32 -1.442695, %v611_v42 }
 0x23d   : > { %v7011_v27 = vpop.eup %7010  ;;  %7036 = vrcp.f32 %v3651_v33  ;;  %v1057_v39 = vadd.f32 1.0, %v7009_v22  ;;  %v5628_v22 = vmul.f32 -1.442695, %v1595_v43 }
 0x23e   : > { %v7013_v7 = vpop.eup %7012  ;;  %7038 = vrcp.f32 %v3716_v36  ;;  %v1058_v37 = vadd.f32 1.0, %v7011_v27  ;;  %v612_v36 = vadd.f32 %v8734_v34, %v8607_v8  ;;  %v5629_v27 = vmul.f32 -1.442695, %v1596_v40 }
 0x23f   : > { %v7015_v46 = vpop.eup %7014  ;;  %7040 = vrcp.f32 %v1057_v39  ;;  %v2043_v48 = vadd.f32 1.0, %v7013_v7 }
 0x240   : > { %v7017_v51 = vpop.eup %7016  ;;  %7042 = vrcp.f32 %v1058_v37  ;;  %4177 = vperm.xlu0 %6083, %v7015_v46   ;;  %v5503_v7 = vmul.f32 -1.442695, %v612_v36 }
 0x241   : > { %v7019_v58 = vpop.eup %7018  ;;  %7044 = vpow2.f32 %v5565_v20 }
 0x242   : > { %v7021_v3 = vpop.eup %7020  ;;  %7046 = vrcp.f32 %v2043_v48 }
 0x243   : > { %v7023_v49 = vpop.eup %7022  ;;  %7048 = vpow2.f32 %v5704_v21 }
 0x244   : > { %v7025_v57 = vpop.eup %7024  ;;  %v2487_v14 = vsub.f32 %v7019_v58, %v7023_v49  ;;  %7050 = vpow2.f32 %v5438_v52  ;;  %4171 = vperm.xlu0 %6083, %v7017_v51  }
 0x245   : > { %v7027_v16 = vpop.eup %7026  ;;  %v2488_v18 = vsub.f32 %v7021_v3, %v7025_v57  ;;  %7052 = vpow2.f32 %v5439_v35  ;;  %v5867_v3 = vpop.f32.mrf.mxu0 }
 0x246   : > { %v7029_v25 = vpop.eup %7028  ;;  %7054 = vpow2.f32 %v5566_v5  ;;  %v5930_v5 = vpop.f32.mrf.mxu1  ;;  %v3145_v63 = vadd.f32 %v5867_v3, %v8626_v29 }
 0x247   : > { %v7031_v30 = vpop.eup %7030  ;;  %v2557_v23 = vpack.c.bf16 %v2488_v18, %v2487_v14  ;;  %7056 = vpow2.f32 %v5567_v41  ;;  %v3208_v42 = vadd.f32 %v5930_v5, %v8626_v29 }
 0x248   : > { %v7033_v59 = vpop.eup %7032  ;;  %v2489_v12 = vsub.f32 %v7027_v16, %v7031_v30  ;;  %7058 = vpow2.f32 %v5707_v0  ;;  %v2656_v16 = vpop.f32.mrf.mxu0  ;;  %v5630_v30 = vmul.f32 -1.442695, %v1597_v11 }
 0x249   : > { %v7035_v15 = vpop.eup %7034  ;;  %5972 = vmatprep.mubr.bf16.mxu1 %v2557_v23  ;;  %v2490_v33 = vsub.f32 %v7029_v25, %v7033_v59  ;;  %7060 = vpow2.f32 %v5705_v1  ;;  %v2909_v18 = vpop.f32.mrf.mxu1  ;;  %v1598_v25 = vadd.f32 %v8742_v50, %v8615_v56  ;;  %v3143_v59 = vadd.f32 %v8626_v29, %v2656_v16 }
 0x24a   : > { %v7037_v19 = vpop.eup %7036  ;;  %7062 = vpow2.f32 %v5646_v32  ;;  %4180 = vperm.xlu1 %6082, %v7035_v15  }
 0x24b   : > { %v7039_v53 = vpop.eup %7038  ;;  %v2558_v60 = vpack.c.bf16 %v2490_v33, %v2489_v12  ;;  %7064 = vpow2.f32 %v5644_v28  ;;  %v5931_v50 = vpop.f32.mrf.mxu1 }
 0x24c   : > { %v8762_v39 = vpop.eup %7040  ;;  %7066 = vpow2.f32 %v5500_v54  ;;  %4369 = vperm.xlu0 %6083, %v7039_v53   ;;  %v5647_v53 = vmul.f32 -1.442695, %v3145_v63  ;;  %v8821_v63 = vld [vmem:[#allocation8 + $0x78] sm:$0xff] }
 0x24d   : > { %v8764_v20 = vpop.eup %7042  ;;  %5973 = vmatmul.mubr.bf16.gmra.mxu1 %v2558_v60  ;;  %7068 = vpow2.f32 %v5501_v17  ;;  %v5631_v17 = vmul.f32 -1.442695, %v1598_v25  ;;  %v3209_v60 = vadd.f32 %v5931_v50, %v8626_v29 }
 0x24e   : > { %v7045_v31 = vpop.eup %7044  ;;  %7070 = vpow2.f32 %v5628_v22  ;;  %4174 = vperm.xlu1 %6082, %v7037_v19   ;;  %v3206_v19 = vadd.f32 %v8626_v29, %v2909_v18 }
 0x24f   : > { %v8766_v37 = vpop.eup %7046  ;;  %v2044_v34 = vadd.f32 1.0, %v7045_v31  ;;  %7072 = vpow2.f32 %v5629_v27  ;;  %v8783_v31 = vld [vmem:[%s9474_s2 + $0x60] sm:$0xff] }
 0x250   : > { %v7049_v26 = vpop.eup %7048  ;;  %7074 = vpow2.f32 %v5502_v24  ;;  %v2427_v28 = vsub.f32 %v8762_v39, %v8766_v37  ;;  %v5645_v24 = vmul.f32 -1.442695, %v3143_v59  ;;  %v5710_v37 = vmul.f32 -1.442695, %v3208_v42 }
 0x251   : > { %v7051_v44 = vpop.eup %7050  ;;  %7076 = vrcp.f32 %v2044_v34  ;;  %v3714_v45 = vadd.f32 1.0, %v7049_v26  ;;  %v8790_v34 = vld [vmem:[%s9474_s2 + $0x68] sm:$0xff] }
 0x252   : > { %v7053_v46 = vpop.eup %7052  ;;  %v1059_v48 = vadd.f32 1.0, %v7051_v44  ;;  %7078 = vpow2.f32 %v5503_v7  ;;  %v550_v26 = vadd.f32 %v8790_v34, %v8583_v13  ;;  %v2912_v44 = vpop.f32.mrf.mxu1 }
 0x253   : > { %v7055_v21 = vpop.eup %7054  ;;  %7080 = vrcp.f32 %v3714_v45  ;;  %v1060_v6 = vadd.f32 1.0, %v7053_v46  ;;  %v5708_v46 = vmul.f32 -1.442695, %v3206_v19  ;;  %v3207_v5 = vadd.f32 %v8626_v29, %v2912_v44 }
 0x254   : > { %v7057_v51 = vpop.eup %7056  ;;  %7082 = vrcp.f32 %v1059_v48  ;;  %v2045_v52 = vadd.f32 1.0, %v7055_v21  ;;  %v8794_v48 = vld [vmem:[#allocation8 + $0x60] sm:$0xff] }
 0x255   : > { %v7059_v55 = vpop.eup %7058  ;;  %7084 = vrcp.f32 %v1060_v6  ;;  %v2046_v58 = vadd.f32 1.0, %v7057_v51  ;;  %v1535_v21 = vadd.f32 %v8794_v48, %v8586_v47 }
 0x256   : > { %v7061_v35 = vpop.eup %7060  ;;  %7086 = vrcp.f32 %v2045_v52  ;;  %v3717_v62 = vadd.f32 1.0, %v7059_v55  ;;  %v5711_v52 = vmul.f32 -1.442695, %v3209_v60  ;;  %v8798_v55 = vld [vmem:[#allocation8 + $0x68] sm:$0xff] }
 0x257   : > { %v7063_v9 = vpop.eup %7062  ;;  %7088 = vrcp.f32 %v2046_v58  ;;  %v3715_v38 = vadd.f32 1.0, %v7061_v35  ;;  %v1536_v58 = vadd.f32 %v8798_v55, %v8586_v47 }
 0x258   : > { %v7065_v49 = vpop.eup %7064  ;;  %7090 = vrcp.f32 %v3717_v62  ;;  %v3656_v41 = vadd.f32 1.0, %v7063_v9 }
 0x259   : > { %v7067_v57 = vpop.eup %7066  ;;  %7092 = vrcp.f32 %v3715_v38  ;;  %v3654_v14 = vadd.f32 1.0, %v7065_v49  ;;  %v5441_v38 = vmul.f32 -1.442695, %v550_v26  ;;  %v8806_v49 = vld [vmem:[%s9474_s2 + $0x70] sm:$0xff]  ;;  %v5569_v18 = vmul.f32 -1.442695, %v1536_v58 }
 0x25a   : > { %v7069_v0 = vpop.eup %7068  ;;  %7094 = vrcp.f32 %v3656_v41  ;;  %v1121_v10 = vadd.f32 1.0, %v7067_v57  ;;  %v551_v41 = vadd.f32 %v8806_v49, %v8583_v13 }
 0x25b   : > { %v7071_v1 = vpop.eup %7070  ;;  %7096 = vrcp.f32 %v3654_v14  ;;  %v1122_v61 = vadd.f32 1.0, %v7069_v0  ;;  %v5568_v14 = vmul.f32 -1.442695, %v1535_v21  ;;  %v8813_v0 = vld [vmem:[%s9474_s2 + $0x78] sm:$0xff] }
 0x25c   : > { %v7073_v32 = vpop.eup %7072  ;;  %7098 = vrcp.f32 %v1121_v10  ;;  %v2107_v43 = vadd.f32 1.0, %v7071_v1  ;;  %v552_v10 = vadd.f32 %v8813_v0, %v8583_v13  ;;  %v8817_v1 = vld [vmem:[#allocation8 + $0x70] sm:$0xff] }
 0x25d   : > { %v7075_v23 = vpop.eup %7074  ;;  %7100 = vrcp.f32 %v1122_v61  ;;  %v2108_v40 = vadd.f32 1.0, %v7073_v32  ;;  %v1537_v61 = vadd.f32 %v8817_v1, %v8586_v47  ;;  %v5709_v32 = vmul.f32 -1.442695, %v3207_v5 }
 0x25e   : > { %v7077_v12 = vpop.eup %7076  ;;  %7102 = vrcp.f32 %v2107_v43  ;;  %v1123_v54 = vadd.f32 1.0, %v7075_v23 }
 0x25f   : > { %v7079_v15 = vpop.eup %7078  ;;  %v2428_v33 = vsub.f32 %v8764_v20, %v7077_v12  ;;  %7104 = vrcp.f32 %v2108_v40  ;;  %v549_v20 = vadd.f32 %v8783_v31, %v8583_v13  ;;  %v1538_v13 = vadd.f32 %v8821_v63, %v8586_v47 }
 0x260   : > { %v7081_v22 = vpop.eup %7080  ;;  %v1124_v36 = vadd.f32 1.0, %v7079_v15  ;;  %7106 = vrcp.f32 %v1123_v54  ;;  %v5570_v12 = vmul.f32 -1.442695, %v1537_v61 }
 0x261   : > { %v7083_v27 = vpop.eup %7082  ;;  %v2527_v39 = vpack.c.bf16 %v2428_v33, %v2427_v28  ;;  %7108 = vpow2.f32 %v5630_v30  ;;  %4363 = vperm.xlu0 %6083, %v7081_v22   ;;  %v5440_v3 = vmul.f32 -1.442695, %v549_v20  ;;  %v5442_v30 = vmul.f32 -1.442695, %v551_v41 }
 0x262   : > { %v7085_v7 = vpop.eup %7084  ;;  %7110 = vrcp.f32 %v1124_v36  ;;  %v5443_v28 = vmul.f32 -1.442695, %v552_v10  ;;  %v5571_v15 = vmul.f32 -1.442695, %v1538_v13  ;;  %v614_v13 = vadd.f32 %v8790_v34, %v8607_v8 }
 0x263   : > { %v7087_v45 = vpop.eup %7086  ;;  %5912 = vmatprep.mubr.bf16.mxu0 %v2527_v39  ;;  %7112 = vpow2.f32 %v5631_v17 }
 0x264   : > { %v7089_v6 = vpop.eup %7088  ;;  %v2429_v51 = vsub.f32 %v7083_v27, %v7087_v45  ;;  %7114 = vpow2.f32 %v5647_v53 }
 0x265   : > { %v7091_v35 = vpop.eup %7090  ;;  %v2430_v62 = vsub.f32 %v7085_v7, %v7089_v6  ;;  %7116 = vpow2.f32 %v5645_v24  ;;  %v5870_v24 = vpop.f32.mrf.mxu0 }
 0x266   : > { %v7093_v9 = vpop.eup %7092  ;;  %7118 = vpow2.f32 %v5710_v37  ;;  %4372 = vperm.xlu1 %6082, %v7091_v35  }
 0x267   : > { %v7095_v11 = vpop.eup %7094  ;;  %v2528_v57 = vpack.c.bf16 %v2430_v62, %v2429_v51  ;;  %7120 = vpow2.f32 %v5708_v46  ;;  %v2669_v6 = vpop.f32.mrf.mxu0  ;;  %v3148_v62 = vadd.f32 %v5870_v24, %v8626_v29 }
 0x268   : > { %v7097_v16 = vpop.eup %7096  ;;  %7122 = vpow2.f32 %v5711_v52  ;;  %4189 = vperm.xlu0 %6083, %v7095_v11   ;;  %v3146_v41 = vadd.f32 %v8626_v29, %v2669_v6 }
 0x269   : > { %v7099_v25 = vpop.eup %7098  ;;  %5913 = vmatmul.mubr.bf16.gmra.mxu0 %v2528_v57  ;;  %7124 = vpow2.f32 %v5440_v3  ;;  %v5871_v11 = vpop.f32.mrf.mxu0 }
 0x26a   : > { %v7101_v43 = vpop.eup %7100  ;;  %7126 = vpow2.f32 %v5441_v38  ;;  %4366 = vperm.xlu1 %6082, %v7093_v9   ;;  %v5934_v57 = vpop.f32.mrf.mxu1 }
 0x26b   : > { %v7103_v23 = vpop.eup %7102  ;;  %7128 = vpow2.f32 %v5568_v14 }
 0x26c   : > { %v7105_v40 = vpop.eup %7104  ;;  %v2491_v59 = vsub.f32 %v7099_v25, %v7103_v23  ;;  %7130 = vpow2.f32 %v5569_v18  ;;  %4183 = vperm.xlu0 %6083, %v7097_v16   ;;  %v3149_v16 = vadd.f32 %v5871_v11, %v8626_v29  ;;  %v5650_v25 = vmul.f32 -1.442695, %v3148_v62 }
 0x26d   : > { %v8825_v54 = vpop.eup %7106  ;;  %v2492_v42 = vsub.f32 %v7101_v43, %v7105_v40  ;;  %7132 = vpow2.f32 %v5709_v32  ;;  %v613_v32 = vadd.f32 %v8783_v31, %v8607_v8  ;;  %v5648_v40 = vmul.f32 -1.442695, %v3146_v41 }
 0x26e   : > { %v7109_v50 = vpop.eup %7108  ;;  %7134 = vpow2.f32 %v5442_v30  ;;  %v1600_v31 = vadd.f32 %v8798_v55, %v8615_v56 }
 0x26f   : > { %v8827_v33 = vpop.eup %7110  ;;  %v2559_v17 = vpack.c.bf16 %v2492_v42, %v2491_v59  ;;  %v2109_v47 = vadd.f32 1.0, %v7109_v50  ;;  %7136 = vpow2.f32 %v5443_v28  ;;  %v1599_v59 = vadd.f32 %v8794_v48, %v8615_v56 }
 0x270   : > { %v7113_v19 = vpop.eup %7112  ;;  %7138 = vpow2.f32 %v5570_v12  ;;  %v2925_v12 = vpop.f32.mrf.mxu1  ;;  %v5504_v34 = vmul.f32 -1.442695, %v613_v32  ;;  %v616_v48 = vadd.f32 %v8813_v0, %v8607_v8  ;;  %v5633_v24 = vmul.f32 -1.442695, %v1600_v31 }
 0x271   : > { %v7115_v22 = vpop.eup %7114  ;;  %5976 = vmatprep.mubr.bf16.mxu1 %v2559_v17  ;;  %v2110_v36 = vadd.f32 1.0, %v7113_v19  ;;  %7140 = vrcp.f32 %v2109_v47  ;;  %v5632_v55 = vmul.f32 -1.442695, %v1599_v59 }
 0x272   : > { %v7117_v53 = vpop.eup %7116  ;;  %v3657_v60 = vadd.f32 1.0, %v7115_v22  ;;  %7142 = vpow2.f32 %v5571_v15  ;;  %v5651_v15 = vmul.f32 -1.442695, %v3149_v16  ;;  %v5505_v22 = vmul.f32 -1.442695, %v614_v13 }
 0x273   : > { %v7119_v27 = vpop.eup %7118  ;;  %7144 = vrcp.f32 %v2110_v36  ;;  %v3655_v39 = vadd.f32 1.0, %v7117_v53  ;;  %v2672_v36 = vpop.f32.mrf.mxu0 }
 0x274   : > { %v7121_v20 = vpop.eup %7120  ;;  %7146 = vrcp.f32 %v3657_v60  ;;  %v3720_v7 = vadd.f32 1.0, %v7119_v27  ;;  %v5935_v27 = vpop.f32.mrf.mxu1  ;;  %v3147_v0 = vadd.f32 %v8626_v29, %v2672_v36 }
 0x275   : > { %v7123_v37 = vpop.eup %7122  ;;  %7148 = vrcp.f32 %v3655_v39  ;;  %v3718_v26 = vadd.f32 1.0, %v7121_v20  ;;  %v8854_v6 = vpop.f32.mrf.mxu0 }
 0x276   : > { %v7125_v44 = vpop.eup %7124  ;;  %7150 = vrcp.f32 %v3720_v7  ;;  %v3721_v45 = vadd.f32 1.0, %v7123_v37  ;;  %v5507_v37 = vmul.f32 -1.442695, %v616_v48 }
 0x277   : > { %v7127_v46 = vpop.eup %7126  ;;  %7152 = vrcp.f32 %v3718_v26  ;;  %v1061_v21 = vadd.f32 1.0, %v7125_v44  ;;  %v3212_v26 = vadd.f32 %v5934_v57, %v8626_v29 }
 0x278   : > { %v7129_v51 = vpop.eup %7128  ;;  %7154 = vrcp.f32 %v3721_v45  ;;  %v1062_v52 = vadd.f32 1.0, %v7127_v46  ;;  %v3210_v45 = vadd.f32 %v8626_v29, %v2925_v12  ;;  %v2928_v46 = vpop.f32.mrf.mxu1 }
 0x279   : > { %v7131_v58 = vpop.eup %7130  ;;  %7156 = vrcp.f32 %v1061_v21  ;;  %v2047_v35 = vadd.f32 1.0, %v7129_v51  ;;  %v3213_v21 = vadd.f32 %v5935_v27, %v8626_v29 }
 0x27a   : > { %v7133_v3 = vpop.eup %7132  ;;  %7158 = vrcp.f32 %v1062_v52  ;;  %v2048_v5 = vadd.f32 1.0, %v7131_v58  ;;  %v5649_v58 = vmul.f32 -1.442695, %v3147_v0 }
 0x27b   : > { %v7135_v9 = vpop.eup %7134  ;;  %7160 = vrcp.f32 %v2047_v35  ;;  %v3719_v38 = vadd.f32 1.0, %v7133_v3  ;;  %v5714_v3 = vmul.f32 -1.442695, %v3212_v26  ;;  %v5715_v57 = vmul.f32 -1.442695, %v3213_v21 }
 0x27c   : > { %v7137_v14 = vpop.eup %7136  ;;  %7162 = vrcp.f32 %v2048_v5  ;;  %v1063_v10 = vadd.f32 1.0, %v7135_v9  ;;  %v3211_v5 = vadd.f32 %v8626_v29, %v2928_v46 }
 0x27d   : > { %v7139_v18 = vpop.eup %7138  ;;  %7164 = vrcp.f32 %v3719_v38  ;;  %v1064_v61 = vadd.f32 1.0, %v7137_v14  ;;  %v5712_v38 = vmul.f32 -1.442695, %v3210_v45  ;;  %v2685_v14 = vpop.f32.mrf.mxu0 }
 0x27e   : > { %v7141_v43 = vpop.eup %7140  ;;  %7166 = vrcp.f32 %v1063_v10  ;;  %v2049_v30 = vadd.f32 1.0, %v7139_v18 }
 0x27f   : > { %v7143_v23 = vpop.eup %7142  ;;  %v2493_v28 = vsub.f32 %v8825_v54, %v7141_v43  ;;  %7168 = vrcp.f32 %v1064_v61  ;;  %v615_v54 = vadd.f32 %v8806_v49, %v8607_v8  ;;  %v1602_v49 = vadd.f32 %v8821_v63, %v8615_v56 }
 0x280   : > { %v7145_v42 = vpop.eup %7144  ;;  %v2050_v50 = vadd.f32 1.0, %v7143_v23  ;;  %7170 = vrcp.f32 %v2049_v30  ;;  %v5713_v61 = vmul.f32 -1.442695, %v3211_v5  ;;  %v5875_v23 = vpop.f32.mrf.mxu0 }
 0x281   : > { %v7147_v17 = vpop.eup %7146  ;;  %v2494_v47 = vsub.f32 %v8827_v33, %v7145_v42  ;;  %7172 = vpow2.f32 %v5650_v25  ;;  %v1601_v33 = vadd.f32 %v8817_v1, %v8615_v56  ;;  %v5506_v8 = vmul.f32 -1.442695, %v615_v54  ;;  %v8857_v25 = vpop.f32.mrf.mxu1 }
 0x282   : > { %v7149_v19 = vpop.eup %7148  ;;  %7174 = vrcp.f32 %v2050_v50  ;;  %4192 = vperm.xlu1 %6082, %v7147_v17   ;;  %v5635_v63 = vmul.f32 -1.442695, %v1602_v49  ;;  %v3152_v49 = vadd.f32 %v8854_v6, %v8626_v29  ;;  %v3153_v46 = vadd.f32 %v5875_v23, %v8626_v29 }
 0x283   : > { %v7151_v53 = vpop.eup %7150  ;;  %v2560_v60 = vpack.c.bf16 %v2494_v47, %v2493_v28  ;;  %7176 = vpow2.f32 %v5648_v40  ;;  %v5634_v44 = vmul.f32 -1.442695, %v1601_v33  ;;  %v2941_v50 = vpop.f32.mrf.mxu1 }
 0x284   : > { %v7153_v39 = vpop.eup %7152  ;;  %7178 = vpow2.f32 %v5651_v15  ;;  %4381 = vperm.xlu0 %6083, %v7151_v53   ;;  %v5654_v6 = vmul.f32 -1.442695, %v3152_v49 }
 0x285   : > { %v7155_v20 = vpop.eup %7154  ;;  %5977 = vmatmul.mubr.bf16.gmra.mxu1 %v2560_v60  ;;  %7180 = vpow2.f32 %v5504_v34  ;;  %v2688_v34 = vpop.f32.mrf.mxu0 }
 0x286   : > { %v7157_v7 = vpop.eup %7156  ;;  %7182 = vpow2.f32 %v5505_v22  ;;  %4186 = vperm.xlu1 %6082, %v7149_v19   ;;  %v5939_v36 = vpop.f32.mrf.mxu1 }
 0x287   : > { %v7159_v1 = vpop.eup %7158  ;;  %7184 = vpow2.f32 %v5632_v55  ;;  %v5878_v53 = vpop.f32.mrf.mxu0 }
 0x288   : > { %v7161_v56 = vpop.eup %7160  ;;  %7186 = vpow2.f32 %v5633_v24  ;;  %4375 = vperm.xlu0 %6083, %v7153_v39   ;;  %v2944_v0 = vpop.f32.mrf.mxu1 }
 0x289   : > { %v7163_v51 = vpop.eup %7162  ;;  %v2431_v52 = vsub.f32 %v7157_v7, %v7161_v56  ;;  %7188 = vpow2.f32 %v5506_v8  ;;  %v2701_v7 = vpop.f32.mrf.mxu0 }
 0x28a   : > { %v7165_v35 = vpop.eup %7164  ;;  %v2432_v62 = vsub.f32 %v7159_v1, %v7163_v51  ;;  %7190 = vpow2.f32 %v5507_v37  ;;  %4384 = vperm.xlu1 %6082, %v7155_v20   ;;  %v3150_v1 = vadd.f32 %v8626_v29, %v2685_v14  ;;  %v5942_v56 = vpop.f32.mrf.mxu1  ;;  %v3151_v51 = vadd.f32 %v8626_v29, %v2688_v34 }
 0x28b   : > { %v7167_v9 = vpop.eup %7166  ;;  %7192 = vpow2.f32 %v5634_v44  ;;  %v3154_v23 = vadd.f32 %v8626_v29, %v2701_v7 }
 0x28c   : > { %v7169_v41 = vpop.eup %7168  ;;  %v2529_v11 = vpack.c.bf16 %v2432_v62, %v2431_v52  ;;  %7194 = vpow2.f32 %v5635_v63  ;;  %v5879_v62 = vpop.f32.mrf.mxu0  ;;  %v5652_v5 = vmul.f32 -1.442695, %v3150_v1 }
 0x28d   : > { %v7171_v10 = vpop.eup %7170  ;;  %7196 = vpow2.f32 %v5649_v58  ;;  %v2957_v14 = vpop.f32.mrf.mxu1 }
 0x28e   : > { %v7173_v16 = vpop.eup %7172  ;;  %5916 = vmatprep.mubr.bf16.mxu0 %v2529_v11  ;;  %v2433_v18 = vsub.f32 %v7167_v9, %v7171_v10  ;;  %7198 = vpow2.f32 %v5714_v3  ;;  %4378 = vperm.xlu1 %6082, %v7165_v35   ;;  %v3216_v35 = vadd.f32 %v8857_v25, %v8626_v29  ;;  %v3214_v9 = vadd.f32 %v8626_v29, %v2941_v50 }
 0x28f   : > { %v7175_v32 = vpop.eup %7174  ;;  %v3660_v43 = vadd.f32 1.0, %v7173_v16  ;;  %7200 = vpow2.f32 %v5712_v38  ;;  %v5655_v11 = vmul.f32 -1.442695, %v3153_v46  ;;  %v5653_v16 = vmul.f32 -1.442695, %v3151_v51 }
 0x290   : > { %v7177_v30 = vpop.eup %7176  ;;  %v2434_v13 = vsub.f32 %v7169_v41, %v7175_v32  ;;  %7202 = vpow2.f32 %v5715_v57  ;;  %v3217_v57 = vadd.f32 %v5939_v36, %v8626_v29  ;;  %v5718_v25 = vmul.f32 -1.442695, %v3216_v35 }
 0x291   : > { %v7179_v28 = vpop.eup %7178  ;;  %7204 = vrcp.f32 %v3660_v43  ;;  %v3658_v40 = vadd.f32 1.0, %v7177_v30  ;;  %v3156_v32 = vadd.f32 %v5878_v53, %v8626_v29  ;;  %v2704_v43 = vpop.f32.mrf.mxu0 }
 0x292   : > { %v7181_v59 = vpop.eup %7180  ;;  %v2530_v12 = vpack.c.bf16 %v2434_v13, %v2433_v18  ;;  %v3661_v42 = vadd.f32 1.0, %v7179_v28  ;;  %7206 = vpow2.f32 %v5713_v61  ;;  %v3215_v18 = vadd.f32 %v8626_v29, %v2944_v0 }
 0x293   : > { %v7183_v15 = vpop.eup %7182  ;;  %7208 = vrcp.f32 %v3658_v40  ;;  %v1125_v31 = vadd.f32 1.0, %v7181_v59  ;;  %v5716_v13 = vmul.f32 -1.442695, %v3214_v9  ;;  %v5719_v40 = vmul.f32 -1.442695, %v3217_v57 }
 0x294   : > { %v7185_v17 = vpop.eup %7184  ;;  %5917 = vmatmul.mubr.bf16.gmra.mxu0 %v2530_v12  ;;  %7210 = vrcp.f32 %v3661_v42  ;;  %v1126_v47 = vadd.f32 1.0, %v7183_v15  ;;  %v3157_v59 = vadd.f32 %v5879_v62, %v8626_v29  ;;  %v5943_v12 = vpop.f32.mrf.mxu1  ;;  %v5717_v15 = vmul.f32 -1.442695, %v3215_v18 }
 0x295   : > { %v7187_v54 = vpop.eup %7186  ;;  %7212 = vrcp.f32 %v1125_v31  ;;  %v2111_v19 = vadd.f32 1.0, %v7185_v17  ;;  %v3155_v31 = vadd.f32 %v8626_v29, %v2704_v43  ;;  %v5658_v34 = vmul.f32 -1.442695, %v3156_v32 }
 0x296   : > { %v7189_v22 = vpop.eup %7188  ;;  %7214 = vrcp.f32 %v1126_v47  ;;  %v2112_v48 = vadd.f32 1.0, %v7187_v54  ;;  %v3220_v54 = vadd.f32 %v5942_v56, %v8626_v29 }
 0x297   : > { %v7191_v60 = vpop.eup %7190  ;;  %7216 = vrcp.f32 %v2111_v19  ;;  %v1127_v55 = vadd.f32 1.0, %v7189_v22  ;;  %v5656_v22 = vmul.f32 -1.442695, %v3154_v23  ;;  %v5657_v49 = vmul.f32 -1.442695, %v3155_v31 }
 0x298   : > { %v7193_v33 = vpop.eup %7192  ;;  %7218 = vrcp.f32 %v2112_v48  ;;  %v1128_v27 = vadd.f32 1.0, %v7191_v60  ;;  %v3218_v48 = vadd.f32 %v8626_v29, %v2957_v14  ;;  %v5659_v60 = vmul.f32 -1.442695, %v3157_v59 }
 0x299   : > { %v7195_v39 = vpop.eup %7194  ;;  %7220 = vrcp.f32 %v1127_v55  ;;  %v2113_v24 = vadd.f32 1.0, %v7193_v33  ;;  %v3221_v55 = vadd.f32 %v5943_v12, %v8626_v29  ;;  %v2960_v33 = vpop.f32.mrf.mxu1  ;;  %v5722_v0 = vmul.f32 -1.442695, %v3220_v54 }
 0x29a   : > { %v7197_v20 = vpop.eup %7196  ;;  %7222 = vrcp.f32 %v1128_v27  ;;  %v2114_v8 = vadd.f32 1.0, %v7195_v39  ;;  %v8876_v27 = vpop.f32.mrf.mxu0 }
 0x29b   : > { %v7199_v37 = vpop.eup %7198  ;;  %7224 = vrcp.f32 %v2113_v24  ;;  %v3659_v26 = vadd.f32 1.0, %v7197_v20  ;;  %v3160_v59 = vadd.f32 %v8876_v27, %v8626_v29 }
 0x29c   : > { %v7201_v44 = vpop.eup %7200  ;;  %7226 = vrcp.f32 %v2114_v8  ;;  %v3724_v45 = vadd.f32 1.0, %v7199_v37  ;;  %v5720_v37 = vmul.f32 -1.442695, %v3218_v48  ;;  %v2717_v46 = vpop.f32.mrf.mxu0 }
 0x29d   : > { %v7203_v63 = vpop.eup %7202  ;;  %7228 = vrcp.f32 %v3659_v26  ;;  %v3722_v21 = vadd.f32 1.0, %v7201_v44  ;;  %v3219_v26 = vadd.f32 %v8626_v29, %v2960_v33 }
 0x29e   : > { %v7205_v52 = vpop.eup %7204  ;;  %7230 = vrcp.f32 %v3724_v45  ;;  %v3725_v58 = vadd.f32 1.0, %v7203_v63  ;;  %v5723_v45 = vmul.f32 -1.442695, %v3221_v55 }
 0x29f   : > { %v7207_v3 = vpop.eup %7206  ;;  %7232 = vrcp.f32 %v3722_v21  ;;  %4201 = vperm.xlu0 %6083, %v7205_v52   ;;  %v5721_v51 = vmul.f32 -1.442695, %v3219_v26 }
 0x2a0   : > { %v7209_v38 = vpop.eup %7208  ;;  %7234 = vrcp.f32 %v3725_v58  ;;  %v3723_v41 = vadd.f32 1.0, %v7207_v3  ;;  %v5883_v58 = vpop.f32.mrf.mxu0 }
 0x2a1   : > { %v7211_v10 = vpop.eup %7210  ;;  %7236 = vpow2.f32 %v5654_v6  ;;  %v5946_v3 = vpop.f32.mrf.mxu1 }
 0x2a2   : > { %v7213_v61 = vpop.eup %7212  ;;  %7238 = vrcp.f32 %v3723_v41  ;;  %4204 = vperm.xlu1 %6082, %v7211_v10   ;;  %v2720_v14 = vpop.f32.mrf.mxu0  ;;  %v3224_v27 = vadd.f32 %v5946_v3, %v8626_v29 }
 0x2a3   : > { %v7215_v30 = vpop.eup %7214  ;;  %7240 = vpow2.f32 %v5652_v5  ;;  %4195 = vperm.xlu0 %6083, %v7209_v38   ;;  %v2973_v18 = vpop.f32.mrf.mxu1 }
 0x2a4   : > { %v7217_v28 = vpop.eup %7216  ;;  %7242 = vpow2.f32 %v5655_v11  ;;  %v5886_v32 = vpop.f32.mrf.mxu0 }
 0x2a5   : > { %v7219_v42 = vpop.eup %7218  ;;  %v2495_v50 = vsub.f32 %v7213_v61, %v7217_v28  ;;  %7244 = vpow2.f32 %v5653_v16  ;;  %v5947_v12 = vpop.f32.mrf.mxu1 }
 0x2a6   : > { %v7221_v17 = vpop.eup %7220  ;;  %v2496_v47 = vsub.f32 %v7215_v30, %v7219_v42  ;;  %7246 = vpow2.f32 %v5718_v25 }
 0x2a7   : > { %v7223_v19 = vpop.eup %7222  ;;  %7248 = vpow2.f32 %v5716_v13 }
 0x2a8   : > { %v7225_v36 = vpop.eup %7224  ;;  %v2561_v53 = vpack.c.bf16 %v2496_v47, %v2495_v50  ;;  %7250 = vpow2.f32 %v5719_v40  ;;  %v3158_v47 = vadd.f32 %v8626_v29, %v2717_v46  ;;  %v3164_v46 = vadd.f32 %v5886_v32, %v8626_v29 }
 0x2a9   : > { %v7227_v39 = vpop.eup %7226  ;;  %v2497_v24 = vsub.f32 %v7221_v17, %v7225_v36  ;;  %7252 = vpow2.f32 %v5717_v15  ;;  %v2733_v15 = vpop.f32.mrf.mxu0  ;;  %v5662_v36 = vmul.f32 -1.442695, %v3160_v59 }
 0x2aa   : > { %v7229_v20 = vpop.eup %7228  ;;  %5980 = vmatprep.mubr.bf16.mxu1 %v2561_v53  ;;  %v2498_v8 = vsub.f32 %v7223_v19, %v7227_v39  ;;  %7254 = vpow2.f32 %v5658_v34  ;;  %v3161_v19 = vadd.f32 %v5883_v58, %v8626_v29  ;;  %v3159_v53 = vadd.f32 %v8626_v29, %v2720_v14 }
 0x2ab   : > { %v7231_v7 = vpop.eup %7230  ;;  %7256 = vpow2.f32 %v5656_v22  ;;  %4198 = vperm.xlu1 %6082, %v7229_v20   ;;  %v5887_v39 = vpop.f32.mrf.mxu0 }
 0x2ac   : > { %v7233_v1 = vpop.eup %7232  ;;  %v2562_v44 = vpack.c.bf16 %v2498_v8, %v2497_v24  ;;  %7258 = vpow2.f32 %v5659_v60  ;;  %4393 = vperm.xlu0 %6083, %v7231_v7   ;;  %v2976_v60 = vpop.f32.mrf.mxu1  ;;  %v5660_v24 = vmul.f32 -1.442695, %v3158_v47  ;;  %v3225_v7 = vadd.f32 %v5947_v12, %v8626_v29 }
 0x2ad   : > { %v7235_v56 = vpop.eup %7234  ;;  %7260 = vpow2.f32 %v5657_v49  ;;  %v3222_v49 = vadd.f32 %v8626_v29, %v2973_v18  ;;  %v5661_v26 = vmul.f32 -1.442695, %v3159_v53 }
 0x2ae   : > { %v7237_v63 = vpop.eup %7236  ;;  %5981 = vmatmul.mubr.bf16.gmra.mxu1 %v2562_v44  ;;  %7262 = vpow2.f32 %v5722_v0  ;;  %v5950_v20 = vpop.f32.mrf.mxu1  ;;  %v5663_v0 = vmul.f32 -1.442695, %v3161_v19  ;;  %v5727_v58 = vmul.f32 -1.442695, %v3225_v7 }
 0x2af   : > { %v7239_v21 = vpop.eup %7238  ;;  %v3664_v6 = vadd.f32 1.0, %v7237_v63  ;;  %7264 = vpow2.f32 %v5720_v37  ;;  %4396 = vperm.xlu1 %6082, %v7235_v56   ;;  %v2736_v56 = vpop.f32.mrf.mxu0 }
 0x2b0   : > { %v7241_v52 = vpop.eup %7240  ;;  %7266 = vpow2.f32 %v5723_v45  ;;  %4387 = vperm.xlu0 %6083, %v7233_v1   ;;  %v3223_v1 = vadd.f32 %v8626_v29, %v2976_v60  ;;  %v5726_v45 = vmul.f32 -1.442695, %v3224_v27 }
 0x2b1   : > { %v7243_v35 = vpop.eup %7242  ;;  %7268 = vrcp.f32 %v3664_v6  ;;  %v3662_v62 = vadd.f32 1.0, %v7241_v52  ;;  %v3162_v6 = vadd.f32 %v8626_v29, %v2733_v15  ;;  %v8894_v32 = vpop.f32.mrf.mxu0 }
 0x2b2   : > { %v7245_v5 = vpop.eup %7244  ;;  %v3665_v9 = vadd.f32 1.0, %v7243_v35  ;;  %7270 = vpow2.f32 %v5721_v51  ;;  %v2989_v51 = vpop.f32.mrf.mxu1  ;;  %v3165_v35 = vadd.f32 %v5887_v39, %v8626_v29  ;;  %v5725_v3 = vmul.f32 -1.442695, %v3223_v1 }
 0x2b3   : > { %v7247_v38 = vpop.eup %7246  ;;  %v3663_v41 = vadd.f32 1.0, %v7245_v5  ;;  %4390 = vperm.xlu1 %6082, %v7239_v21   ;;  %v5724_v21 = vmul.f32 -1.442695, %v3222_v49  ;;  %v3163_v5 = vadd.f32 %v8626_v29, %v2736_v56  ;;  %v8900_v39 = vpop.permute.xlu0 %4159 }
 0x2b4   : > { %v7249_v11 = vpop.eup %7248  ;;  %7272 = vrcp.f32 %v3665_v9  ;;  %v3728_v57 = vadd.f32 1.0, %v7247_v38  ;;  %v5666_v38 = vmul.f32 -1.442695, %v3164_v46  ;;  %v5951_v14 = vpop.f32.mrf.mxu1 }
 0x2b5   : > { %v7251_v10 = vpop.eup %7250  ;;  %7274 = vrcp.f32 %v3662_v62  ;;  %v3726_v16 = vadd.f32 1.0, %v7249_v11  ;;  %v3229_v18 = vadd.f32 %v5951_v14, %v8626_v29 }
 0x2b6   : > { %v7253_v61 = vpop.eup %7252  ;;  %7276 = vrcp.f32 %v3663_v41  ;;  %v3729_v25 = vadd.f32 1.0, %v7251_v10  ;;  %v3228_v41 = vadd.f32 %v5950_v20, %v8626_v29 }
 0x2b7   : > { %v7255_v43 = vpop.eup %7254  ;;  %7278 = vrcp.f32 %v3728_v57  ;;  %v3727_v30 = vadd.f32 1.0, %v7253_v61  ;;  %v5664_v57 = vmul.f32 -1.442695, %v3162_v6  ;;  %v5731_v12 = vmul.f32 -1.442695, %v3229_v18 }
 0x2b8   : > { %v7257_v13 = vpop.eup %7256  ;;  %7280 = vrcp.f32 %v3726_v16  ;;  %v3668_v23 = vadd.f32 1.0, %v7255_v43  ;;  %v5667_v16 = vmul.f32 -1.442695, %v3165_v35 }
 0x2b9   : > { %v7259_v28 = vpop.eup %7258  ;;  %7282 = vrcp.f32 %v3729_v25  ;;  %v3666_v40 = vadd.f32 1.0, %v7257_v13  ;;  %v5665_v25 = vmul.f32 -1.442695, %v3163_v5 }
 0x2ba   : > { %v7261_v42 = vpop.eup %7260  ;;  %7284 = vrcp.f32 %v3727_v30  ;;  %v3669_v50 = vadd.f32 1.0, %v7259_v28  ;;  %v5730_v30 = vmul.f32 -1.442695, %v3228_v41  ;;  %v3226_v28 = vadd.f32 %v8626_v29, %v2989_v51 }
 0x2bb   : > { %v7263_v31 = vpop.eup %7262  ;;  %7286 = vrcp.f32 %v3668_v23  ;;  %v3667_v17 = vadd.f32 1.0, %v7261_v42  ;;  %v3168_v51 = vadd.f32 %v8894_v32, %v8626_v29 }
 0x2bc   : > { %v7265_v34 = vpop.eup %7264  ;;  %7288 = vrcp.f32 %v3666_v40  ;;  %v3732_v54 = vadd.f32 1.0, %v7263_v31  ;;  %v2992_v40 = vpop.f32.mrf.mxu1 }
 0x2bd   : > { %v7267_v22 = vpop.eup %7266  ;;  %7290 = vrcp.f32 %v3669_v50  ;;  %v3730_v48 = vadd.f32 1.0, %v7265_v34  ;;  %v2749_v50 = vpop.f32.mrf.mxu0  ;;  %v3227_v31 = vadd.f32 %v8626_v29, %v2992_v40  ;;  %v5728_v34 = vmul.f32 -1.442695, %v3226_v28 }
 0x2be   : > { %v7269_v55 = vpop.eup %7268  ;;  %7292 = vrcp.f32 %v3667_v17  ;;  %v3733_v33 = vadd.f32 1.0, %v7267_v22 }
 0x2bf   : > { %7294 = vrcp.f32 %v3732_v54  ;;  %4213 = vperm.xlu0 %6083, %v7269_v55   ;;  %v7271_v8 = vpop.eup %7270  ;;  %v5729_v60 = vmul.f32 -1.442695, %v3227_v31  ;;  %v5954_v55 = vpop.f32.mrf.mxu1 }
 0x2c0   : > { %7296 = vrcp.f32 %v3730_v48  ;;  %v3731_v23 = vadd.f32 1.0, %v7271_v8  ;;  %v5891_v48 = vpop.f32.mrf.mxu0 }
 0x2c1   : > { %v7273_v37 = vpop.eup %7272  ;;  %7298 = vpow2.f32 %v5662_v36 }
 0x2c2   : > { %v7275_v44 = vpop.eup %7274  ;;  %7300 = vrcp.f32 %v3733_v33  ;;  %4216 = vperm.xlu1 %6082, %v7273_v37  }
 0x2c3   : > { %v7277_v63 = vpop.eup %7276  ;;  %7302 = vpow2.f32 %v5660_v24  ;;  %4207 = vperm.xlu0 %6083, %v7275_v44  }
 0x2c4   : > { %v7279_v52 = vpop.eup %7278  ;;  %7304 = vpow2.f32 %v5663_v0  ;;  %v2752_v0 = vpop.f32.mrf.mxu0 }
 0x2c5   : > { %v7281_v62 = vpop.eup %7280  ;;  %7306 = vpow2.f32 %v5661_v26  ;;  %v3005_v26 = vpop.f32.mrf.mxu1 }
 0x2c6   : > { %v7283_v9 = vpop.eup %7282  ;;  %7308 = vpow2.f32 %v5726_v45  ;;  %4210 = vperm.xlu1 %6082, %v7277_v63   ;;  %v5894_v45 = vpop.f32.mrf.mxu0 }
 0x2c7   : > { %v7285_v11 = vpop.eup %7284  ;;  %7310 = vpow2.f32 %v5724_v21  ;;  %4405 = vperm.xlu0 %6083, %v7279_v52   ;;  %v8902_v63 = vpop.permute.xlu1 %4165 }
 0x2c8   : > { %v7287_v10 = vpop.eup %7286  ;;  %7312 = vpow2.f32 %v5727_v58  ;;  %v8906_v52 = vpop.permute.xlu0 %4357 }
 0x2c9   : > { %v7289_v61 = vpop.eup %7288  ;;  %7314 = vpow2.f32 %v5725_v3 }
 0x2ca   : > { %v7291_v43 = vpop.eup %7290  ;;  %7316 = vpow2.f32 %v5666_v38  ;;  %4408 = vperm.xlu1 %6082, %v7283_v9   ;;  %v3166_v9 = vadd.f32 %v8626_v29, %v2749_v50  ;;  %v2765_v38 = vpop.f32.mrf.mxu0 }
 0x2cb   : > { %v7293_v13 = vpop.eup %7292  ;;  %7318 = vpow2.f32 %v5664_v57  ;;  %4399 = vperm.xlu0 %6083, %v7281_v62   ;;  %v5955_v62 = vpop.f32.mrf.mxu1  ;;  %v3169_v57 = vadd.f32 %v5891_v48, %v8626_v29 }
 0x2cc   : > { %v7295_v59 = vpop.eup %7294  ;;  %7320 = vpow2.f32 %v5667_v16  ;;  %v3167_v16 = vadd.f32 %v8626_v29, %v2752_v0  ;;  %v8916_v28 = vpop.permute.xlu0 %4351 }
 0x2cd   : > { %v8897_v42 = vpop.eup %7296  ;;  %7322 = vpow2.f32 %v5665_v25  ;;  %v3232_v25 = vadd.f32 %v5954_v55, %v8626_v29  ;;  %v3008_v32 = vpop.f32.mrf.mxu1 }
 0x2ce   : > { %v7299_v15 = vpop.eup %7298  ;;  %4402 = vperm.xlu1 %6082, %v7285_v11   ;;  %7324 = vpow2.f32 %v5730_v30  ;;  %v5668_v30 = vmul.f32 -1.442695, %v3166_v9  ;;  %v5669_v50 = vmul.f32 -1.442695, %v3167_v16 }
 0x2cf   : > { %v7301_v17 = vpop.eup %7300  ;;  %7326 = vrcp.f32 %v3731_v23  ;;  %v3672_v47 = vadd.f32 1.0, %v7299_v15  ;;  %4225 = vperm.xlu0 %6083, %v7287_v10   ;;  %v5670_v10 = vmul.f32 -1.442695, %v3168_v51  ;;  %v5895_v23 = vpop.f32.mrf.mxu0  ;;  %v3231_v15 = vadd.f32 %v8626_v29, %v3008_v32 }
 0x2d0   : > { %v7303_v54 = vpop.eup %7302  ;;  %7328 = vpow2.f32 %v5731_v12  ;;  %v3233_v12 = vadd.f32 %v5955_v62, %v8626_v29 }
 0x2d1   : > { %v7305_v19 = vpop.eup %7304  ;;  %7330 = vrcp.f32 %v3672_v47  ;;  %v3670_v22 = vadd.f32 1.0, %v7303_v54  ;;  %v3172_v47 = vadd.f32 %v5894_v45, %v8626_v29 }
 0x2d2   : > { %v7307_v36 = vpop.eup %7306  ;;  %v3673_v53 = vadd.f32 1.0, %v7305_v19  ;;  %4228 = vperm.xlu1 %6082, %v7291_v43   ;;  %7332 = vpow2.f32 %v5728_v34  ;;  %v8913_v43 = vpop.permute.xlu1 %4168  ;;  %v3170_v19 = vadd.f32 %v8626_v29, %v2765_v38 }
 0x2d3   : > { %v7309_v33 = vpop.eup %7308  ;;  %v3671_v27 = vadd.f32 1.0, %v7307_v36  ;;  %4219 = vperm.xlu0 %6083, %v7289_v61   ;;  %v5735_v36 = vmul.f32 -1.442695, %v3233_v12 }
 0x2d4   : > { %v7311_v24 = vpop.eup %7310  ;;  %7334 = vrcp.f32 %v3673_v53  ;;  %v3736_v49 = vadd.f32 1.0, %v7309_v33  ;;  %v3173_v53 = vadd.f32 %v5895_v23, %v8626_v29 }
 0x2d5   : > { %v7313_v20 = vpop.eup %7312  ;;  %7336 = vrcp.f32 %v3670_v22  ;;  %v3734_v8 = vadd.f32 1.0, %v7311_v24  ;;  %v2768_v22 = vpop.f32.mrf.mxu0 }
 0x2d6   : > { %v7315_v7 = vpop.eup %7314  ;;  %v3737_v37 = vadd.f32 1.0, %v7313_v20  ;;  %4222 = vperm.xlu1 %6082, %v7293_v13   ;;  %7338 = vpow2.f32 %v5729_v60  ;;  %v3230_v13 = vadd.f32 %v8626_v29, %v3005_v26  ;;  %v5958_v60 = vpop.f32.mrf.mxu1  ;;  %v5674_v20 = vmul.f32 -1.442695, %v3172_v47 }
 0x2d7   : > { %v7317_v1 = vpop.eup %7316  ;;  %7340 = vrcp.f32 %v3671_v27  ;;  %v3735_v44 = vadd.f32 1.0, %v7315_v7  ;;  %4417 = vperm.xlu0 %6083, %v7295_v59   ;;  %v5671_v59 = vmul.f32 -1.442695, %v3169_v57  ;;  %v8923_v55 = vpop.permute.xlu1 %4360  ;;  %v5733_v27 = vmul.f32 -1.442695, %v3231_v15 }
 0x2d8   : > { %v7319_v46 = vpop.eup %7318  ;;  %7342 = vrcp.f32 %v3736_v49  ;;  %v3676_v56 = vadd.f32 1.0, %v7317_v1  ;;  %v5732_v54 = vmul.f32 -1.442695, %v3230_v13  ;;  %v8925_v24 = vpop.permute.xlu0 %4162  ;;  %v5672_v7 = vmul.f32 -1.442695, %v3170_v19 }
 0x2d9   : > { %v7321_v21 = vpop.eup %7320  ;;  %7344 = vrcp.f32 %v3734_v8  ;;  %v3674_v6 = vadd.f32 1.0, %v7319_v46  ;;  %v3171_v8 = vadd.f32 %v8626_v29, %v2768_v22  ;;  %v5675_v26 = vmul.f32 -1.442695, %v3173_v53  ;;  %v3021_v1 = vpop.f32.mrf.mxu1 }
 0x2da   : > { %v7323_v58 = vpop.eup %7322  ;;  %7346 = vrcp.f32 %v3737_v37  ;;  %v3677_v35 = vadd.f32 1.0, %v7321_v21  ;;  %4420 = vperm.xlu1 %6082, %v7301_v17   ;;  %v5734_v17 = vmul.f32 -1.442695, %v3232_v25  ;;  %v3236_v51 = vadd.f32 %v5958_v60, %v8626_v29 }
 0x2db   : > { %v7325_v3 = vpop.eup %7324  ;;  %7348 = vrcp.f32 %v3735_v44  ;;  %v3675_v5 = vadd.f32 1.0, %v7323_v58  ;;  %4411 = vperm.xlu0 %6083, %v8897_v42   ;;  %v8928_v21 = vpop.permute.xlu1 %4354 }
 0x2dc   : > { %v7327_v41 = vpop.eup %7326  ;;  %7350 = vrcp.f32 %v3676_v56  ;;  %v3740_v11 = vadd.f32 1.0, %v7325_v3  ;;  %v5673_v56 = vmul.f32 -1.442695, %v3171_v8  ;;  %v8931_v58 = vpop.permute.xlu0 %4177 }
 0x2dd   : > { %v7329_v14 = vpop.eup %7328  ;;  %7352 = vrcp.f32 %v3674_v6  ;;  %v5959_v3 = vpop.f32.mrf.mxu1 }
 0x2de   : > { %v7331_v18 = vpop.eup %7330  ;;  %7354 = vrcp.f32 %v3677_v35  ;;  %v3741_v61 = vadd.f32 1.0, %v7329_v14  ;;  %4414 = vperm.xlu1 %6082, %v7327_v41   ;;  %v3237_v38 = vadd.f32 %v5959_v3, %v8626_v29  ;;  %v5898_v41 = vpop.f32.mrf.mxu0  ;;  %v5738_v14 = vmul.f32 -1.442695, %v3236_v51 }
 0x2df   : > { %7356 = vrcp.f32 %v3675_v5  ;;  %4237 = vperm.xlu0 %6083, %v7331_v18   ;;  %v7333_v40 = vpop.eup %7332  ;;  %v3024_v18 = vpop.f32.mrf.mxu1  ;;  %v3176_v8 = vadd.f32 %v5898_v41, %v8626_v29 }
 0x2e0   : > { %7358 = vrcp.f32 %v3740_v11  ;;  %v3738_v45 = vadd.f32 1.0, %v7333_v40  ;;  %v5739_v40 = vmul.f32 -1.442695, %v3237_v38 }
 0x2e1   : > { %v7335_v42 = vpop.eup %7334  ;;  %7360 = vpow2.f32 %v5670_v10  ;;  %v3234_v10 = vadd.f32 %v8626_v29, %v3021_v1 }
 0x2e2   : > { %v7337_v31 = vpop.eup %7336  ;;  %7362 = vrcp.f32 %v3741_v61  ;;  %4240 = vperm.xlu1 %6082, %v7335_v42   ;;  %v8935_v61 = vpop.permute.xlu1 %4180 }
 0x2e3   : > { %v7339_v34 = vpop.eup %7338  ;;  %7364 = vpow2.f32 %v5668_v30  ;;  %4231 = vperm.xlu0 %6083, %v7337_v31   ;;  %v8937_v30 = vpop.permute.xlu0 %4171  ;;  %v5736_v42 = vmul.f32 -1.442695, %v3234_v10 }
 0x2e4   : > { %v7341_v48 = vpop.eup %7340  ;;  %7366 = vpow2.f32 %v5671_v59  ;;  %v3739_v62 = vadd.f32 1.0, %v7339_v34  ;;  %v2781_v59 = vpop.f32.mrf.mxu0 }
 0x2e5   : > { %v7343_v33 = vpop.eup %7342  ;;  %7368 = vpow2.f32 %v5669_v50  ;;  %v3235_v50 = vadd.f32 %v8626_v29, %v3024_v18  ;;  %v5962_v34 = vpop.f32.mrf.mxu1 }
 0x2e6   : > { %v7345_v49 = vpop.eup %7344  ;;  %7370 = vpow2.f32 %v5734_v17  ;;  %4234 = vperm.xlu1 %6082, %v7341_v48   ;;  %v5899_v22 = vpop.f32.mrf.mxu0  ;;  %v3240_v41 = vadd.f32 %v5962_v34, %v8626_v29 }
 0x2e7   : > { %v7347_v0 = vpop.eup %7346  ;;  %7372 = vpow2.f32 %v5732_v54  ;;  %4429 = vperm.xlu0 %6083, %v7343_v33   ;;  %v8940_v48 = vpop.permute.xlu1 %4174  ;;  %v5737_v53 = vmul.f32 -1.442695, %v3235_v50 }
 0x2e8   : > { %v7349_v37 = vpop.eup %7348  ;;  %7374 = vpow2.f32 %v5735_v36  ;;  %v8942_v60 = vpop.permute.xlu0 %4369 }
 0x2e9   : > { %v7351_v44 = vpop.eup %7350  ;;  %7376 = vpow2.f32 %v5733_v27 }
 0x2ea   : > { %v7353_v46 = vpop.eup %7352  ;;  %7378 = vpow2.f32 %v5674_v20  ;;  %4432 = vperm.xlu1 %6082, %v7347_v0   ;;  %v3037_v0 = vpop.f32.mrf.mxu1 }
 0x2eb   : > { %v7355_v6 = vpop.eup %7354  ;;  %7380 = vpow2.f32 %v5672_v7  ;;  %4423 = vperm.xlu0 %6083, %v7345_v49  }
 0x2ec   : > { %v7357_v35 = vpop.eup %7356  ;;  %7382 = vpow2.f32 %v5675_v26  ;;  %v2784_v26 = vpop.f32.mrf.mxu0 }
 0x2ed   : > { %v7359_v5 = vpop.eup %7358  ;;  %7384 = vrcp.f32 %v3738_v45  ;;  %v3174_v45 = vadd.f32 %v8626_v29, %v2781_v59  ;;  %v5963_v3 = vpop.f32.mrf.mxu1 }
 0x2ee   : > { %v7361_v9 = vpop.eup %7360  ;;  %7386 = vpow2.f32 %v5673_v56  ;;  %4426 = vperm.xlu1 %6082, %v7349_v37   ;;  %v3177_v56 = vadd.f32 %v5899_v22, %v8626_v29  ;;  %v3241_v10 = vadd.f32 %v5963_v3, %v8626_v29 }
 0x2ef   : > { %v7363_v11 = vpop.eup %7362  ;;  %v3680_v57 = vadd.f32 1.0, %v7361_v9  ;;  %4249 = vperm.xlu0 %6083, %v7351_v44   ;;  %7388 = vrcp.f32 %v3739_v62  ;;  %v3175_v62 = vadd.f32 %v8626_v29, %v2784_v26 }
 0x2f0   : > { %v7365_v16 = vpop.eup %7364 }
 0x2f1   : > { %v7367_v25 = vpop.eup %7366  ;;  %7390 = vrcp.f32 %v3680_v57  ;;  %v3678_v32 = vadd.f32 1.0, %v7365_v16  ;;  %v5902_v16 = vpop.f32.mrf.mxu0 }
 0x2f2   : > { %v7369_v13 = vpop.eup %7368  ;;  %v3681_v23 = vadd.f32 1.0, %v7367_v25  ;;  %4252 = vperm.xlu1 %6082, %v7355_v6   ;;  %7392 = vpow2.f32 %v5738_v14  ;;  %v8947_v6 = vpop.permute.xlu1 %4372  ;;  %v5679_v14 = vmul.f32 -1.442695, %v3177_v56  ;;  %v5677_v25 = vmul.f32 -1.442695, %v3175_v62 }
 0x2f3   : > { %v7371_v12 = vpop.eup %7370  ;;  %4243 = vperm.xlu0 %6083, %v7353_v46   ;;  %v3679_v31 = vadd.f32 1.0, %v7369_v13  ;;  %v3040_v13 = vpop.f32.mrf.mxu1  ;;  %v3180_v50 = vadd.f32 %v5902_v16, %v8626_v29 }
 0x2f4   : > { %v7373_v15 = vpop.eup %7372  ;;  %7394 = vrcp.f32 %v3681_v23  ;;  %v3744_v47 = vadd.f32 1.0, %v7371_v12  ;;  %v3239_v34 = vadd.f32 %v8626_v29, %v3040_v13 }
 0x2f5   : > { %v7375_v17 = vpop.eup %7374  ;;  %7396 = vrcp.f32 %v3678_v32  ;;  %v3742_v27 = vadd.f32 1.0, %v7373_v15  ;;  %v3238_v32 = vadd.f32 %v8626_v29, %v3037_v0 }
 0x2f6   : > { %v7377_v54 = vpop.eup %7376  ;;  %v3745_v19 = vadd.f32 1.0, %v7375_v17  ;;  %7398 = vpow2.f32 %v5739_v40  ;;  %4246 = vperm.xlu1 %6082, %v7357_v35   ;;  %v5678_v35 = vmul.f32 -1.442695, %v3176_v8  ;;  %v5742_v40 = vmul.f32 -1.442695, %v3240_v41  ;;  %v8955_v59 = vpop.permute.xlu1 %4366 }
 0x2f7   : > { %v7379_v36 = vpop.eup %7378  ;;  %7400 = vpow2.f32 %v5736_v42  ;;  %4441 = vperm.xlu0 %6083, %v7359_v5   ;;  %v3743_v20 = vadd.f32 1.0, %v7377_v54  ;;  %v8950_v5 = vpop.permute.xlu0 %4363  ;;  %v8961_v17 = vand.u32 127, %v404_v2  ;;  %v5740_v22 = vmul.f32 -1.442695, %v3238_v32 }
 0x2f8   : > { %v7381_v33 = vpop.eup %7380  ;;  %7402 = vrcp.f32 %v3679_v31  ;;  %v3684_v37 = vadd.f32 1.0, %v7379_v36  ;;  %v2797_v54 = vpop.f32.mrf.mxu0  ;;  %v5682_v2 = vmul.f32 -1.442695, %v3180_v50  ;;  %v5741_v0 = vmul.f32 -1.442695, %v3239_v34 }
 0x2f9   : > { %v7383_v49 = vpop.eup %7382  ;;  %7404 = vrcp.f32 %v3744_v47  ;;  %v3682_v44 = vadd.f32 1.0, %v7381_v33  ;;  %v5743_v47 = vmul.f32 -1.442695, %v3241_v10  ;;  %v5966_v36 = vpop.f32.mrf.mxu1  ;;  %v4590_v13 = vadd.s32 4294967240, %v8961_v17 }
 0x2fa   : > { %v7385_v7 = vpop.eup %7384  ;;  %7406 = vrcp.f32 %v3745_v19  ;;  %4444 = vperm.xlu1 %6082, %v7363_v11   ;;  %v3685_v46 = vadd.f32 1.0, %v7383_v49  ;;  %v5676_v11 = vmul.f32 -1.442695, %v3174_v45  ;;  %v3244_v49 = vadd.f32 %v5966_v36, %v8626_v29 }
 0x2fb   : > { %v7387_v1 = vpop.eup %7386  ;;  %7408 = vpow2.f32 %v5737_v53  ;;  %4435 = vperm.xlu0 %6083, %v7385_v7   ;;  %v8958_v15 = vpop.permute.xlu0 %4189  ;;  %v3178_v7 = vadd.f32 %v8626_v29, %v2797_v54  ;;  %v4555_v45 = vadd.s32 4294967280, %v8961_v17  ;;  %v4569_v36 = vadd.s32 4294967264, %v8961_v17 }
 0x2fc   : > { %7410 = vrcp.f32 %v3742_v27  ;;  %v7389_v51 = vpop.eup %7388  ;;  %v3683_v38 = vadd.f32 1.0, %v7387_v1  ;;  %v4548_v27 = vadd.s32 4294967288, %v8961_v17 }
 0x2fd   : > { %7412 = vrcp.f32 %v3743_v20  ;;  %v8967_v26 = vpop.permute.xlu1 %4192  ;;  %v8978_v16 = vsub.s32 %v4555_v45, %v8084_v4 }
 0x2fe   : > { %v7391_v9 = vpop.eup %7390  ;;  %7414 = vrcp.f32 %v3684_v37  ;;  %4438 = vperm.xlu1 %6082, %v7389_v51   ;;  %v5903_v37 = vpop.f32.mrf.mxu0  ;;  %v8973_v51 = vsub.s32 %v4548_v27, %v8084_v4 }
 0x2ff   : > { %7416 = vrcp.f32 %v3682_v44  ;;  %4261 = vperm.xlu0 %6083, %v7391_v9   ;;  %v7393_v57 = vpop.eup %7392  ;;  %v3053_v9 = vpop.f32.mrf.mxu1  ;;  %v4902_v27 = vrot.slane %v8906_v52, %v8978_v16 }
 0x300   : > { %7418 = vrcp.f32 %v3685_v46  ;;  %v3748_v42 = vadd.f32 1.0, %v7393_v57  ;;  %v8970_v46 = vpop.permute.xlu0 %4183  ;;  %v5680_v57 = vmul.f32 -1.442695, %v3178_v7  ;;  %v4897_v32 = vrot.slane %v8928_v21, %v8973_v51 }
 0x301   : > { %v7395_v18 = vpop.eup %7394  ;;  %7420 = vpow2.f32 %v5678_v35  ;;  %v5746_v35 = vmul.f32 -1.442695, %v3244_v49 }
 0x302   : > { %v7397_v23 = vpop.eup %7396  ;;  %7422 = vrcp.f32 %v3683_v38  ;;  %4264 = vperm.xlu1 %6082, %v7395_v18   ;;  %v3181_v38 = vadd.f32 %v5903_v37, %v8626_v29  ;;  %v8982_v18 = vsub.s32 %v8961_v17, %v8084_v4 }
 0x303   : > { %v7399_v12 = vpop.eup %7398  ;;  %7424 = vpow2.f32 %v5676_v11  ;;  %4255 = vperm.xlu0 %6083, %v7397_v23   ;;  %v4562_v11 = vadd.s32 4294967272, %v8961_v17  ;;  %v3242_v23 = vadd.f32 %v8626_v29, %v3053_v9 }
 0x304   : > { %v7401_v31 = vpop.eup %7400  ;;  %7426 = vpow2.f32 %v5679_v14  ;;  %v3749_v33 = vadd.f32 1.0, %v7399_v12  ;;  %v2800_v14 = vpop.f32.mrf.mxu0  ;;  %v5683_v50 = vmul.f32 -1.442695, %v3181_v38 }
 0x305   : > { %v7403_v19 = vpop.eup %7402  ;;  %7428 = vpow2.f32 %v5677_v25  ;;  %v3746_v44 = vadd.f32 1.0, %v7401_v31  ;;  %v4583_v31 = vadd.s32 4294967248, %v8961_v17  ;;  %v8993_v34 = vpop.permute.xlu0 %4381  ;;  %v8996_v54 = vsub.s32 %v4562_v11, %v8084_v4 }
 0x306   : > { %v7405_v53 = vpop.eup %7404  ;;  %7430 = vpow2.f32 %v5742_v40  ;;  %4258 = vperm.xlu1 %6082, %v7403_v19   ;;  %v8988_v40 = vpop.permute.xlu1 %4186  ;;  %v4893_v19 = vrot.slane %v8916_v28, %v8982_v18  ;;  %v3179_v37 = vadd.f32 %v8626_v29, %v2800_v14 }
 0x307   : > { %v7407_v20 = vpop.eup %7406  ;;  %7432 = vrcp.f32 %v3748_v42  ;;  %4453 = vperm.xlu0 %6083, %v7405_v53   ;;  %v9008_v7 = vsub.s32 %v4583_v31, %v8084_v4 }
 0x308   : > { %v7409_v8 = vpop.eup %7408  ;;  %7434 = vpow2.f32 %v5743_v47  ;;  %v8991_v47 = vpop.f32.mrf.mxu1 }
 0x309   : > { %v7411_v1 = vpop.eup %7410  ;;  %7436 = vpow2.f32 %v5740_v22  ;;  %v3747_v3 = vadd.f32 1.0, %v7409_v8  ;;  %v5906_v22 = vpop.f32.mrf.mxu0  ;;  %v9005_v8 = vsub.s32 %v4590_v13, %v8084_v4 }
 0x30a   : > { %v7413_v56 = vpop.eup %7412  ;;  %7438 = vrcp.f32 %v3749_v33  ;;  %4456 = vperm.xlu1 %6082, %v7407_v20   ;;  %v3056_v52 = vpop.f32.mrf.mxu1 }
 0x30b   : > { %v7415_v62 = vpop.eup %7414  ;;  %7440 = vpow2.f32 %v5682_v2  ;;  %4447 = vperm.xlu0 %6083, %v7411_v1   ;;  %v4898_v2 = vsel %vm4553_vm0, %v4897_v32, %v4893_v19  ;;  %v4576_v1 = vadd.s32 4294967256, %v8961_v17  ;;  %v5681_v32 = vmul.f32 -1.442695, %v3179_v37 }
 0x30c   : > { %v7417_v41 = vpop.eup %7416  ;;  %7442 = vpow2.f32 %v5741_v0  ;;  %v5744_v0 = vmul.f32 -1.442695, %v3242_v23  ;;  %v4903_v11 = vsel %vm4560_vm1, %v4902_v27, %v4898_v2  ;;  %v5970_v23 = vpop.f32.mrf.mxu1 }
 0x30d   : > { %v7419_v10 = vpop.eup %7418  ;;  %7444 = vrcp.f32 %v3746_v44  ;;  %v9026_v13 = vsub.s32 %v4576_v1, %v8084_v4 }
 0x30e   : > { %v7421_v25 = vpop.eup %7420  ;;  %7446 = vpow2.f32 %v5746_v35  ;;  %4450 = vperm.xlu1 %6082, %v7413_v56   ;;  %v4907_v56 = vrot.slane %v8923_v55, %v8996_v54  ;;  %v9015_v35 = vsub.s32 %v4569_v36, %v8084_v4  ;;  %v3184_v36 = vadd.f32 %v5906_v22, %v8626_v29  ;;  %v3069_v1 = vpop.f32.mrf.mxu1 }
 0x30f   : > { %v7423_v12 = vpop.eup %7422  ;;  %7448 = vrcp.f32 %v3747_v3  ;;  %v3688_v42 = vadd.f32 1.0, %v7421_v25  ;;  %4273 = vperm.xlu0 %6083, %v7415_v62   ;;  %v2813_v62 = vpop.f32.mrf.mxu0  ;;  %v4917_v22 = vrot.slane %v8955_v59, %v9026_v13 }
 0x310   : > { %v7425_v21 = vpop.eup %7424  ;;  %7450 = vpow2.f32 %v5680_v57  ;;  %v9017_v3 = vpop.permute.xlu1 %4384  ;;  %v4912_v55 = vrot.slane %v8950_v5, %v9015_v35  ;;  %v4908_v31 = vsel %vm4567_vm2, %v4907_v56, %v4903_v11  ;;  %v5686_v11 = vmul.f32 -1.442695, %v3184_v36 }
 0x311   : > { %v7427_v53 = vpop.eup %7426  ;;  %7452 = vrcp.f32 %v3688_v42  ;;  %v3686_v33 = vadd.f32 1.0, %v7425_v21  ;;  %v9020_v57 = vpop.permute.xlu0 %4375  ;;  %v9030_v21 = vadd.s32 4294967208, %v8961_v17 }
 0x312   : > { %v7429_v49 = vpop.eup %7428  ;;  %v3689_v20 = vadd.f32 1.0, %v7427_v53  ;;  %4276 = vperm.xlu1 %6082, %v7419_v10   ;;  %7454 = vpow2.f32 %v5683_v50  ;;  %v3243_v10 = vadd.f32 %v8626_v29, %v3056_v52  ;;  %v5907_v50 = vpop.f32.mrf.mxu0  ;;  %v4597_v53 = vadd.s32 4294967232, %v8961_v17 }
 0x313   : > { %v7431_v28 = vpop.eup %7430  ;;  %4267 = vperm.xlu0 %6083, %v7417_v41   ;;  %v3687_v45 = vadd.f32 1.0, %v7429_v49  ;;  %v3182_v49 = vadd.f32 %v8626_v29, %v2813_v62  ;;  %v3185_v37 = vadd.f32 %v5907_v50, %v8626_v29 }
 0x314   : > { %v7433_v44 = vpop.eup %7432  ;;  %7456 = vrcp.f32 %v3689_v20  ;;  %v3752_v38 = vadd.f32 1.0, %v7431_v28  ;;  %v5745_v27 = vmul.f32 -1.442695, %v3243_v10  ;;  %v4913_v20 = vsel %vm4574_vm3, %v4912_v55, %v4908_v31  ;;  %v9037_v2 = vpop.permute.xlu1 %4378 }
 0x315   : > { %v7435_v9 = vpop.eup %7434  ;;  %7458 = vrcp.f32 %v3686_v33  ;;  %v2816_v56 = vpop.f32.mrf.mxu0  ;;  %v9050_v59 = vsub.s32 %v4597_v53, %v8084_v4  ;;  %v4922_v55 = vrot.slane %v8942_v60, %v9008_v7  ;;  %v5687_v50 = vmul.f32 -1.442695, %v3185_v37 }
 0x316   : > { %v7437_v41 = vpop.eup %7436  ;;  %v3753_v14 = vadd.f32 1.0, %v7435_v9  ;;  %7460 = vpow2.f32 %v5744_v0  ;;  %4270 = vperm.xlu1 %6082, %v7423_v12   ;;  %v4611_v12 = vadd.s32 4294967216, %v8961_v17  ;;  %v4604_v9 = vadd.s32 4294967224, %v8961_v17  ;;  %v5971_v31 = vpop.f32.mrf.mxu1 }
 0x317   : > { %v7439_v25 = vpop.eup %7438  ;;  %4465 = vperm.xlu0 %6083, %v7433_v44   ;;  %7462 = vrcp.f32 %v3687_v45  ;;  %v3750_v19 = vadd.f32 1.0, %v7437_v41  ;;  %v4918_v41 = vsel %vm4581_vm4, %v4917_v22, %v4913_v20  ;;  %v4932_v36 = vrot.slane %v9020_v57, %v9050_v59 }
 0x318   : > { %v7441_v42 = vpop.eup %7440  ;;  %7464 = vrcp.f32 %v3752_v38  ;;  %v9045_v62 = vsub.s32 %v4611_v12, %v8084_v4 }
 0x319   : > { %v7443_v5 = vpop.eup %7442  ;;  %7466 = vrcp.f32 %v3753_v14  ;;  %v3692_v28 = vadd.f32 1.0, %v7441_v42  ;;  %v5684_v42 = vmul.f32 -1.442695, %v3182_v49 }
 0x31a   : > { %v7445_v33 = vpop.eup %7444  ;;  %4468 = vperm.xlu1 %6082, %v7439_v25   ;;  %7468 = vpow2.f32 %v5681_v32  ;;  %v9042_v52 = vpop.permute.xlu0 %4201  ;;  %v3751_v45 = vadd.f32 1.0, %v7443_v5  ;;  %v3248_v25 = vadd.f32 %v5970_v23, %v8626_v29  ;;  %v3183_v5 = vadd.f32 %v8626_v29, %v2816_v56 }
 0x31b   : > { %v7447_v0 = vpop.eup %7446  ;;  %4459 = vperm.xlu0 %6083, %v7445_v33   ;;  %7470 = vrcp.f32 %v3750_v19  ;;  %v5910_v32 = vpop.f32.mrf.mxu0  ;;  %v4923_v19 = vsel %vm4588_vm5, %v4922_v55, %v4918_v41  ;;  %v4927_v33 = vrot.slane %v8947_v6, %v9005_v8  ;;  %v3249_v56 = vadd.f32 %v5971_v31, %v8626_v29 }
 0x31c   : > { %v7449_v44 = vpop.eup %7448  ;;  %v3756_v10 = vadd.f32 1.0, %v7447_v0  ;;  %7472 = vpow2.f32 %v5745_v27  ;;  %v3246_v27 = vadd.f32 %v8626_v29, %v3069_v1  ;;  %v5750_v0 = vmul.f32 -1.442695, %v3248_v25 }
 0x31d   : > { %v7451_v38 = vpop.eup %7450  ;;  %7474 = vrcp.f32 %v3692_v28  ;;  %v9059_v60 = vpop.permute.xlu1 %4204  ;;  %v9067_v28 = vsub.s32 %v4604_v9, %v8084_v4  ;;  %v4928_v6 = vsel %vm4595_vm6, %v4927_v33, %v4923_v19  ;;  %v5685_v1 = vmul.f32 -1.442695, %v3183_v5 }
 0x31e   : > { %v7453_v14 = vpop.eup %7452  ;;  %4462 = vperm.xlu1 %6082, %v7449_v44   ;;  %7476 = vrcp.f32 %v3751_v45  ;;  %v3690_v53 = vadd.f32 1.0, %v7451_v38  ;;  %v9064_v49 = vpop.permute.xlu0 %4195  ;;  %v3188_v45 = vadd.f32 %v5910_v32, %v8626_v29  ;;  %v4933_v38 = vsel %vm4602_vm7, %v4932_v36, %v4928_v6 }
 0x31f   : > { %4285 = vperm.xlu0 %6083, %v7453_v14   ;;  %v7455_v12 = vpop.eup %7454  ;;  %7478 = vpow2.f32 %v5686_v11  ;;  %v2829_v57 = vpop.f32.mrf.mxu0  ;;  %v5748_v11 = vmul.f32 -1.442695, %v3246_v27  ;;  %v4937_v41 = vrot.slane %v9037_v2, %v9067_v28  ;;  %v4625_v14 = vadd.s32 4294967200, %v8961_v17 }
 0x320   : > { %7480 = vrcp.f32 %v3756_v10  ;;  %v3693_v22 = vadd.f32 1.0, %v7455_v12  ;;  %v3072_v44 = vpop.f32.mrf.mxu1  ;;  %v9081_v31 = vsub.s32 %v9030_v21, %v8084_v4  ;;  %v5690_v12 = vmul.f32 -1.442695, %v3188_v45 }
 0x321   : > { %v7457_v23 = vpop.eup %7456  ;;  %7482 = vpow2.f32 %v5684_v42  ;;  %v3247_v25 = vadd.f32 %v8626_v29, %v3072_v44  ;;  %v5911_v32 = vpop.f32.mrf.mxu0  ;;  %v4938_v2 = vsel %vm4609_vm8, %v4937_v41, %v4933_v38  ;;  %v4942_v33 = vrot.slane %v8993_v34, %v9045_v62 }
 0x322   : > { %v7459_v20 = vpop.eup %7458  ;;  %4288 = vperm.xlu1 %6082, %v7457_v23   ;;  %7484 = vpow2.f32 %v5687_v50  ;;  %v5974_v5 = vpop.f32.mrf.mxu1  ;;  %v5751_v23 = vmul.f32 -1.442695, %v3249_v56  ;;  %v4632_v27 = vadd.s32 4294967192, %v8961_v17  ;;  %v9091_v21 = vsub.s32 %v4625_v14, %v8084_v4 }
 0x323   : > { %v7461_v37 = vpop.eup %7460  ;;  %4279 = vperm.xlu0 %6083, %v7459_v20   ;;  %7486 = vrcp.f32 %v3690_v53  ;;  %v3186_v53 = vadd.f32 %v8626_v29, %v2829_v57  ;;  %v4943_v57 = vsel %vm4616_vm9, %v4942_v33, %v4938_v2  ;;  %v4947_v6 = vrot.slane %v9017_v3, %v9081_v31 }
 0x324   : > { %v7463_v9 = vpop.eup %7462  ;;  %v3754_v55 = vadd.f32 1.0, %v7461_v37  ;;  %7488 = vpow2.f32 %v5750_v0  ;;  %v5749_v0 = vmul.f32 -1.442695, %v3247_v25  ;;  %v3189_v37 = vadd.f32 %v5911_v32, %v8626_v29  ;;  %v3085_v56 = vpop.f32.mrf.mxu1 }
 0x325   : > { %v7465_v10 = vpop.eup %7464  ;;  %7490 = vrcp.f32 %v3693_v22  ;;  %v2832_v22 = vpop.f32.mrf.mxu0 }
 0x326   : > { %4282 = vperm.xlu1 %6082, %v7463_v9   ;;  %v9077_v42 = vpop.permute.xlu1 %4198  ;;  %v7467_v50 = vpop.eup %7466  ;;  %7492 = vpow2.f32 %v5685_v1  ;;  %v3252_v1 = vadd.f32 %v5974_v5, %v8626_v29  ;;  %v5691_v3 = vmul.f32 -1.442695, %v3189_v37  ;;  %v3187_v32 = vadd.f32 %v8626_v29, %v2832_v22 }
 0x327   : > { %4477 = vperm.xlu0 %6083, %v7465_v10   ;;  %v9084_v19 = vpop.permute.xlu0 %4393  ;;  %v7469_v36 = vpop.eup %7468  ;;  %7494 = vpow2.f32 %v5748_v11  ;;  %v5688_v11 = vmul.f32 -1.442695, %v3186_v53  ;;  %v9102_v10 = vsub.s32 %v4632_v27, %v8084_v4  ;;  %v3250_v37 = vadd.f32 %v8626_v29, %v3085_v56 }
 0x328   : > { %v7471_v20 = vpop.eup %7470  ;;  %7496 = vrcp.f32 %v3754_v55  ;;  %v3691_v34 = vadd.f32 1.0, %v7469_v36  ;;  %v4948_v55 = vsel %vm9481_vm10, %v4947_v6, %v4943_v57  ;;  %v5754_v36 = vmul.f32 -1.442695, %v3252_v1 }
 0x329   : > { %v7473_v45 = vpop.eup %7472  ;;  %7498 = vpow2.f32 %v5690_v12  ;;  %v5914_v22 = vpop.f32.mrf.mxu0  ;;  %v5689_v6 = vmul.f32 -1.442695, %v3187_v32  ;;  %v5752_v56 = vmul.f32 -1.442695, %v3250_v37 }
 0x32a   : > { %4480 = vperm.xlu1 %6082, %v7467_v50   ;;  %v9094_v44 = vpop.permute.xlu1 %4396  ;;  %v7475_v9 = vpop.eup %7474  ;;  %7500 = vpow2.f32 %v5751_v23  ;;  %v3755_v27 = vadd.f32 1.0, %v7473_v45 }
 0x32b   : > { %4471 = vperm.xlu0 %6083, %v7471_v20   ;;  %v4388_v38 = vpop.permute.xlu0 %4387  ;;  %v7477_v14 = vpop.eup %7476  ;;  %7502 = vpow2.f32 %v5749_v0 }
 0x32c   : > { %v4952_v41 = vrot.slane %v4388_v38, %v9091_v21  ;;  %v7479_v25 = vpop.eup %7478  ;;  %7504 = vrcp.f32 %v3691_v34  ;;  %v5975_v23 = vpop.f32.mrf.mxu1 }
 0x32d   : > { %v7481_v2 = vpop.eup %7480  ;;  %v3696_v5 = vadd.f32 1.0, %v7479_v25  ;;  %7506 = vpow2.f32 %v5688_v11  ;;  %v3253_v38 = vadd.f32 %v5975_v23, %v8626_v29  ;;  %v3192_v23 = vadd.f32 %v5914_v22, %v8626_v29 }
 0x32e   : > { %4474 = vperm.xlu1 %6082, %v7477_v14   ;;  %v4391_v50 = vpop.permute.xlu1 %4390  ;;  %v4953_v12 = vsel %vm9482_vm11, %v4952_v41, %v4948_v55  ;;  %v7483_v33 = vpop.eup %7482 }
 0x32f   : > { %4297 = vperm.xlu0 %6083, %v7475_v9   ;;  %v4957_v53 = vrot.slane %v4391_v50, %v9102_v10  ;;  %v7485_v20 = vpop.eup %7484  ;;  %7508 = vrcp.f32 %v3696_v5  ;;  %v3694_v0 = vadd.f32 1.0, %v7483_v33  ;;  %v3088_v45 = vpop.f32.mrf.mxu1  ;;  %v5755_v50 = vmul.f32 -1.442695, %v3253_v38 }
 0x330   : > { %v7487_v34 = vpop.eup %7486  ;;  %7510 = vpow2.f32 %v5691_v3  ;;  %v3697_v11 = vadd.f32 1.0, %v7485_v20  ;;  %v2845_v55 = vpop.f32.mrf.mxu0  ;;  %v3251_v3 = vadd.f32 %v8626_v29, %v3088_v45  ;;  %v5694_v45 = vmul.f32 -1.442695, %v3192_v23 }
 0x331   : > { %v9110_v57 = vsel %vm9483_vm12, %v4957_v53, %v4953_v12  ;;  %v7489_v1 = vpop.eup %7488  ;;  %7512 = vpow2.f32 %v5754_v36  ;;  %v3190_v37 = vadd.f32 %v8626_v29, %v2845_v55 }
 0x332   : > { %4489 = vperm.xlu1 %6082, %v7481_v2   ;;  %v7491_v9 = vpop.eup %7490  ;;  %7514 = vrcp.f32 %v3755_v27  ;;  %v3760_v41 = vadd.f32 1.0, %v7489_v1  ;;  %v5915_v53 = vpop.f32.mrf.mxu0  ;;  %v5753_v33 = vmul.f32 -1.442695, %v3251_v3 }
 0x333   : > { %4291 = vperm.xlu0 %6083, %v7487_v34   ;;  %v7493_v14 = vpop.eup %7492  ;;  %7516 = vrcp.f32 %v3694_v0  ;;  %v3193_v1 = vadd.f32 %v5915_v53, %v8626_v29 }
 0x334   : > { %v7495_v25 = vpop.eup %7494  ;;  %7518 = vpow2.f32 %v5689_v6  ;;  %v3695_v2 = vadd.f32 1.0, %v7493_v14 }
 0x335   : > { %v7497_v32 = vpop.eup %7496  ;;  %7520 = vrcp.f32 %v3760_v41  ;;  %v3758_v36 = vadd.f32 1.0, %v7495_v25  ;;  %v5692_v25 = vmul.f32 -1.442695, %v3190_v37  ;;  %v5695_v3 = vmul.f32 -1.442695, %v3193_v1 }
 0x336   : > { %4300 = vperm.xlu1 %6082, %v7491_v9   ;;  %v7499_v12 = vpop.eup %7498  ;;  %7522 = vrcp.f32 %v3697_v11  ;;  %v2848_v9 = vpop.f32.mrf.mxu0 }
 0x337   : > { %v7501_v5 = vpop.eup %7500  ;;  %7524 = vpow2.f32 %v5752_v56  ;;  %v3700_v0 = vadd.f32 1.0, %v7499_v12 }
 0x338   : > { %v7503_v20 = vpop.eup %7502  ;;  %7526 = vpow2.f32 %v5755_v50  ;;  %v3761_v6 = vadd.f32 1.0, %v7501_v5 }
 0x339   : > { %v7505_v34 = vpop.eup %7504  ;;  %7528 = vrcp.f32 %v3695_v2  ;;  %v3759_v41 = vadd.f32 1.0, %v7503_v20 }
 0x33a   : > { %4483 = vperm.xlu1 %6082, %v7497_v32   ;;  %v4214_v27 = vpop.permute.xlu0 %4213  ;;  %v7507_v38 = vpop.eup %7506  ;;  %7530 = vrcp.f32 %v3758_v36  ;;  %v3191_v32 = vadd.f32 %v8626_v29, %v2848_v9 }
 0x33b   : > { %7532 = vpow2.f32 %v5753_v33  ;;  %v3698_v2 = vadd.f32 1.0, %v7507_v38  ;;  %v4665_v37 = vrot.slane %v4214_v27, %v8978_v16 }
 0x33c   : > { %v7509_v22 = vpop.eup %7508  ;;  %7534 = vrcp.f32 %v3700_v0 }
 0x33d   : > { %v4217_v11 = vpop.permute.xlu1 %4216  ;;  %v7511_v56 = vpop.eup %7510  ;;  %4309 = vperm.xlu0 %6083, %v7509_v22   ;;  %7536 = vrcp.f32 %v3761_v6  ;;  %v5693_v6 = vmul.f32 -1.442695, %v3191_v32 }
 0x33e   : > { %4294 = vperm.xlu1 %6082, %v7505_v34   ;;  %v4208_v14 = vpop.permute.xlu0 %4207  ;;  %v7513_v55 = vpop.eup %7512  ;;  %7538 = vpow2.f32 %v5694_v45  ;;  %v3701_v23 = vadd.f32 1.0, %v7511_v56  ;;  %v4670_v1 = vrot.slane %v4217_v11, %v8996_v54 }
 0x33f   : > { %v4656_v50 = vrot.slane %v4208_v14, %v8982_v18  ;;  %v7515_v12 = vpop.eup %7514  ;;  %7540 = vrcp.f32 %v3759_v41  ;;  %v3764_v0 = vadd.f32 1.0, %v7513_v55 }
 0x340   : > { %v7517_v36 = vpop.eup %7516  ;;  %7542 = vpow2.f32 %v5692_v25 }
 0x341   : > { %v4211_v5 = vpop.permute.xlu1 %4210  ;;  %v7519_v20 = vpop.eup %7518  ;;  %4303 = vperm.xlu0 %6083, %v7517_v36   ;;  %7544 = vpow2.f32 %v5695_v3 }
 0x342   : > { %v4660_v53 = vrot.slane %v4211_v5, %v8973_v51  ;;  %4486 = vperm.xlu1 %6082, %v7515_v12   ;;  %v4406_v33 = vpop.permute.xlu0 %4405  ;;  %v7521_v34 = vpop.eup %7520  ;;  %7546 = vrcp.f32 %v3698_v2  ;;  %v3699_v55 = vadd.f32 1.0, %v7519_v20 }
 0x343   : > { %v7523_v45 = vpop.eup %7522  ;;  %7548 = vrcp.f32 %v3701_v23 }
 0x344   : > { %v4661_v38 = vsel %vm4553_vm0, %v4660_v53, %v4656_v50  ;;  %v7525_v14 = vpop.eup %7524  ;;  %7550 = vrcp.f32 %v3764_v0 }
 0x345   : > { %v5978_v9 = vpop.f32.mrf.mxu1  ;;  %v4666_v22 = vsel %vm4560_vm1, %v4665_v37, %v4661_v38  ;;  %v4409_v41 = vpop.permute.xlu1 %4408  ;;  %4501 = vperm.xlu0 %6083, %v7521_v34   ;;  %7552 = vpow2.f32 %v5693_v6  ;;  %v3762_v5 = vadd.f32 1.0, %v7525_v14 }
 0x346   : > { %v3256_v56 = vadd.f32 %v5978_v9, %v8626_v29  ;;  %4312 = vperm.xlu1 %6082, %v7523_v45   ;;  %v4400_v27 = vpop.permute.xlu0 %4399  ;;  %v4671_v25 = vsel %vm4567_vm2, %v4670_v1, %v4666_v22  ;;  %v7527_v11 = vpop.eup %7526  ;;  %v4986_v45 = vrot.slane %v4409_v41, %v8996_v54  ;;  %v4981_v9 = vrot.slane %v4406_v33, %v8978_v16 }
 0x347   : > { %v3101_v3 = vpop.f32.mrf.mxu1  ;;  %v4972_v12 = vrot.slane %v4400_v27, %v8982_v18  ;;  %v7529_v2 = vpop.eup %7528  ;;  %v3765_v6 = vadd.f32 1.0, %v7527_v11 }
 0x348   : > { %v5758_v32 = vmul.f32 -1.442695, %v3256_v56  ;;  %v3254_v50 = vadd.f32 %v8626_v29, %v3101_v3  ;;  %v7531_v53 = vpop.eup %7530 }
 0x349   : > { %v5979_v36 = vpop.f32.mrf.mxu1  ;;  %v4403_v23 = vpop.permute.xlu1 %4402  ;;  %4495 = vperm.xlu0 %6083, %v7531_v53  }
 0x34a   : > { %7554 = vpow2.f32 %v5758_v32  ;;  %v5756_v37 = vmul.f32 -1.442695, %v3254_v50  ;;  %v3257_v1 = vadd.f32 %v5979_v36, %v8626_v29  ;;  %v4976_v20 = vrot.slane %v4403_v23, %v8973_v51  ;;  %4306 = vperm.xlu1 %6082, %v7529_v2   ;;  %v4226_v0 = vpop.permute.xlu0 %4225  ;;  %v7533_v34 = vpop.eup %7532 }
 0x34b   : > { %7556 = vrcp.f32 %v3699_v55  ;;  %v3104_v38 = vpop.f32.mrf.mxu1  ;;  %v7535_v22 = vpop.eup %7534  ;;  %v3245_v36 = vadd.f32 %v8991_v47, %v8626_v29  ;;  %v3763_v53 = vadd.f32 1.0, %v7533_v34 }
 0x34c   : > { %7558 = vpow2.f32 %v5756_v37  ;;  %v5759_v14 = vmul.f32 -1.442695, %v3257_v1  ;;  %v3255_v56 = vadd.f32 %v8626_v29, %v3104_v38  ;;  %v4977_v27 = vsel %vm4553_vm0, %v4976_v20, %v4972_v12  ;;  %v7537_v3 = vpop.eup %7536 }
 0x34d   : > { %7560 = vrcp.f32 %v3762_v5  ;;  %v4982_v32 = vsel %vm4560_vm1, %v4981_v9, %v4977_v27  ;;  %v4229_v50 = vpop.permute.xlu1 %4228  ;;  %v7539_v55 = vpop.eup %7538  ;;  %4321 = vperm.xlu0 %6083, %v7535_v22   ;;  %v4685_v22 = vrot.slane %v4226_v0, %v9008_v7 }
 0x34e   : > { %7562 = vpow2.f32 %v5759_v14  ;;  %v5757_v11 = vmul.f32 -1.442695, %v3255_v56  ;;  %4504 = vperm.xlu1 %6082, %v7537_v3   ;;  %v4220_v41 = vpop.permute.xlu0 %4219  ;;  %v4987_v33 = vsel %vm4567_vm2, %v4986_v45, %v4982_v32  ;;  %v7541_v2 = vpop.eup %7540  ;;  %v3704_v23 = vadd.f32 1.0, %v7539_v55 }
 0x34f   : > { %7564 = vrcp.f32 %v3765_v6  ;;  %v4675_v12 = vrot.slane %v4220_v41, %v9015_v35  ;;  %v7543_v5 = vpop.eup %7542  ;;  %v5747_v6 = vmul.f32 -1.442695, %v3245_v36  ;;  %v4690_v3 = vrot.slane %v4229_v50, %v9005_v8 }
 0x350   : > { %7566 = vpow2.f32 %v5757_v11  ;;  %v7545_v37 = vpop.eup %7544  ;;  %v3702_v1 = vadd.f32 1.0, %v7543_v5 }
 0x351   : > { %7568 = vrcp.f32 %v3704_v23  ;;  %v4223_v20 = vpop.permute.xlu1 %4222  ;;  %v4676_v38 = vsel %vm4574_vm3, %v4675_v12, %v4671_v25  ;;  %v7547_v9 = vpop.eup %7546  ;;  %v3705_v34 = vadd.f32 1.0, %v7545_v37 }
 0x352   : > { %v4680_v45 = vrot.slane %v4223_v20, %v9026_v13  ;;  %4498 = vperm.xlu1 %6082, %v7541_v2   ;;  %v4418_v14 = vpop.permute.xlu0 %4417  ;;  %v7549_v47 = vpop.eup %7548  ;;  %4315 = vperm.xlu0 %6083, %v7547_v9   ;;  %7570 = vrcp.f32 %v3763_v53 }
 0x353   : > { %v7551_v56 = vpop.eup %7550  ;;  %7572 = vrcp.f32 %v3702_v1 }
 0x354   : > { %v5918_v27 = vpop.f32.mrf.mxu0  ;;  %v4681_v32 = vsel %vm4581_vm4, %v4680_v45, %v4676_v38  ;;  %v7553_v55 = vpop.eup %7552  ;;  %7574 = vpow2.f32 %v5747_v6 }
 0x355   : > { %v3196_v25 = vadd.f32 %v5918_v27, %v8626_v29  ;;  %v4421_v11 = vpop.permute.xlu1 %4420  ;;  %v4686_v41 = vsel %vm4588_vm5, %v4685_v22, %v4681_v32  ;;  %7576 = vrcp.f32 %v3705_v34  ;;  %v3703_v37 = vadd.f32 1.0, %v7553_v55 }
 0x356   : > { %v2861_v2 = vpop.f32.mrf.mxu0  ;;  %4324 = vperm.xlu1 %6082, %v7549_v47   ;;  %v4412_v36 = vpop.permute.xlu0 %4411  ;;  %v4691_v0 = vsel %vm4595_vm6, %v4690_v3, %v4686_v41  ;;  %4513 = vperm.xlu0 %6083, %v7551_v56   ;;  %v5001_v41 = vrot.slane %v4418_v14, %v9008_v7 }
 0x357   : > { %v7555_v23 = vpop.eup %7554  ;;  %v5698_v12 = vmul.f32 -1.442695, %v3196_v25  ;;  %v3194_v5 = vadd.f32 %v8626_v29, %v2861_v2  ;;  %v4991_v50 = vrot.slane %v4412_v36, %v9015_v35 }
 0x358   : > { %v7557_v53 = vpop.eup %7556  ;;  %v3768_v1 = vadd.f32 1.0, %v7555_v23  ;;  %v5919_v20 = vpop.f32.mrf.mxu0 }
 0x359   : > { %v7559_v38 = vpop.eup %7558  ;;  %7578 = vpow2.f32 %v5698_v12  ;;  %v5696_v9 = vmul.f32 -1.442695, %v3194_v5  ;;  %v3197_v45 = vadd.f32 %v5919_v20, %v8626_v29  ;;  %v4415_v47 = vpop.permute.xlu1 %4414  ;;  %v4992_v22 = vsel %vm4574_vm3, %v4991_v50, %v4987_v33 }
 0x35a   : > { %v7561_v6 = vpop.eup %7560  ;;  %7580 = vrcp.f32 %v3768_v1  ;;  %v3766_v27 = vadd.f32 1.0, %v7559_v38  ;;  %v2864_v3 = vpop.f32.mrf.mxu0  ;;  %v4996_v56 = vrot.slane %v4415_v47, %v9026_v13  ;;  %4318 = vperm.xlu1 %6082, %v7557_v53   ;;  %v5006_v33 = vrot.slane %v4421_v11, %v9005_v8 }
 0x35b   : > { %v4238_v32 = vpop.permute.xlu0 %4237  ;;  %v7563_v34 = vpop.eup %7562  ;;  %7582 = vpow2.f32 %v5696_v9  ;;  %v5699_v55 = vmul.f32 -1.442695, %v3197_v45  ;;  %v3195_v25 = vadd.f32 %v8626_v29, %v2864_v3  ;;  %4507 = vperm.xlu0 %6083, %v7561_v6  }
 0x35c   : > { %v7565_v2 = vpop.eup %7564  ;;  %7584 = vrcp.f32 %v3703_v37  ;;  %v4997_v36 = vsel %vm4581_vm4, %v4996_v56, %v4992_v22  ;;  %v3769_v1 = vadd.f32 1.0, %v7563_v34 }
 0x35d   : > { %v7567_v23 = vpop.eup %7566  ;;  %7586 = vpow2.f32 %v5699_v55  ;;  %v5697_v12 = vmul.f32 -1.442695, %v3195_v25  ;;  %v4241_v5 = vpop.permute.xlu1 %4240  ;;  %v5002_v50 = vsel %vm4588_vm5, %v5001_v41, %v4997_v36 }
 0x35e   : > { %v7569_v53 = vpop.eup %7568  ;;  %7588 = vrcp.f32 %v3766_v27  ;;  %v3767_v20 = vadd.f32 1.0, %v7567_v23  ;;  %4516 = vperm.xlu1 %6082, %v7565_v2   ;;  %v5007_v14 = vsel %vm4595_vm6, %v5006_v33, %v5002_v50  ;;  %v4705_v27 = vrot.slane %v4238_v32, %v9045_v62 }
 0x35f   : > { %v4232_v38 = vpop.permute.xlu0 %4231  ;;  %7590 = vpow2.f32 %v5697_v12  ;;  %4333 = vperm.xlu0 %6083, %v7569_v53   ;;  %v7571_v37 = vpop.eup %7570  ;;  %v4710_v56 = vrot.slane %v4241_v5, %v9081_v31 }
 0x360   : > { %v4695_v11 = vrot.slane %v4232_v38, %v9050_v59  ;;  %7592 = vrcp.f32 %v3767_v20  ;;  %v7573_v47 = vpop.eup %7572 }
 0x361   : > { %v4235_v9 = vpop.permute.xlu1 %4234  ;;  %7594 = vrcp.f32 %v3769_v1  ;;  %v7575_v3 = vpop.eup %7574 }
 0x362   : > { %v4696_v45 = vsel %vm4602_vm7, %v4695_v11, %v4691_v0  ;;  %v4700_v22 = vrot.slane %v4235_v9, %v9067_v28  ;;  %4510 = vperm.xlu1 %6082, %v7571_v37   ;;  %v7577_v55 = vpop.eup %7576 }
 0x363   : > { %v4430_v6 = vpop.permute.xlu0 %4429  ;;  %4327 = vperm.xlu0 %6083, %v7573_v47  }
 0x364   : > { %v4701_v34 = vsel %vm4609_vm8, %v4700_v22, %v4696_v45  ;;  %v5021_v45 = vrot.slane %v4430_v6, %v9045_v62 }
 0x365   : > { %v4433_v25 = vpop.permute.xlu1 %4432  ;;  %v4706_v41 = vsel %vm4616_vm9, %v4705_v27, %v4701_v34  ;;  %v4639_v34 = vadd.s32 4294967184, %v8961_v17 }
 0x366   : > { %v7579_v2 = vpop.eup %7578  ;;  %4336 = vperm.xlu1 %6082, %v7577_v55   ;;  %v4711_v33 = vsel %vm9481_vm10, %v4710_v56, %v4706_v41  ;;  %v5026_v22 = vrot.slane %v4433_v25, %v9081_v31 }
 0x367   : > { %v4424_v0 = vpop.permute.xlu0 %4423  ;;  %v7581_v36 = vpop.eup %7580  ;;  %v3708_v23 = vadd.f32 1.0, %v7579_v2  ;;  %v4646_v2 = vadd.s32 4294967176, %v8961_v17 }
 0x368   : > { %v5011_v12 = vrot.slane %v4424_v0, %v9050_v59  ;;  %v7583_v32 = vpop.eup %7582  ;;  %4525 = vperm.xlu0 %6083, %v7581_v36  }
 0x369   : > { %v7585_v50 = vpop.eup %7584  ;;  %7596 = vrcp.f32 %v3708_v23  ;;  %v3706_v5 = vadd.f32 1.0, %v7583_v32  ;;  %v4427_v53 = vpop.permute.xlu1 %4426 }
 0x36a   : > { %v5012_v1 = vsel %vm4602_vm7, %v5011_v12, %v5007_v14  ;;  %v7587_v20 = vpop.eup %7586  ;;  %v5016_v38 = vrot.slane %v4427_v53, %v9067_v28  ;;  %4330 = vperm.xlu1 %6082, %v7585_v50   ;;  %v3757_v12 = vadd.f32 1.0, %v7575_v3 }
 0x36b   : > { %v4250_v11 = vpop.permute.xlu0 %4249  ;;  %v7589_v37 = vpop.eup %7588  ;;  %v3709_v9 = vadd.f32 1.0, %v7587_v20  ;;  %7598 = vrcp.f32 %v3706_v5  ;;  %v9179_v5 = vsub.s32 %v4639_v34, %v8084_v4  ;;  %v9184_v20 = vsub.s32 %v4646_v2, %v8084_v4 }
 0x36c   : > { %v7591_v47 = vpop.eup %7590  ;;  %4519 = vperm.xlu0 %6083, %v7589_v37   ;;  %v5017_v27 = vsel %vm4609_vm8, %v5016_v38, %v5012_v1 }
 0x36d   : > { %v7593_v56 = vpop.eup %7592  ;;  %7600 = vrcp.f32 %v3709_v9  ;;  %v3707_v14 = vadd.f32 1.0, %v7591_v47  ;;  %v4253_v55 = vpop.permute.xlu1 %4252  ;;  %v5022_v41 = vsel %vm4616_vm9, %v5021_v45, %v5017_v27  ;;  %v4725_v47 = vrot.slane %v4250_v11, %v9179_v5 }
 0x36e   : > { %v5982_v0 = vpop.f32.mrf.mxu1  ;;  %4522 = vperm.xlu1 %6082, %v7593_v56   ;;  %v5027_v36 = vsel %vm9481_vm10, %v5026_v22, %v5022_v41  ;;  %v7595_v23 = vpop.eup %7594  ;;  %v4730_v56 = vrot.slane %v4253_v55, %v9184_v20 }
 0x36f   : > { %v4244_v6 = vpop.permute.xlu0 %4243  ;;  %v3260_v32 = vadd.f32 %v5982_v0, %v8626_v29  ;;  %7602 = vrcp.f32 %v3707_v14 }
 0x370   : > { %v4715_v25 = vrot.slane %v4244_v6, %v9091_v21  ;;  %v3117_v50 = vpop.f32.mrf.mxu1  ;;  %4528 = vperm.xlu0 %6083, %v7595_v23   ;;  %7604 = vrcp.f32 %v3757_v12 }
 0x371   : > { %v3258_v53 = vadd.f32 %v8626_v29, %v3117_v50  ;;  %v4247_v17 = vpop.permute.xlu1 %4246  ;;  %v5762_v22 = vmul.f32 -1.442695, %v3260_v32 }
 0x372   : > { %v4716_v1 = vsel %vm9482_vm11, %v4715_v25, %v4711_v33  ;;  %v5983_v38 = vpop.f32.mrf.mxu1  ;;  %v4720_v3 = vrot.slane %v4247_v17, %v9102_v10 }
 0x373   : > { %v4442_v37 = vpop.permute.xlu0 %4441  ;;  %v5760_v9 = vmul.f32 -1.442695, %v3258_v53  ;;  %v3261_v45 = vadd.f32 %v5983_v38, %v8626_v29 }
 0x374   : > { %v3120_v27 = vpop.f32.mrf.mxu1  ;;  %v4721_v33 = vsel %vm9483_vm12, %v4720_v3, %v4716_v1  ;;  %v5041_v53 = vrot.slane %v4442_v37, %v9179_v5 }
 0x375   : > { %7606 = vpow2.f32 %v5760_v9  ;;  %v5763_v4 = vmul.f32 -1.442695, %v3261_v45  ;;  %v3259_v34 = vadd.f32 %v8626_v29, %v3120_v27  ;;  %v4726_v14 = vsel %vm4644_vm13, %v4725_v47, %v4721_v33  ;;  %v4445_v41 = vpop.permute.xlu1 %4444 }
 0x376   : > { %v7597_v2 = vpop.eup %7596  ;;  %v9194_v0 = vsel %vm4651_vm14, %v4730_v56, %v4726_v14  ;;  %v5046_v17 = vrot.slane %v4445_v41, %v9184_v20 }
 0x377   : > { %v4436_v6 = vpop.permute.xlu0 %4435  ;;  %7608 = vpow2.f32 %v5763_v4  ;;  %v5761_v11 = vmul.f32 -1.442695, %v3259_v34  ;;  %4345 = vperm.xlu0 %6083, %v7597_v2  }
 0x378   : > { %v5031_v23 = vrot.slane %v4436_v6, %v9091_v21  ;;  %7610 = vpow2.f32 %v5762_v22  ;;  %v7599_v55 = vpop.eup %7598 }
 0x379   : > { %7612 = vpow2.f32 %v5761_v11  ;;  %v4439_v25 = vpop.permute.xlu1 %4438 }
 0x37a   : > { %v5032_v12 = vsel %vm9482_vm11, %v5031_v23, %v5027_v36  ;;  %v7601_v29 = vpop.eup %7600  ;;  %v5036_v32 = vrot.slane %v4439_v25, %v9102_v10 }
 0x37b   : > { %v4262_v50 = vpop.permute.xlu0 %4261  ;;  %4348 = vperm.xlu1 %6082, %v7601_v29   ;;  %4339 = vperm.xlu0 %6083, %v7599_v55  }
 0x37c   : > { %v5037_v1 = vsel %vm9483_vm12, %v5036_v32, %v5032_v12  ;;  %v7603_v9 = vpop.eup %7602  ;;  %v4744_v34 = vrot.slane %v4262_v50, %v8978_v16 }
 0x37d   : > { %v5042_v38 = vsel %vm4644_vm13, %v5041_v53, %v5037_v1  ;;  %v4265_v3 = vpop.permute.xlu1 %4264  ;;  %v7605_v22 = vpop.eup %7604 }
 0x37e   : > { %v9204_v47 = vsel %vm4651_vm14, %v5046_v17, %v5042_v38  ;;  %v4749_v41 = vrot.slane %v4265_v3, %v8996_v54 }
 0x37f   : > { %v4256_v45 = vpop.permute.xlu0 %4255  ;;  %4342 = vperm.xlu1 %6082, %v7603_v9  }
 0x380   : > { %v4735_v36 = vrot.slane %v4256_v45, %v8982_v18 }
 0x381   : > { %v4259_v27 = vpop.permute.xlu1 %4258 }
 0x382   : > { %v7607_v56 = vpop.eup %7606  ;;  %v4739_v37 = vrot.slane %v4259_v27, %v8973_v51 }
 0x383   : > { %v4454_v33 = vpop.permute.xlu0 %4453  ;;  %v3770_v4 = vadd.f32 1.0, %v7607_v56  ;;  %4492 = vperm.xlu1 %6082, %v7605_v22  }
 0x384   : > { %v7609_v14 = vpop.eup %7608  ;;  %v4740_v2 = vsel %vm4553_vm0, %v4739_v37, %v4735_v36  ;;  %v5060_v3 = vrot.slane %v4454_v33, %v8978_v16 }
 0x385   : > { %v7611_v6 = vpop.eup %7610  ;;  %7614 = vrcp.f32 %v3770_v4  ;;  %v3773_v11 = vadd.f32 1.0, %v7609_v14  ;;  %v4745_v23 = vsel %vm4560_vm1, %v4744_v34, %v4740_v2  ;;  %v4457_v55 = vpop.permute.xlu1 %4456 }
 0x386   : > { %v7613_v25 = vpop.eup %7612  ;;  %v4750_v29 = vsel %vm4567_vm2, %v4749_v41, %v4745_v23  ;;  %v3772_v50 = vadd.f32 1.0, %v7611_v6  ;;  %v5065_v9 = vrot.slane %v4457_v55, %v8996_v54  ;;  %v4552_v55 = vrot.slane %v8925_v24, %v8973_v51 }
 0x387   : > { %v4448_v12 = vpop.permute.xlu0 %4447  ;;  %7616 = vrcp.f32 %v3773_v11  ;;  %v3771_v32 = vadd.f32 1.0, %v7613_v25 }
 0x388   : > { %v5051_v53 = vrot.slane %v4448_v12, %v8982_v18 }
 0x389   : > { %7618 = vrcp.f32 %v3771_v32  ;;  %v4451_v17 = vpop.permute.xlu1 %4450 }
 0x38a   : > { %v5055_v1 = vrot.slane %v4451_v17, %v8973_v51  ;;  %7620 = vrcp.f32 %v3772_v50  ;;  %v4547_v50 = vrot.slane %v8900_v39, %v8982_v18 }
 0x38b   : > { %v4274_v38 = vpop.permute.xlu0 %4273 }
 0x38c   : > { %v5056_v45 = vsel %vm4553_vm0, %v5055_v1, %v5051_v53  ;;  %v4764_v2 = vrot.slane %v4274_v38, %v9008_v7  ;;  %v4554_v1 = vsel %vm4553_vm0, %v4552_v55, %v4547_v50 }
 0x38d   : > { %v5061_v36 = vsel %vm4560_vm1, %v5060_v3, %v5056_v45  ;;  %v4277_v22 = vpop.permute.xlu1 %4276 }
 0x38e   : > { %v5066_v56 = vsel %vm4567_vm2, %v5065_v9, %v5061_v36  ;;  %v4769_v11 = vrot.slane %v4277_v22, %v9005_v8  ;;  %v4559_v9 = vrot.slane %v8902_v63, %v8978_v16 }
 0x38f   : > { %v4268_v27 = vpop.permute.xlu0 %4267 }
 0x390   : > { %v4754_v37 = vrot.slane %v4268_v27, %v9015_v35  ;;  %v4561_v39 = vsel %vm4560_vm1, %v4559_v9, %v4554_v1  ;;  %v4573_v27 = vrot.slane %v8937_v30, %v9015_v35  ;;  %v4580_v30 = vrot.slane %v8940_v48, %v9026_v13 }
 0x391   : > { %v4271_v4 = vpop.permute.xlu1 %4270 }
 0x392   : > { %v4755_v34 = vsel %vm4574_vm3, %v4754_v37, %v4750_v29  ;;  %v7615_v14 = vpop.eup %7614  ;;  %v4759_v41 = vrot.slane %v4271_v4, %v9026_v13 }
 0x393   : > { %v4466_v33 = vpop.permute.xlu0 %4465  ;;  %4531 = vperm.xlu0 %6083, %v7615_v14  }
 0x394   : > { %v7617_v6 = vpop.eup %7616  ;;  %v4760_v23 = vsel %vm4581_vm4, %v4759_v41, %v4755_v34  ;;  %v5080_v22 = vrot.slane %v4466_v33, %v9008_v7 }
 0x395   : > { %4540 = vperm.xlu1 %6082, %v7617_v6   ;;  %v4469_v25 = vpop.permute.xlu1 %4468  ;;  %v4765_v12 = vsel %vm4588_vm5, %v4764_v2, %v4760_v23 }
 0x396   : > { %v7619_v29 = vpop.eup %7618  ;;  %v4770_v53 = vsel %vm4595_vm6, %v4769_v11, %v4765_v12  ;;  %v5085_v37 = vrot.slane %v4469_v25, %v9005_v8 }
 0x397   : > { %v4460_v32 = vpop.permute.xlu0 %4459  ;;  %4534 = vperm.xlu0 %6083, %v7619_v29   ;;  %v7621_v24 = vpop.eup %7620  ;;  %v4587_v29 = vrot.slane %v8931_v58, %v9008_v7 }
 0x398   : > { %v5070_v17 = vrot.slane %v4460_v32, %v9015_v35 }
 0x399   : > { %v4463_v38 = vpop.permute.xlu1 %4462 }
 0x39a   : > { %v5071_v3 = vsel %vm4574_vm3, %v5070_v17, %v5066_v56  ;;  %v5075_v45 = vrot.slane %v4463_v38, %v9026_v13  ;;  %v4566_v56 = vrot.slane %v8913_v43, %v8996_v54 }
 0x39b   : > { %v4286_v36 = vpop.permute.xlu0 %4285  ;;  %4537 = vperm.xlu0 %6083, %v7621_v24   ;;  %v4594_v24 = vrot.slane %v8935_v61, %v9005_v8 }
 0x39c   : > { %v5076_v4 = vsel %vm4581_vm4, %v5075_v45, %v5071_v3  ;;  %v4568_v33 = vsel %vm4567_vm2, %v4566_v56, %v4561_v39  ;;  %v4784_v12 = vrot.slane %v4286_v36, %v9045_v62 }
 0x39d   : > { %v4289_v34 = vpop.permute.xlu1 %4288  ;;  %v5081_v63 = vsel %vm4588_vm5, %v5080_v22, %v5076_v4  ;;  %v4575_v6 = vsel %vm4574_vm3, %v4573_v27, %v4568_v33 }
 0x39e   : > { %v5086_v41 = vsel %vm4595_vm6, %v5085_v37, %v5081_v63  ;;  %v4582_v25 = vsel %vm4581_vm4, %v4580_v30, %v4575_v6  ;;  %v4789_v32 = vrot.slane %v4289_v34, %v9081_v31  ;;  %v4629_v6 = vrot.slane %v9064_v49, %v9091_v21 }
 0x39f   : > { %v4280_v14 = vpop.permute.xlu0 %4279  ;;  %v4589_v1 = vsel %vm4588_vm5, %v4587_v29, %v4582_v25  ;;  %v4622_v30 = vrot.slane %v8967_v26, %v9081_v31  ;;  %v4643_v49 = vrot.slane %v9042_v52, %v9179_v5 }
 0x3a0   : > { %v4774_v2 = vrot.slane %v4280_v14, %v9050_v59  ;;  %v4596_v9 = vsel %vm4595_vm6, %v4594_v24, %v4589_v1  ;;  %v4615_v14 = vrot.slane %v8958_v15, %v9045_v62  ;;  %v4650_v1 = vrot.slane %v9059_v60, %v9184_v20 }
 0x3a1   : > { %v4283_v11 = vpop.permute.xlu1 %4282 }
 0x3a2   : > { %v4775_v23 = vsel %vm4602_vm7, %v4774_v2, %v4770_v53  ;;  %v4779_v43 = vrot.slane %v4283_v11, %v9067_v28  ;;  %v4601_v53 = vrot.slane %v8970_v46, %v9050_v59  ;;  %v4608_v46 = vrot.slane %v8988_v40, %v9067_v28 }
 0x3a3   : > { %v4478_v55 = vpop.permute.xlu0 %4477 }
 0x3a4   : > { %v4780_v50 = vsel %vm4609_vm8, %v4779_v43, %v4775_v23  ;;  %v4603_v22 = vsel %vm4602_vm7, %v4601_v53, %v4596_v9  ;;  %v5100_v37 = vrot.slane %v4478_v55, %v9045_v62  ;;  %v4636_v55 = vrot.slane %v9077_v42, %v9102_v10 }
 0x3a5   : > { %v4481_v17 = vpop.permute.xlu1 %4480  ;;  %v4785_v48 = vsel %vm4616_vm9, %v4784_v12, %v4780_v50  ;;  %v4610_v56 = vsel %vm4609_vm8, %v4608_v46, %v4603_v22 }
 0x3a6   : > { %v4790_v3 = vsel %vm9481_vm10, %v4789_v32, %v4785_v48  ;;  %v5105_v4 = vrot.slane %v4481_v17, %v9081_v31  ;;  %v4617_v40 = vsel %vm4616_vm9, %v4615_v14, %v4610_v56 }
 0x3a7   : > { %v4472_v38 = vpop.permute.xlu0 %4471  ;;  %v4624_v43 = vsel %vm9481_vm10, %v4622_v30, %v4617_v40 }
 0x3a8   : > { %v5090_v58 = vrot.slane %v4472_v38, %v9050_v59  ;;  %v4631_v15 = vsel %vm9482_vm11, %v4629_v6, %v4624_v43 }
 0x3a9   : > { %v4475_v45 = vpop.permute.xlu1 %4474  ;;  %v4638_v29 = vsel %vm9483_vm12, %v4636_v55, %v4631_v15 }
 0x3aa   : > { %v5091_v36 = vsel %vm4602_vm7, %v5090_v58, %v5086_v41  ;;  %v5095_v39 = vrot.slane %v4475_v45, %v9067_v28  ;;  %v4645_v50 = vsel %vm4644_vm13, %v4643_v49, %v4638_v29 }
 0x3ab   : > { %v4298_v27 = vpop.permute.xlu0 %4297  ;;  %v4652_v52 = vsel %vm4651_vm14, %v4650_v1, %v4645_v50 }
 0x3ac   : > { %v5096_v61 = vsel %vm4609_vm8, %v5095_v39, %v5091_v36  ;;  %v4804_v42 = vrot.slane %v4298_v27, %v9179_v5  ;;  %v5207_v58 = vsel %vm5206_vm15, %v9194_v0, %v4652_v52  ;;  %vm5210_vm15 = vcmask 1043459  }
 0x3ad   : > { %v4490_v34 = vpop.permute.xlu1 %4489  ;;  %v5101_v63 = vsel %vm4616_vm9, %v5100_v37, %v5096_v61 }
 0x3ae   : > { %v5106_v33 = vsel %vm9481_vm10, %v5105_v4, %v5101_v63  ;;  %vm5208_vm10 = vcmask 1042434   ;;  %v5120_v36 = vrot.slane %v4490_v34, %v9179_v5 }
 0x3af   : > { %v4292_v41 = vpop.permute.xlu0 %4291 }
 0x3b0   : > { %v4794_v2 = vrot.slane %v4292_v41, %v9091_v21 }
 0x3b1   : > { %v4301_v11 = vpop.permute.xlu1 %4300 }
 0x3b2   : > { %v4795_v23 = vsel %vm9482_vm11, %v4794_v2, %v4790_v3  ;;  %v4809_v53 = vrot.slane %v4301_v11, %v9184_v20 }
 0x3b5   : > { %v4484_v25 = vpop.permute.xlu1 %4483 }
 0x3b6   : > { %v5110_v12 = vrot.slane %v4484_v25, %v9091_v21 }
 0x3b8   : > { %v5111_v26 = vsel %vm9482_vm11, %v5110_v12, %v5106_v33  ;;  %v4310_v17 = vpop.permute.xlu0 %4309 }
 0x3b9   : > { %v4295_v32 = vpop.permute.xlu1 %4294  ;;  %v4823_v25 = vrot.slane %v4310_v17, %v8978_v16 }
 0x3ba   : > { %v4799_v48 = vrot.slane %v4295_v32, %v9102_v10 }
 0x3bc   : > { %v4800_v38 = vsel %vm9483_vm12, %v4799_v48, %v4795_v23  ;;  %v4304_v45 = vpop.permute.xlu0 %4303 }
 0x3bd   : > { %v4805_v3 = vsel %vm4644_vm13, %v4804_v42, %v4800_v38  ;;  %v4487_v24 = vpop.permute.xlu1 %4486  ;;  %v4814_v43 = vrot.slane %v4304_v45, %v8982_v18 }
 0x3be   : > { %v4810_v9 = vsel %vm4651_vm14, %v4809_v53, %v4805_v3  ;;  %v5115_v60 = vrot.slane %v4487_v24, %v9102_v10 }
 0x3bf   : > { %v9312_v22 = vsel %vm5208_vm10, %v4810_v9, %v5207_v58  ;;  %vm9496_vm10 = vcmask 786112  }
 0x3c0   : > { %v5116_v39 = vsel %vm9483_vm12, %v5115_v60, %v5111_v26  ;;  %v9318_v37 = vpop.permute.xlu0 %4501 }
 0x3c1   : > { %v4313_v27 = vpop.permute.xlu1 %4312  ;;  %v9316_v46 = vsel %vm4644_vm13, %v5120_v36, %v5116_v39 }
 0x3c2   : > { %v4828_v26 = vrot.slane %v4313_v27, %v8996_v54 }
 0x3c4   : > { %v9320_v61 = vpop.permute.xlu0 %4495 }
 0x3c5   : > { %v4307_v4 = vpop.permute.xlu1 %4306 }
 0x3c6   : > { %v4818_v23 = vrot.slane %v4307_v4, %v8973_v51 }
 0x3c8   : > { %v4322_v56 = vpop.permute.xlu0 %4321  ;;  %v4819_v15 = vsel %vm4553_vm0, %v4818_v23, %v4814_v43 }
 0x3c9   : > { %v9322_v0 = vpop.permute.xlu1 %4504  ;;  %v4824_v29 = vsel %vm4560_vm1, %v4823_v25, %v4819_v15  ;;  %v4843_v17 = vrot.slane %v4322_v56, %v9008_v7  ;;  %v4962_v15 = vrot.slane %v9084_v19, %v9179_v5  ;;  %v5130_v19 = vrot.slane %v9320_v61, %v8982_v18 }
 0x3ca   : > { %v4829_v48 = vsel %vm4567_vm2, %v4828_v26, %v4824_v29 }
 0x3cd   : > { %v9324_v63 = vpop.permute.xlu1 %4498  ;;  %v4316_v14 = vpop.permute.xlu0 %4315 }
 0x3ce   : > { %v4833_v49 = vrot.slane %v4316_v14, %v9015_v35 }
 0x3d0   : > { %v4834_v1 = vsel %vm4574_vm3, %v4833_v49, %v4829_v48 }
 0x3d1   : > { %v4325_v34 = vpop.permute.xlu1 %4324  ;;  %v9326_v41 = vpop.permute.xlu0 %4513 }
 0x3d2   : > { %v4848_v24 = vrot.slane %v4325_v34, %v9005_v8 }
 0x3d5   : > { %v4319_v33 = vpop.permute.xlu1 %4318 }
 0x3d6   : > { %v9328_v2 = vpop.permute.xlu0 %4507  ;;  %v4838_v32 = vrot.slane %v4319_v33, %v9026_v13 }
 0x3d8   : > { %v4839_v53 = vsel %vm4581_vm4, %v4838_v32, %v4834_v1  ;;  %v4967_v32 = vrot.slane %v9094_v44, %v9184_v20  ;;  %v5139_v44 = vrot.slane %v9318_v37, %v8978_v16 }
 0x3d9   : > { %v9330_v40 = vpop.permute.xlu1 %4516  ;;  %v4844_v52 = vsel %vm4588_vm5, %v4843_v17, %v4839_v53 }
 0x3da   : > { %v4334_v6 = vpop.permute.xlu0 %4333  ;;  %v4849_v45 = vsel %vm4595_vm6, %v4848_v24, %v4844_v52 }
 0x3db   : > { %v4863_v27 = vrot.slane %v4334_v6, %v9045_v62  ;;  %v5134_v6 = vrot.slane %v9324_v63, %v8973_v51 }
 0x3dd   : > { %v9332_v11 = vpop.permute.xlu1 %4510 }
 0x3de   : > { %v4328_v30 = vpop.permute.xlu0 %4327 }
 0x3df   : > { %v4853_v3 = vrot.slane %v4328_v30, %v9050_v59 }
 0x3e1   : > { %v4337_v12 = vpop.permute.xlu1 %4336  ;;  %v4854_v60 = vsel %vm4602_vm7, %v4853_v3, %v4849_v45  ;;  %v5149_v3 = vrot.slane %v9328_v2, %v9015_v35 }
 0x3e2   : > { %v4868_v33 = vrot.slane %v4337_v12, %v9081_v31  ;;  %v4963_v12 = vsel %vm4644_vm13, %v4962_v15, %v9110_v57 }
 0x3e3   : > { %v9337_v55 = vpop.permute.xlu0 %4525  ;;  %v4968_v1 = vsel %vm4651_vm14, %v4967_v32, %v4963_v12 }
 0x3e5   : > { %v4331_v42 = vpop.permute.xlu1 %4330 }
 0x3e6   : > { %v4858_v58 = vrot.slane %v4331_v42, %v9067_v28  ;;  %v5135_v42 = vsel %vm4553_vm0, %v5134_v6, %v5130_v19  ;;  %vm9497_vm0 = vcmask 786112  }
 0x3e7   : > { %v9344_v50 = vpop.permute.xlu0 %4519  ;;  %v5140_v52 = vsel %vm4560_vm1, %v5139_v44, %v5135_v42  ;;  %vm9498_vm1 = vcmask 851712  }
 0x3e8   : > { %v4859_v39 = vsel %vm4609_vm8, %v4858_v58, %v4854_v60  ;;  %v5144_v58 = vrot.slane %v9322_v0, %v8996_v54  ;;  %v5169_v35 = vrot.slane %v9344_v50, %v9050_v59  ;;  %v5164_v54 = vrot.slane %v9330_v40, %v9005_v8 }
 0x3e9   : > { %v4523_v9 = vpop.permute.xlu1 %4522  ;;  %v4864_v4 = vsel %vm4616_vm9, %v4863_v27, %v4859_v39 }
 0x3ea   : > { %v4869_v30 = vsel %vm9496_vm10, %v4868_v33, %v4864_v4  ;;  %vm5212_vm10 = vcmask 1044484   ;;  %v5145_v16 = vsel %vm4567_vm2, %v5144_v58, %v5140_v52  ;;  %v5174_v0 = vrot.slane %v4523_v9, %v9067_v28 }
 0x3eb   : > { %v9350_v38 = vpop.permute.xlu0 %4528  ;;  %v5150_v37 = vsel %vm4574_vm3, %v5149_v3, %v5145_v16  ;;  %vm9499_vm2 = vcmask 917312   ;;  %vm5218_vm3 = vcmask 1047559  }
 0x3ec   : > { %v5184_v8 = vrot.slane %v9350_v38, %v9081_v31 }
 0x3f2   : > { %v4346_v36 = vpop.permute.xlu0 %4345 }
 0x3f3   : > { %v4883_v29 = vrot.slane %v4346_v36, %v9179_v5 }
 0x3f6   : > { %v4349_v56 = vpop.permute.xlu1 %4348  ;;  %v4340_v14 = vpop.permute.xlu0 %4339 }
 0x3f7   : > { %v4873_v34 = vrot.slane %v4340_v14, %v9091_v21  ;;  %v4888_v49 = vrot.slane %v4349_v56, %v9184_v20 }
 0x3f9   : > { %v4874_v23 = vsel %vm9482_vm11, %v4873_v34, %v4869_v30  ;;  %vm5214_vm11 = vcmask 1045509  }
 0x3fa   : > { %v4343_v43 = vpop.permute.xlu1 %4342 }
 0x3fb   : > { %v4878_v25 = vrot.slane %v4343_v43, %v9102_v10 }
 0x3fd   : > { %v4879_v26 = vsel %vm9483_vm12, %v4878_v25, %v4874_v23  ;;  %vm5216_vm12 = vcmask 1046534  }
 0x3fe   : > { %v4884_v48 = vsel %vm4644_vm13, %v4883_v29, %v4879_v26  ;;  %v4493_v51 = vpop.permute.xlu1 %4492 }
 0x3ff   : > { %v4889_v63 = vsel %vm4651_vm14, %v4888_v49, %v4884_v48  ;;  %v5125_v57 = vrot.slane %v4493_v51, %v9184_v20 }
 0x400   : > { %v5211_v53 = vsel %vm5210_vm15, %v4889_v63, %v9312_v22  ;;  %v5154_v22 = vrot.slane %v9332_v11, %v9026_v13 }
 0x401   : > { %v5213_v18 = vsel %vm5212_vm10, %v4968_v1, %v5211_v53  ;;  %v5126_v61 = vsel %vm4651_vm14, %v5125_v57, %v9316_v46 }
 0x402   : > { %v5215_v17 = vsel %vm5214_vm11, %v9204_v47, %v5213_v18  ;;  %v5155_v46 = vsel %vm4581_vm4, %v5154_v22, %v5150_v37  ;;  %v5159_v47 = vrot.slane %v9326_v41, %v9008_v7  ;;  %v5179_v7 = vrot.slane %v9337_v55, %v9045_v62 }
 0x403   : > { %v5217_v24 = vsel %vm5216_vm12, %v5126_v61, %v5215_v17 }
 0x404   : > { %v5160_v45 = vsel %vm4588_vm5, %v5159_v47, %v5155_v46 }
 0x405   : > { %v5165_v13 = vsel %vm4595_vm6, %v5164_v54, %v5160_v45 }
 0x406   : > { %v5170_v11 = vsel %vm4602_vm7, %v5169_v35, %v5165_v13 }
 0x407   : > { %v5175_v60 = vsel %vm4609_vm8, %v5174_v0, %v5170_v11 }
 0x408   : > { %v5180_v59 = vsel %vm4616_vm9, %v5179_v7, %v5175_v60 }
 0x409   : > { %v5185_v9 = vsel %vm9497_vm0, %v5184_v8, %v5180_v59 }
 0x40e   : > { %v4532_v2 = vpop.permute.xlu0 %4531 }
 0x40f   : > { %v5189_v50 = vrot.slane %v4532_v2, %v9091_v21 }
 0x410   : > { %v4541_v40 = vpop.permute.xlu1 %4540 }
 0x411   : > { %v5190_v39 = vsel %vm9498_vm1, %v5189_v50, %v5185_v9  ;;  %v5204_v21 = vrot.slane %v4541_v40, %v9184_v20 }
 0x412   : > { %v4535_v41 = vpop.permute.xlu0 %4534 }
 0x413   : > { %v5194_v28 = vrot.slane %v4535_v41, %v9102_v10 }
 0x415   : > { %v5195_v62 = vsel %vm9499_vm2, %v5194_v28, %v5190_v39 }
 0x416   : > { %v4538_v36 = vpop.permute.xlu0 %4537 }
 0x417   : > { %v5199_v27 = vrot.slane %v4538_v36, %v9179_v5 }
 0x419   : > { %v5200_v31 = vsel %vm4644_vm13, %v5199_v27, %v5195_v62 }
 0x41a   : > { %v5205_v10 = vsel %vm4651_vm14, %v5204_v21, %v5200_v31 }
 0x41b   : > { %v5219_v5 = vsel %vm5218_vm3, %v5205_v10, %v5217_v24 }
 0x41c   : > { %5221 = vst [vmem:[%s356_s3] sm:$0xff] %v5219_v5 }
 0x41d   : > { %7813 = shalt.err (!%p7810_p3)
}
 0x41e   : > { %s7814_s11 = scalar_lea.hbm %s9430_s5, 128  ;;  %s7818_s8 = scalar_lea.hbm %s9478_s6, 256 }
 0x41f   : > { %p7815_p2 = scmp.ne.s32.totalorder %s9430_s5, %s7814_s11  ;;  %p7819_p12 = scmp.lt.s32.totalorder %s9430_s5, %s9478_s6 }
 0x420   : > { %p7820_p13 = scmp.lt.s32.totalorder %s7818_s8, %s7814_s11 }
 0x421   : > { %p7816_p6 = pnand %p7815_p2, %p8019_p0 }
 0x422   : > { %p7821_p11 = por %p7820_p13, %p7819_p12 }
 0x423   : > { %p7817_p9 = pneg %p7816_p6 }
 0x425   : > { %p7822_p1 = pnand %p7821_p11, %p7817_p9 }
 0x427   : > { %7825 = shalt.err (!%p7822_p1)
}
 0x428   : > { %6008 = dma.vmem_to_hbm [thread:$0]  (%p8019_p0), %s5238_s30, 128, %s9430_s5, %s5223_s26  }
 0x429 PF: > { %s5249_s15 = sand.u32 1, %s7868_s23   ;;  %p9500_p4 = scmp.ne.s32.totalorder %s9487_s7, 0 }
 0x42a   : > { %p9501_p8 = scmp.ge.s32.totalorder %s7888_s28, 2  ;;  %s5250_s16 = scalar_lea.sflag [#allocation5], %s5249_s15 }
 0x42c   : > { %p6022_p10 = pnand %p9501_p8, %p9500_p4 }
 0x42e   : > { %p6023_p5 = pneg %p6022_p10 }
 0x430   : > { %7863 = dma.done.wait (%p6023_p5), %s5250_s16, 128  }
 0x431   : > { %7865 = vsyncadd (%p6023_p5), %s5250_s16, 4294967168  ;;  %s26_s28 = sadd.s32 1, %s7888_s28   ;;  %s9502_s26 = sld [smem:[#allocation14_spill]] }
 0x432   : > { %p23_p7 = scmp.ge.s32.totalorder %s26_s28, 4   ;;  %s9503_s27 = sld [smem:[#allocation15_spill]] }
 0x433   : > { %s9504_s23 = smov %s7872_s24  ;;  %s9505_s24 = smov %s7876_s25 }
 0x434   : > { %s9506_s25 = smov %s8028_s9  ;;  %25 = sbr.rel (!%p23_p7) target bundleno = 11 (0xb), region = 110 }
 0x439   :  { %5255 = vsyncpa [#allocation4], 1 }
 0x43a   :  { %5257 = vsyncpa [#allocation4 + $0x1], 1 }
 0x43b   :  { %5258 = vsyncpa [#allocation7], 1 }
 0x43c   :  { %5260 = vsyncpa [#allocation7 + $0x1], 1 }
 0x43d   :  { %5261 = vsyncpa [#allocation5], 1 }
 0x43e   :  { %5263 = vsyncpa [#allocation5 + $0x1], 1 }

</bundles_post_ra>
